<compile_context>
chip_gen: v6e
topology: v6e:2x2x1
jax: 0.10.0
libtpu: 0.0.40
codegen_flags: <defaults>
</compile_context>

<pallas_src>
import jax
import jax.numpy as jnp
from jax.experimental import pallas as pl
from jax.experimental.pallas import tpu as pltpu


def linear_kernel(x_ref, w_ref, b_ref, o_ref):
    """One (tm, N) output tile: full-K matmul + bias, written directly."""
    o_ref[...] = (
        jnp.dot(x_ref[...], w_ref[...], preferred_element_type=jnp.float32)
        + b_ref[...]
    ).astype(o_ref.dtype)


def linear(x, w, b, *, tm=192):
    """x: (B, S, K) float32; w: (K, N) float32; b: (N,) float32 -> (B, S, N)."""
    B, S, K = x.shape
    N = w.shape[1]
    M = B * S
    assert M % tm == 0, "tile size must divide B*S for this shape-specialized kernel"

    x2d = x.reshape(M, K)
    b2d = b.reshape(1, N)

    cost = pl.CostEstimate(
        flops=2 * M * N * K,
        transcendentals=0,
        bytes_accessed=4 * (M * K + K * N + N + M * N),
    )

    out = pl.pallas_call(
        linear_kernel,
        out_shape=jax.ShapeDtypeStruct((M, N), x.dtype),
        grid_spec=pltpu.PrefetchScalarGridSpec(
            num_scalar_prefetch=0,
            grid=(M // tm,),  # 2 parallel M-blocks; K and N held whole
            in_specs=[
                pl.BlockSpec((tm, K), lambda i: (i, 0)),   # X tile streams over M
                pl.BlockSpec((K, N), lambda i: (0, 0)),    # W resident in VMEM
                pl.BlockSpec((1, N), lambda i: (0, 0)),    # bias resident in VMEM
            ],
            out_specs=pl.BlockSpec((tm, N), lambda i: (i, 0)),
        ),
        compiler_params=pltpu.CompilerParams(
            dimension_semantics=("parallel",),
            vmem_limit_bytes=32 * 1024 * 1024,
        ),
        cost_estimate=cost,
    )(x2d, w, b2d)

    return out.reshape(B, S, N)


if __name__ == "__main__":
    B, S, H = 1, 384, 768

    key = jax.random.PRNGKey(0)
    kx, kw, kb = jax.random.split(key, 3)

    # Deterministic synthetic parameters (PyTorch Linear has weight (out, in);
    # we store it transposed as (in, out) for the kernel).
    x = jax.random.normal(kx, (B, S, H), dtype=jnp.float32)
    w_pt = jax.random.normal(kw, (H, H), dtype=jnp.float32) * (1.0 / jnp.sqrt(H))
    b = jax.random.normal(kb, (H,), dtype=jnp.float32) * 0.01
    w = w_pt.T  # (in_features, out_features)

    y = linear(x, w, b)
    y = jax.block_until_ready(y)

    # Reference check against plain JAX (same math as torch.nn.Linear)
    y_ref = x @ w + b
    assert y.shape == (B, S, H)
    assert jnp.allclose(y, y_ref, atol=1e-3, rtol=1e-3)

    print("KERNEL_OK")
</pallas_src>

<mosaic_0001>
module attributes {stable_mosaic.version = 11 : i64} {
  func.func @linear_kernel(%arg0: i32, %arg1: memref<192x768xf32, #tpu.memory_space<vmem>>, %arg2: memref<768x768xf32, #tpu.memory_space<vmem>>, %arg3: memref<1x768xf32, #tpu.memory_space<vmem>>, %arg4: memref<192x768xf32, #tpu.memory_space<vmem>>) attributes {dimension_semantics = [#tpu.dimension_semantics<parallel>], iteration_bounds = array<i64: 2>, scalar_prefetch = 0 : i64, scratch_operands = 0 : i64, tpu.core_type = #tpu.core_type<tc>, window_params = [{transform_indices = @transform_0, window_bounds = array<i64: 192, 768>}, {pipeline_mode = #tpu.pipeline_mode<synchronous>, transform_indices = @transform_1, window_bounds = array<i64: 768, 768>}, {pipeline_mode = #tpu.pipeline_mode<synchronous>, transform_indices = @transform_2, window_bounds = array<i64: 1, 768>}, {transform_indices = @transform_3, window_bounds = array<i64: 192, 768>}]} {
    %c0 = arith.constant 0 : index
    %c0_0 = arith.constant 0 : index
    %0 = vector.load %arg1[%c0, %c0_0] : memref<192x768xf32, #tpu.memory_space<vmem>>, vector<192x768xf32>
    %c0_1 = arith.constant 0 : index
    %c0_2 = arith.constant 0 : index
    %1 = vector.load %arg2[%c0_1, %c0_2] : memref<768x768xf32, #tpu.memory_space<vmem>>, vector<768x768xf32>
    %cst = arith.constant dense<0.000000e+00> : vector<192x768xf32>
    %2 = tpu.matmul %0, %1, %cst {dimension_numbers = #tpu.dot_dimension_numbers<[1], [0], [0], [1], [0, 0, 1, 1], [], []>} : vector<192x768xf32>, vector<768x768xf32>, vector<192x768xf32> -> vector<192x768xf32>
    %c0_3 = arith.constant 0 : index
    %c0_4 = arith.constant 0 : index
    %3 = vector.load %arg3[%c0_3, %c0_4] : memref<1x768xf32, #tpu.memory_space<vmem>>, vector<1x768xf32>
    %4 = vector.broadcast %3 : vector<1x768xf32> to vector<192x768xf32>
    %5 = arith.addf %2, %4 : vector<192x768xf32>
    %c0_5 = arith.constant 0 : index
    %c0_6 = arith.constant 0 : index
    %6 = vector.load %arg4[%c0_5, %c0_6] : memref<192x768xf32, #tpu.memory_space<vmem>>, vector<192x768xf32>
    tpu.vector_store %arg4[%c0_5, %c0_6], %5 {strides = array<i32>} : memref<192x768xf32, #tpu.memory_space<vmem>>, vector<192x768xf32>,
    return
  }
  func.func @transform_0(%arg0: i32) -> (i32, i32) {
    %c0_i32 = arith.constant 0 : i32
    %c0_i32_0 = arith.constant 0 : i32
    return %arg0, %c0_i32 : i32, i32
  }
  func.func @transform_1(%arg0: i32) -> (i32, i32) {
    %c0_i32 = arith.constant 0 : i32
    %c0_i32_0 = arith.constant 0 : i32
    %c0_i32_1 = arith.constant 0 : i32
    return %c0_i32, %c0_i32_0 : i32, i32
  }
  func.func @transform_2(%arg0: i32) -> (i32, i32) {
    %c0_i32 = arith.constant 0 : i32
    %c0_i32_0 = arith.constant 0 : i32
    %c0_i32_1 = arith.constant 0 : i32
    return %c0_i32, %c0_i32_0 : i32, i32
  }
  func.func @transform_3(%arg0: i32) -> (i32, i32) {
    %c0_i32 = arith.constant 0 : i32
    %c0_i32_0 = arith.constant 0 : i32
    return %arg0, %c0_i32 : i32, i32
  }
}

</mosaic_0001>

<bundles_post_ra>
// kernel: tpu_custom_call.1
= control target key start
LH: loop header
LB: loop body
LE: loop exit
PB: predicated region body
PF: predicated region fallthrough
CT: control target
= control target key end

     0   :  { %8 = vsyncpa [#allocation3], 0  ;;  %s5378_s0 = inlined_call_operand.hbm [shape: f32[384,768], index: 0, kind: input, shape index: {}]   ;;  %s5379_s1 = inlined_call_operand.hbm [shape: f32[768,768], index: 1, kind: input, shape index: {}]   ;;  %s5380_s2 = inlined_call_operand.hbm [shape: f32[1,768], index: 2, kind: input, shape index: {}]   ;;  %s5381_s3 = inlined_call_operand.hbm [shape: f32[384,768], index: 3, kind: output, shape index: {}]  }
   0x1   :  { %10 = vsyncpa [#allocation3 + $0x1], 0 }
   0x2   :  { %11 = vsyncpa [#allocation6], 0 }
   0x3   :  { %12 = vsyncpa [#allocation4], 0 }
   0x4   :  { %14 = vsyncpa [#allocation4 + $0x1], 0  ;;  %s3645_s12 = smov 0   ;;  %s3647_s13 = smov 0  }
   0x5   :  { %s3649_s14 = smov 0   ;;  %s3651_s15 = smov 0  }
   0x6 LB: > { %s3666_s16 = sadd.s32 4294967295, %s3615_s15   ;;  %s3103_s17 = sadd.s32 4294967294, %s3615_s15   ;;  %s3615_s15 = sphi %s3651_s15, %s5504_s15   ;;  %s3611_s14 = sphi %s3649_s14, %s5503_s14   ;;  %s3607_s13 = sphi %s3647_s13, %s5502_s13   ;;  %s3603_s12 = sphi %s3645_s12, %s5501_s12  }
   0x7   : > { %p40_p0 = scmp.ne.s32.totalorder %s3607_s13, %s3603_s12  ;;  %p5382_p1 = scmp.eq.s32.totalorder %s3666_s16, 0 }
   0x8   : > { %p106_p2 = scmp.eq.s32.totalorder %s3666_s16, 1  ;;  %p112_p3 = scmp.eq.s32.totalorder %s3103_s17, 1 }
   0x9   : > { %p3675_p4 = por %p5382_p1, %p40_p0  ;;  %p3104_p5 = scmp.ge.s32.totalorder %s3615_s15, 1 }
   0xa   : > { %p3680_p6 = por %p112_p3, %p40_p0  ;;  %p119_p7 = scmp.lt.s32.totalorder %s3615_s15, 3 }
   0xb   : > { %s5390_s18 = scalar_select %p3675_p4, 1, 0 }
   0xc   : > { %s5391_s19 = scalar_select %p3680_p6, 1, 0 }
   0xd   : > { %p3685_p8 = pnand %p3104_p5, %p119_p7  ;;  %s3617_s21 = smov [#allocation5]  }
   0xe   : > { %s131_s22 = sshll.u32 %s3617_s21, 4  ;;  %s3618_s24 = smov [#allocation7]   ;;  %s132_s22 = int_to_ptr.vmem [resolvable:$true] %s131_s22 }
   0xf   : > { %s5392_s20 = scalar_select %p3685_p8, 1, 0 }
  0x10   : > { %p3195_p9 = pneg %p3685_p8  ;;  %s145_s25 = sshll.u32 %s3618_s24, 4  ;;  %s146_s25 = int_to_ptr.vmem [resolvable:$true] %s145_s25 }
  0x11   : > { %s3478_s26 = scalar_lea.vmem %s132_s22, 73728  ;;  %p3486_p5 = scmp.lt.s32.totalorder %s132_s22, %s132_s22 }
  0x12   : > { %p3694_p11 = pnand %p3195_p9, %p5382_p1  ;;  %p3479_p13 = scmp.ne.s32.totalorder %s132_s22, %s3478_s26 }
  0x13   : > { %p3487_p7 = scmp.lt.s32.totalorder %s3478_s26, %s3478_s26 }
  0x14   : > { %p3469_p12 = pneg %p3694_p11 }
  0x15   : > { %p3488_p10 = por %p3487_p7, %p3486_p5 }
  0x16   : > { %p3481_p0 = pnand %p3479_p13, %p3469_p12 }
  0x18   : > { %p3482_p3 = pneg %p3481_p0 }
  0x1a   : > { %p3489_p9 = pnand %p3488_p10, %p3482_p3 }
  0x1c   : > { %3492 = shalt.err (!%p3489_p9)
}
  0x1d   : > { %s3619_s27 = smov 768   ;;  %s3620_s28 = smov 48  }
  0x1e   : > { %3198 = dma.hbm_to_vmem [thread:$0]  (!%p3694_p11), %s5379_s1, 73728, %s132_s22, [#allocation6], %s3619_s27, %s3619_s27, %s3620_s28  }
  0x1f   : > { %s3504_s4 = scalar_lea.vmem %s146_s25, 96  ;;  %p3512_p10 = scmp.lt.s32.totalorder %s146_s25, %s146_s25 }
  0x20   : > { %p3505_p13 = scmp.ne.s32.totalorder %s146_s25, %s3504_s4  ;;  %p3513_p3 = scmp.lt.s32.totalorder %s3504_s4, %s3504_s4 }
  0x22   : > { %p3507_p0 = pnand %p3505_p13, %p3469_p12  ;;  %p3514_p7 = por %p3513_p3, %p3512_p10 }
  0x24   : > { %p3508_p5 = pneg %p3507_p0 }
  0x26   : > { %p3515_p9 = pnand %p3514_p7, %p3508_p5 }
  0x28   : > { %3518 = shalt.err (!%p3515_p9)
}
  0x29   : > { %3201 = dma.hbm_to_vmem [thread:$0]  (!%p3694_p11), %s5380_s2, 96, %s146_s25, [#allocation6]  }
  0x2a   : > { %s3720_s7 = sadd.s32 1, %s3615_s15   ;;  %s27_s9 = sadd.s32 1, %s3611_s14 }
  0x2b   : > { %s24_s8 = ssub.s32 %s3615_s15, %s3720_s7  ;;  %p34_p13 = scmp.ne.s32.totalorder %s3611_s14, %s3607_s13 }
  0x2c   : > { %p25_p12 = scmp.eq.s32.totalorder %s24_s8, 0  ;;  %p35_p0 = scmp.eq.s32.totalorder %s3615_s15, 0 }
  0x2d   : > { %p3212_p5 = scmp.lt.s32.totalorder %s3615_s15, 2  ;;  %p3734_p3 = por %p106_p2, %p34_p13 }
  0x2e   : > { %s3730_s10 = scalar_select %p25_p12, %s3611_s14, %s27_s9  }
  0x2f   : > { %p36_p10 = por %p35_p0, %p34_p13  ;;  %s156_s17 = sand.u32 1, %s3611_s14  }
  0x30   : > { %s5394_s11 = scalar_select %p3734_p3, 1, 0 }
  0x31   : > { %s3213_s21 = smul.u32 18432, %s3615_s15  ;;  %p3740_p11 = pnand %p3212_p5, %p36_p10 }
  0x32   : > { %s3179_s22 = smul.u32 1152, %s156_s17  ;;  %s3751_s4 = scalar_lea.sflag [#allocation3], %s156_s17 }
  0x33   : > { %s3747_s26 = scalar_lea.hbm %s5378_s0, %s3213_s21  ;;  %p3521_p7 = pneg %p3740_p11 }
  0x34   : > { %s160_s29 = scalar_lea.vmem [#allocation2], %s3179_s22  ;;  %s3519_s5 = scalar_lea.hbm %s3747_s26, 18432 }
  0x35   : > { %s168_s30 = sshll.u32 %s160_s29, 4  ;;  %p3520_p2 = scmp.ne.s32.totalorder %s3747_s26, %s3519_s5  ;;  %s3749_s30 = int_to_ptr.vmem [resolvable:$true] %s168_s30 }
  0x36   : > { %s3524_s9 = scalar_lea.hbm %s5378_s0, 36864  ;;  %p3525_p13 = scmp.lt.s32.totalorder %s3747_s26, %s5378_s0 }
  0x37   : > { %p3522_p9 = pnand %p3521_p7, %p3520_p2  ;;  %p3526_p0 = scmp.lt.s32.totalorder %s3524_s9, %s3519_s5 }
  0x39   : > { %p3523_p12 = pneg %p3522_p9  ;;  %p3527_p5 = por %p3526_p0, %p3525_p13 }
  0x3b   : > { %p3528_p10 = pnand %p3527_p5, %p3523_p12 }
  0x3d   : > { %3531 = shalt.err (!%p3528_p10)
}
  0x3e   : > { %s3532_s17 = scalar_lea.vmem %s3749_s30, 18432  ;;  %s3621_s22 = smov [#allocation2]  }
  0x3f   : > { %p3533_p1 = scmp.ne.s32.totalorder %s3749_s30, %s3532_s17  ;;  %s3537_s25 = sshll.u32 %s3621_s22, 4  ;;  %s3538_s25 = int_to_ptr.vmem [resolvable:$false] %s3537_s25 }
  0x40   : > { %s3539_s29 = scalar_lea.vmem %s3538_s25, 36864  ;;  %p3540_p9 = scmp.lt.s32.totalorder %s3749_s30, %s3538_s25 }
  0x41   : > { %p3535_p6 = pnand %p3533_p1, %p3521_p7  ;;  %p3541_p3 = scmp.lt.s32.totalorder %s3539_s29, %s3532_s17 }
  0x43   : > { %p3536_p2 = pneg %p3535_p6  ;;  %p3542_p4 = por %p3541_p3, %p3540_p9 }
  0x45   : > { %p3543_p8 = pnand %p3542_p4, %p3536_p2 }
  0x47   : > { %3546 = shalt.err (!%p3543_p8)
}
  0x48   : > { %3205 = dma.hbm_to_vmem [thread:$0]  (!%p3740_p11), %s3747_s26, 18432, %s3749_s30, %s3751_s4, %s3619_s27, %s3619_s27, %s3620_s28  }
  0x49   : > { %p5396_p1 = scmp.ne.s32.totalorder %s5392_s20, 0 }
  0x4b   : > { %180 = sbr.rel (%p5396_p1) target bundleno = 858 (0x35a), region = 32 }
  0x50   : > { %s3778_s5 = sand.u32 1, %s3607_s13   ;;  %p5397_p4 = scmp.ne.s32.totalorder %s5390_s18, 0 }
  0x51   : > { %s3181_s6 = smul.u32 1152, %s3778_s5  ;;  %s183_s8 = scalar_lea.sflag [#allocation3], %s3778_s5 }
  0x53   : > { %s3784_s23 = scalar_lea.vmem [#allocation2], %s3181_s6 }
  0x54   : > { %3590 = dma.done.wait (%p5397_p4), %s183_s8, 18432  }
  0x55   : > { %3592 = vsyncadd (%p5397_p4), %s183_s8, 4294948864  ;;  %p5398_p6 = scmp.eq.s32.totalorder %s3666_s16, 0 }
  0x57   : > { %3594 = dma.done.wait (%p5398_p6), [#allocation6], 73824   ;;  %p5399_p8 = pmov %p5398_p6 }
  0x58   : > { %v454_v0 = vld [vmem:[#allocation5 + $0x2d8] sm:$0xff]  ;;  %v453_v2 = vld [vmem:[#allocation5 + $0x2d0] sm:$0xff]  ;;  %v448_v4 = vld [vmem:[#allocation5 + $0x2a8] sm:$0xff]  ;;  %s4486_s18 = scalar_lea.vmem [#allocation8], %s3181_s6  ;;  %s3216_s20 = smul.u32 18432, %s3666_s16 }
  0x59   : > { %3596 = vsyncadd (%p5399_p8), [#allocation6], 4294893472  ;;  %v646_v1 = vld [vmem:[#allocation5 + $0x8d8] sm:$0xff]  ;;  %971 = vmatprep.subr.mxu0 %v454_v0  ;;  %v645_v3 = vld [vmem:[#allocation5 + $0x8d0] sm:$0xff]  ;;  %s3011_s27 = sshll.u32 %s4486_s18, 4  ;;  %s2997_s30 = scalar_lea.sflag [#allocation4], %s3778_s5  ;;  %s5330_s27 = int_to_ptr.vmem [resolvable:$true] %s3011_s27 }
  0x5a   : > { %1180 = vmatprep.subr.mxu1 %v646_v1  ;;  %v640_v5 = vld [vmem:[#allocation5 + $0x8a8] sm:$0xff]  ;;  %972 = vmatpush1.msra.mxu0 %v453_v2  ;;  %v447_v6 = vld [vmem:[#allocation5 + $0x2a0] sm:$0xff]  ;;  %v442_v8 = vld [vmem:[#allocation5 + $0x278] sm:$0xff]  ;;  %s5328_s26 = scalar_lea.hbm %s5381_s3, %s3216_s20  ;;  %s3547_s4 = scalar_lea.vmem %s5330_s27, 18432 }
  0x5b   : > { %1181 = vmatpush1.msra.mxu1 %v645_v3  ;;  %v639_v7 = vld [vmem:[#allocation5 + $0x8a0] sm:$0xff]  ;;  %973 = vmatprep.subr.mxu0 %v448_v4  ;;  %v634_v9 = vld [vmem:[#allocation5 + $0x878] sm:$0xff]  ;;  %v441_v10 = vld [vmem:[#allocation5 + $0x270] sm:$0xff]  ;;  %p3548_p3 = scmp.ne.s32.totalorder %s5330_s27, %s3547_s4  ;;  %p5498_p11 = scmp.ne.s32.totalorder %s5394_s11, 0 }
  0x5c   : > { %1182 = vmatprep.subr.mxu1 %v640_v5  ;;  %v633_v11 = vld [vmem:[#allocation5 + $0x870] sm:$0xff]  ;;  %974 = vmatpush1.msra.mxu0 %v447_v6  ;;  %v436_v12 = vld [vmem:[#allocation5 + $0x248] sm:$0xff]  ;;  %v435_v14 = vld [vmem:[#allocation5 + $0x240] sm:$0xff]  ;;  %s3622_s9 = smov [#allocation8]  }
  0x5d   : > { %1183 = vmatpush1.msra.mxu1 %v639_v7  ;;  %v628_v13 = vld [vmem:[#allocation5 + $0x848] sm:$0xff]  ;;  %975 = vmatprep.subr.mxu0 %v442_v8  ;;  %v627_v15 = vld [vmem:[#allocation5 + $0x840] sm:$0xff]  ;;  %v430_v16 = vld [vmem:[#allocation5 + $0x218] sm:$0xff]  ;;  %p3549_p7 = pnand %p3548_p3, %p5498_p11  ;;  %s3551_s21 = sshll.u32 %s3622_s9, 4  ;;  %s3552_s21 = int_to_ptr.vmem [resolvable:$false] %s3551_s21 }
  0x5e   : > { %1184 = vmatprep.subr.mxu1 %v634_v9  ;;  %976 = vmatpush1.msra.mxu0 %v441_v10  ;;  %v622_v17 = vld [vmem:[#allocation5 + $0x818] sm:$0xff]  ;;  %v429_v18 = vld [vmem:[#allocation5 + $0x210] sm:$0xff]  ;;  %v424_v20 = vld [vmem:[#allocation5 + $0x1e8] sm:$0xff]  ;;  %s3553_s24 = scalar_lea.vmem %s3552_s21, 36864  ;;  %p3554_p13 = scmp.lt.s32.totalorder %s5330_s27, %s3552_s21 }
  0x5f   : > { %1185 = vmatpush1.msra.mxu1 %v633_v11  ;;  %977 = vmatprep.subr.mxu0 %v436_v12  ;;  %v621_v19 = vld [vmem:[#allocation5 + $0x810] sm:$0xff]  ;;  %v616_v21 = vld [vmem:[#allocation5 + $0x7e8] sm:$0xff]  ;;  %v423_v22 = vld [vmem:[#allocation5 + $0x1e0] sm:$0xff]  ;;  %p3550_p12 = pneg %p3549_p7  ;;  %p3555_p0 = scmp.lt.s32.totalorder %s3553_s24, %s3547_s4 }
  0x60   : > { %1186 = vmatprep.subr.mxu1 %v628_v13  ;;  %978 = vmatpush1.msra.mxu0 %v435_v14  ;;  %v615_v23 = vld [vmem:[#allocation5 + $0x7e0] sm:$0xff]  ;;  %v418_v24 = vld [vmem:[#allocation5 + $0x1b8] sm:$0xff]  ;;  %v417_v26 = vld [vmem:[#allocation5 + $0x1b0] sm:$0xff] }
  0x61   : > { %1187 = vmatpush1.msra.mxu1 %v627_v15  ;;  %979 = vmatprep.subr.mxu0 %v430_v16  ;;  %v610_v25 = vld [vmem:[#allocation5 + $0x7b8] sm:$0xff]  ;;  %v609_v27 = vld [vmem:[#allocation5 + $0x7b0] sm:$0xff]  ;;  %v412_v28 = vld [vmem:[#allocation5 + $0x188] sm:$0xff]  ;;  %p3556_p5 = por %p3555_p0, %p3554_p13 }
  0x62   : > { %1188 = vmatprep.subr.mxu1 %v622_v17  ;;  %980 = vmatpush1.msra.mxu0 %v429_v18  ;;  %v604_v29 = vld [vmem:[#allocation5 + $0x788] sm:$0xff]  ;;  %v411_v30 = vld [vmem:[#allocation5 + $0x180] sm:$0xff]  ;;  %v406_v32 = vld [vmem:[#allocation5 + $0x158] sm:$0xff] }
  0x63   : > { %1189 = vmatpush1.msra.mxu1 %v621_v19  ;;  %981 = vmatprep.subr.mxu0 %v424_v20  ;;  %v603_v31 = vld [vmem:[#allocation5 + $0x780] sm:$0xff]  ;;  %v598_v33 = vld [vmem:[#allocation5 + $0x758] sm:$0xff]  ;;  %v405_v34 = vld [vmem:[#allocation5 + $0x150] sm:$0xff]  ;;  %p3557_p10 = pnand %p3556_p5, %p3550_p12 }
  0x64   : > { %1190 = vmatprep.subr.mxu1 %v616_v21  ;;  %982 = vmatpush1.msra.mxu0 %v423_v22  ;;  %v597_v35 = vld [vmem:[#allocation5 + $0x750] sm:$0xff]  ;;  %v400_v36 = vld [vmem:[#allocation5 + $0x128] sm:$0xff]  ;;  %v399_v38 = vld [vmem:[#allocation5 + $0x120] sm:$0xff] }
  0x65   : > { %1191 = vmatpush1.msra.mxu1 %v615_v23  ;;  %983 = vmatprep.subr.mxu0 %v418_v24  ;;  %v592_v37 = vld [vmem:[#allocation5 + $0x728] sm:$0xff]  ;;  %v591_v39 = vld [vmem:[#allocation5 + $0x720] sm:$0xff]  ;;  %v394_v40 = vld [vmem:[#allocation5 + $0xf8] sm:$0xff] }
  0x66   : > { %1192 = vmatprep.subr.mxu1 %v610_v25  ;;  %984 = vmatpush1.msra.mxu0 %v417_v26  ;;  %v586_v41 = vld [vmem:[#allocation5 + $0x6f8] sm:$0xff]  ;;  %v393_v42 = vld [vmem:[#allocation5 + $0xf0] sm:$0xff]  ;;  %v388_v44 = vld [vmem:[#allocation5 + $0xc8] sm:$0xff] }
  0x67   : > { %1193 = vmatpush1.msra.mxu1 %v609_v27  ;;  %985 = vmatprep.subr.mxu0 %v412_v28  ;;  %v585_v43 = vld [vmem:[#allocation5 + $0x6f0] sm:$0xff]  ;;  %v580_v45 = vld [vmem:[#allocation5 + $0x6c8] sm:$0xff]  ;;  %v387_v46 = vld [vmem:[#allocation5 + $0xc0] sm:$0xff] }
  0x68   : > { %1194 = vmatprep.subr.mxu1 %v604_v29  ;;  %986 = vmatpush1.msra.mxu0 %v411_v30  ;;  %v579_v47 = vld [vmem:[#allocation5 + $0x6c0] sm:$0xff]  ;;  %v382_v48 = vld [vmem:[#allocation5 + $0x98] sm:$0xff]  ;;  %v381_v50 = vld [vmem:[#allocation5 + $0x90] sm:$0xff] }
  0x69   : > { %1195 = vmatpush1.msra.mxu1 %v603_v31  ;;  %987 = vmatprep.subr.mxu0 %v406_v32  ;;  %v574_v49 = vld [vmem:[#allocation5 + $0x698] sm:$0xff]  ;;  %v573_v51 = vld [vmem:[#allocation5 + $0x690] sm:$0xff]  ;;  %v376_v52 = vld [vmem:[#allocation5 + $0x68] sm:$0xff] }
  0x6a   : > { %1196 = vmatprep.subr.mxu1 %v598_v33  ;;  %988 = vmatpush1.msra.mxu0 %v405_v34  ;;  %v568_v53 = vld [vmem:[#allocation5 + $0x668] sm:$0xff]  ;;  %v375_v54 = vld [vmem:[#allocation5 + $0x60] sm:$0xff]  ;;  %v370_v56 = vld [vmem:[#allocation5 + $0x38] sm:$0xff] }
  0x6b   : > { %1197 = vmatpush1.msra.mxu1 %v597_v35  ;;  %989 = vmatprep.subr.mxu0 %v400_v36  ;;  %v567_v55 = vld [vmem:[#allocation5 + $0x660] sm:$0xff]  ;;  %v562_v57 = vld [vmem:[#allocation5 + $0x638] sm:$0xff]  ;;  %v369_v58 = vld [vmem:[#allocation5 + $0x30] sm:$0xff] }
  0x6c   : > { %1198 = vmatprep.subr.mxu1 %v592_v37  ;;  %990 = vmatpush1.msra.mxu0 %v399_v38  ;;  %v561_v59 = vld [vmem:[#allocation5 + $0x630] sm:$0xff]  ;;  %v364_v60 = vld [vmem:[#allocation5 + $0x8] sm:$0xff]  ;;  %v363_v62 = vld [vmem:[#allocation5] sm:$0xff] }
  0x6d   : > { %1199 = vmatpush1.msra.mxu1 %v591_v39  ;;  %991 = vmatprep.subr.mxu0 %v394_v40  ;;  %v556_v61 = vld [vmem:[#allocation5 + $0x608] sm:$0xff]  ;;  %v555_v63 = vld [vmem:[#allocation5 + $0x600] sm:$0xff]  ;;  %v550_v0 = vld [vmem:[#allocation5 + $0x5d8] sm:$0xff] }
  0x6e   : > { %1200 = vmatprep.subr.mxu1 %v586_v41  ;;  %992 = vmatpush1.msra.mxu0 %v393_v42  ;;  %v742_v1 = vld [vmem:[#allocation5 + $0xbd8] sm:$0xff]  ;;  %v549_v2 = vld [vmem:[#allocation5 + $0x5d0] sm:$0xff]  ;;  %v544_v4 = vld [vmem:[#allocation5 + $0x5a8] sm:$0xff] }
  0x6f   : > { %1201 = vmatpush1.msra.mxu1 %v585_v43  ;;  %993 = vmatprep.subr.mxu0 %v388_v44  ;;  %v741_v3 = vld [vmem:[#allocation5 + $0xbd0] sm:$0xff]  ;;  %v736_v5 = vld [vmem:[#allocation5 + $0xba8] sm:$0xff]  ;;  %v543_v6 = vld [vmem:[#allocation5 + $0x5a0] sm:$0xff] }
  0x70   : > { %1202 = vmatprep.subr.mxu1 %v580_v45  ;;  %994 = vmatpush1.msra.mxu0 %v387_v46  ;;  %v735_v7 = vld [vmem:[#allocation5 + $0xba0] sm:$0xff]  ;;  %v538_v8 = vld [vmem:[#allocation5 + $0x578] sm:$0xff]  ;;  %v537_v10 = vld [vmem:[#allocation5 + $0x570] sm:$0xff] }
  0x71   : > { %1203 = vmatpush1.msra.mxu1 %v579_v47  ;;  %995 = vmatprep.subr.mxu0 %v382_v48  ;;  %v730_v9 = vld [vmem:[#allocation5 + $0xb78] sm:$0xff]  ;;  %v729_v11 = vld [vmem:[#allocation5 + $0xb70] sm:$0xff]  ;;  %v532_v12 = vld [vmem:[#allocation5 + $0x548] sm:$0xff] }
  0x72   : > { %1204 = vmatprep.subr.mxu1 %v574_v49  ;;  %996 = vmatpush1.msra.mxu0 %v381_v50  ;;  %v724_v13 = vld [vmem:[#allocation5 + $0xb48] sm:$0xff]  ;;  %v531_v14 = vld [vmem:[#allocation5 + $0x540] sm:$0xff]  ;;  %v526_v16 = vld [vmem:[#allocation5 + $0x518] sm:$0xff] }
  0x73   : > { %1205 = vmatpush1.msra.mxu1 %v573_v51  ;;  %997 = vmatprep.subr.mxu0 %v376_v52  ;;  %v723_v15 = vld [vmem:[#allocation5 + $0xb40] sm:$0xff]  ;;  %v718_v17 = vld [vmem:[#allocation5 + $0xb18] sm:$0xff]  ;;  %v525_v18 = vld [vmem:[#allocation5 + $0x510] sm:$0xff] }
  0x74   : > { %1206 = vmatprep.subr.mxu1 %v568_v53  ;;  %998 = vmatpush1.msra.mxu0 %v375_v54  ;;  %v717_v19 = vld [vmem:[#allocation5 + $0xb10] sm:$0xff]  ;;  %v520_v20 = vld [vmem:[#allocation5 + $0x4e8] sm:$0xff]  ;;  %v519_v22 = vld [vmem:[#allocation5 + $0x4e0] sm:$0xff] }
  0x75   : > { %1207 = vmatpush1.msra.mxu1 %v567_v55  ;;  %999 = vmatprep.subr.mxu0 %v370_v56  ;;  %v712_v21 = vld [vmem:[#allocation5 + $0xae8] sm:$0xff]  ;;  %v711_v23 = vld [vmem:[#allocation5 + $0xae0] sm:$0xff]  ;;  %v514_v24 = vld [vmem:[#allocation5 + $0x4b8] sm:$0xff] }
  0x76   : > { %1208 = vmatprep.subr.mxu1 %v562_v57  ;;  %1000 = vmatpush1.msra.mxu0 %v369_v58  ;;  %v706_v25 = vld [vmem:[#allocation5 + $0xab8] sm:$0xff]  ;;  %v513_v26 = vld [vmem:[#allocation5 + $0x4b0] sm:$0xff]  ;;  %v508_v28 = vld [vmem:[#allocation5 + $0x488] sm:$0xff] }
  0x77   : > { %1209 = vmatpush1.msra.mxu1 %v561_v59  ;;  %1001 = vmatprep.subr.mxu0 %v364_v60  ;;  %v705_v27 = vld [vmem:[#allocation5 + $0xab0] sm:$0xff]  ;;  %v700_v29 = vld [vmem:[#allocation5 + $0xa88] sm:$0xff]  ;;  %v507_v30 = vld [vmem:[#allocation5 + $0x480] sm:$0xff] }
  0x78   : > { %1210 = vmatprep.subr.mxu1 %v556_v61  ;;  %1002 = vmatpush1.msra.mxu0 %v363_v62  ;;  %v699_v31 = vld [vmem:[#allocation5 + $0xa80] sm:$0xff]  ;;  %v502_v32 = vld [vmem:[#allocation5 + $0x458] sm:$0xff]  ;;  %v501_v34 = vld [vmem:[#allocation5 + $0x450] sm:$0xff] }
  0x79   : > { %1211 = vmatpush1.msra.mxu1 %v555_v63  ;;  %1003 = vmatprep.subr.mxu0 %v550_v0  ;;  %v694_v33 = vld [vmem:[#allocation5 + $0xa58] sm:$0xff]  ;;  %v693_v35 = vld [vmem:[#allocation5 + $0xa50] sm:$0xff]  ;;  %v496_v36 = vld [vmem:[#allocation5 + $0x428] sm:$0xff] }
  0x7a   : > { %1212 = vmatprep.subr.mxu1 %v742_v1  ;;  %1004 = vmatpush2.msra.mxu0 %v549_v2  ;;  %v688_v37 = vld [vmem:[#allocation5 + $0xa28] sm:$0xff]  ;;  %v495_v38 = vld [vmem:[#allocation5 + $0x420] sm:$0xff]  ;;  %v490_v40 = vld [vmem:[#allocation5 + $0x3f8] sm:$0xff] }
  0x7b   : > { %1213 = vmatpush2.msra.mxu1 %v741_v3  ;;  %1005 = vmatprep.subr.mxu0 %v544_v4  ;;  %v687_v39 = vld [vmem:[#allocation5 + $0xa20] sm:$0xff]  ;;  %v682_v41 = vld [vmem:[#allocation5 + $0x9f8] sm:$0xff]  ;;  %v489_v42 = vld [vmem:[#allocation5 + $0x3f0] sm:$0xff] }
  0x7c   : > { %1214 = vmatprep.subr.mxu1 %v736_v5  ;;  %1006 = vmatpush2.msra.mxu0 %v543_v6  ;;  %v681_v43 = vld [vmem:[#allocation5 + $0x9f0] sm:$0xff]  ;;  %v484_v44 = vld [vmem:[#allocation5 + $0x3c8] sm:$0xff]  ;;  %v483_v46 = vld [vmem:[#allocation5 + $0x3c0] sm:$0xff] }
  0x7d   : > { %1215 = vmatpush2.msra.mxu1 %v735_v7  ;;  %1007 = vmatprep.subr.mxu0 %v538_v8  ;;  %v676_v45 = vld [vmem:[#allocation5 + $0x9c8] sm:$0xff]  ;;  %v675_v47 = vld [vmem:[#allocation5 + $0x9c0] sm:$0xff]  ;;  %v478_v48 = vld [vmem:[#allocation5 + $0x398] sm:$0xff] }
  0x7e   : > { %1216 = vmatprep.subr.mxu1 %v730_v9  ;;  %1008 = vmatpush2.msra.mxu0 %v537_v10  ;;  %v670_v49 = vld [vmem:[#allocation5 + $0x998] sm:$0xff]  ;;  %v477_v50 = vld [vmem:[#allocation5 + $0x390] sm:$0xff]  ;;  %v472_v52 = vld [vmem:[#allocation5 + $0x368] sm:$0xff] }
  0x7f   : > { %1217 = vmatpush2.msra.mxu1 %v729_v11  ;;  %1009 = vmatprep.subr.mxu0 %v532_v12  ;;  %v669_v51 = vld [vmem:[#allocation5 + $0x990] sm:$0xff]  ;;  %v664_v53 = vld [vmem:[#allocation5 + $0x968] sm:$0xff]  ;;  %v471_v54 = vld [vmem:[#allocation5 + $0x360] sm:$0xff] }
  0x80   : > { %1218 = vmatprep.subr.mxu1 %v724_v13  ;;  %1010 = vmatpush2.msra.mxu0 %v531_v14  ;;  %v663_v55 = vld [vmem:[#allocation5 + $0x960] sm:$0xff]  ;;  %v466_v56 = vld [vmem:[#allocation5 + $0x338] sm:$0xff]  ;;  %v465_v58 = vld [vmem:[#allocation5 + $0x330] sm:$0xff] }
  0x81   : > { %1219 = vmatpush2.msra.mxu1 %v723_v15  ;;  %1011 = vmatprep.subr.mxu0 %v526_v16  ;;  %v658_v57 = vld [vmem:[#allocation5 + $0x938] sm:$0xff]  ;;  %v657_v59 = vld [vmem:[#allocation5 + $0x930] sm:$0xff]  ;;  %v460_v60 = vld [vmem:[#allocation5 + $0x308] sm:$0xff] }
  0x82   : > { %1220 = vmatprep.subr.mxu1 %v718_v17  ;;  %1012 = vmatpush2.msra.mxu0 %v525_v18  ;;  %v652_v61 = vld [vmem:[#allocation5 + $0x908] sm:$0xff]  ;;  %v459_v62 = vld [vmem:[#allocation5 + $0x300] sm:$0xff]  ;;  %v222_v1 = vld [vmem:[%s3784_s23 + $0x18] sm:$0xff] }
  0x83   : > { %1221 = vmatpush2.msra.mxu1 %v717_v19  ;;  %1013 = vmatprep.subr.mxu0 %v520_v20  ;;  %v3795_v63 = vld [vmem:[%s3784_s23 + $0x8] sm:$0xff]  ;;  %v651_v0 = vld [vmem:[#allocation5 + $0x900] sm:$0xff]  ;;  %v221_v3 = vld [vmem:[%s3784_s23 + $0x10] sm:$0xff] }
  0x84   : > { %1222 = vmatprep.subr.mxu1 %v712_v21  ;;  %1014 = vmatpush2.msra.mxu0 %v519_v22  ;;  %v3799_v2 = vld [vmem:[%s3784_s23] sm:$0xff]  ;;  %v838_v4 = vld [vmem:[#allocation5 + $0xed8] sm:$0xff]  ;;  %v456_v5 = vld [vmem:[#allocation5 + $0x2e8] sm:$0xff] }
  0x85   : > { %1223 = vmatpush2.msra.mxu1 %v711_v23  ;;  %1015 = vmatprep.subr.mxu0 %v514_v24  ;;  %v837_v6 = vld [vmem:[#allocation5 + $0xed0] sm:$0xff]  ;;  %v455_v7 = vld [vmem:[#allocation5 + $0x2e0] sm:$0xff]  ;;  %v3805_v8 = vld [vmem:[%s3784_s23 + $0x38] sm:$0xff] }
  0x86   : > { %1224 = vmatprep.subr.mxu1 %v706_v25  ;;  %1016 = vmatpush2.msra.mxu0 %v513_v26  ;;  %v228_v9 = vld [vmem:[%s3784_s23 + $0x48] sm:$0xff]  ;;  %v450_v11 = vld [vmem:[#allocation5 + $0x2b8] sm:$0xff]  ;;  %v3809_v12 = vld [vmem:[%s3784_s23 + $0x30] sm:$0xff] }
  0x87   : > { %1225 = vmatpush2.msra.mxu1 %v705_v27  ;;  %1017 = vmatprep.subr.mxu0 %v508_v28  ;;  %v832_v10 = vld [vmem:[#allocation5 + $0xea8] sm:$0xff]  ;;  %v227_v13 = vld [vmem:[%s3784_s23 + $0x40] sm:$0xff]  ;;  %v449_v15 = vld [vmem:[#allocation5 + $0x2b0] sm:$0xff] }
  0x88   : > { %1226 = vmatprep.subr.mxu1 %v700_v29  ;;  %1018 = vmatpush2.msra.mxu0 %v507_v30  ;;  %v831_v14 = vld [vmem:[#allocation5 + $0xea0] sm:$0xff]  ;;  %v826_v16 = vld [vmem:[#allocation5 + $0xe78] sm:$0xff]  ;;  %v444_v17 = vld [vmem:[#allocation5 + $0x288] sm:$0xff] }
  0x89   : > { %1227 = vmatpush2.msra.mxu1 %v699_v31  ;;  %1019 = vmatprep.subr.mxu0 %v502_v32  ;;  %v3815_v18 = vld [vmem:[%s3784_s23 + $0x68] sm:$0xff]  ;;  %v234_v19 = vld [vmem:[%s3784_s23 + $0x78] sm:$0xff]  ;;  %v825_v20 = vld [vmem:[#allocation5 + $0xe70] sm:$0xff] }
  0x8a   : > { %1228 = vmatprep.subr.mxu1 %v694_v33  ;;  %1020 = vmatpush2.msra.mxu0 %v501_v34  ;;  %v443_v21 = vld [vmem:[#allocation5 + $0x280] sm:$0xff]  ;;  %v233_v23 = vld [vmem:[%s3784_s23 + $0x70] sm:$0xff]  ;;  %v820_v24 = vld [vmem:[#allocation5 + $0xe48] sm:$0xff] }
  0x8b   : > { %1229 = vmatpush2.msra.mxu1 %v693_v35  ;;  %1021 = vmatprep.subr.mxu0 %v496_v36  ;;  %v3819_v22 = vld [vmem:[%s3784_s23 + $0x60] sm:$0xff]  ;;  %v438_v25 = vld [vmem:[#allocation5 + $0x258] sm:$0xff]  ;;  %v437_v27 = vld [vmem:[#allocation5 + $0x250] sm:$0xff] }
  0x8c   : > { %1230 = vmatprep.subr.mxu1 %v688_v37  ;;  %1022 = vmatpush2.msra.mxu0 %v495_v38  ;;  %v819_v26 = vld [vmem:[#allocation5 + $0xe40] sm:$0xff]  ;;  %v3825_v28 = vld [vmem:[%s3784_s23 + $0x98] sm:$0xff]  ;;  %v240_v29 = vld [vmem:[%s3784_s23 + $0xa8] sm:$0xff] }
  0x8d   : > { %1231 = vmatpush2.msra.mxu1 %v687_v39  ;;  %1023 = vmatprep.subr.mxu0 %v490_v40  ;;  %v3829_v30 = vld [vmem:[%s3784_s23 + $0x90] sm:$0xff]  ;;  %v239_v31 = vld [vmem:[%s3784_s23 + $0xa0] sm:$0xff]  ;;  %v814_v32 = vld [vmem:[#allocation5 + $0xe18] sm:$0xff] }
  0x8e   : > { %1232 = vmatprep.subr.mxu1 %v682_v41  ;;  %1024 = vmatpush2.msra.mxu0 %v489_v42  ;;  %v432_v33 = vld [vmem:[#allocation5 + $0x228] sm:$0xff]  ;;  %v813_v34 = vld [vmem:[#allocation5 + $0xe10] sm:$0xff]  ;;  %v431_v35 = vld [vmem:[#allocation5 + $0x220] sm:$0xff] }
  0x8f   : > { %1233 = vmatpush2.msra.mxu1 %v681_v43  ;;  %1025 = vmatprep.subr.mxu0 %v484_v44  ;;  %v3835_v36 = vld [vmem:[%s3784_s23 + $0xc8] sm:$0xff]  ;;  %v246_v37 = vld [vmem:[%s3784_s23 + $0xd8] sm:$0xff]  ;;  %v3839_v40 = vld [vmem:[%s3784_s23 + $0xc0] sm:$0xff] }
  0x90   : > { %1234 = vmatprep.subr.mxu1 %v676_v45  ;;  %1026 = vmatpush2.msra.mxu0 %v483_v46  ;;  %v808_v38 = vld [vmem:[#allocation5 + $0xde8] sm:$0xff]  ;;  %v426_v39 = vld [vmem:[#allocation5 + $0x1f8] sm:$0xff]  ;;  %v245_v41 = vld [vmem:[%s3784_s23 + $0xd0] sm:$0xff] }
  0x91   : > { %1235 = vmatpush2.msra.mxu1 %v675_v47  ;;  %1027 = vmatprep.subr.mxu0 %v478_v48  ;;  %v807_v42 = vld [vmem:[#allocation5 + $0xde0] sm:$0xff]  ;;  %v425_v43 = vld [vmem:[#allocation5 + $0x1f0] sm:$0xff]  ;;  %v802_v44 = vld [vmem:[#allocation5 + $0xdb8] sm:$0xff] }
  0x92   : > { %1236 = vmatprep.subr.mxu1 %v670_v49  ;;  %1028 = vmatpush2.msra.mxu0 %v477_v50  ;;  %v420_v45 = vld [vmem:[#allocation5 + $0x1c8] sm:$0xff]  ;;  %v3845_v46 = vld [vmem:[%s3784_s23 + $0xf8] sm:$0xff]  ;;  %v801_v48 = vld [vmem:[#allocation5 + $0xdb0] sm:$0xff] }
  0x93   : > { %1237 = vmatpush2.msra.mxu1 %v669_v51  ;;  %1029 = vmatprep.subr.mxu0 %v472_v52  ;;  %v252_v47 = vld [vmem:[%s3784_s23 + $0x108] sm:$0xff]  ;;  %v419_v49 = vld [vmem:[#allocation5 + $0x1c0] sm:$0xff]  ;;  %v3849_v50 = vld [vmem:[%s3784_s23 + $0xf0] sm:$0xff] }
  0x94   : > { %1238 = vmatprep.subr.mxu1 %v664_v53  ;;  %1030 = vmatpush2.msra.mxu0 %v471_v54  ;;  %v251_v51 = vld [vmem:[%s3784_s23 + $0x100] sm:$0xff]  ;;  %v796_v52 = vld [vmem:[#allocation5 + $0xd88] sm:$0xff]  ;;  %v414_v53 = vld [vmem:[#allocation5 + $0x198] sm:$0xff] }
  0x95   : > { %1239 = vmatpush2.msra.mxu1 %v663_v55  ;;  %1031 = vmatprep.subr.mxu0 %v466_v56  ;;  %v795_v54 = vld [vmem:[#allocation5 + $0xd80] sm:$0xff]  ;;  %v413_v55 = vld [vmem:[#allocation5 + $0x190] sm:$0xff]  ;;  %v3855_v56 = vld [vmem:[%s3784_s23 + $0x128] sm:$0xff] }
  0x96   : > { %1240 = vmatprep.subr.mxu1 %v658_v57  ;;  %1032 = vmatpush2.msra.mxu0 %v465_v58  ;;  %v258_v57 = vld [vmem:[%s3784_s23 + $0x138] sm:$0xff]  ;;  %v3859_v58 = vld [vmem:[%s3784_s23 + $0x120] sm:$0xff] }
  0x97   : > { %1241 = vmatpush2.msra.mxu1 %v657_v59  ;;  %1033 = vmatprep.subr.mxu0 %v460_v60  ;;  %v257_v59 = vld [vmem:[%s3784_s23 + $0x130] sm:$0xff]  ;;  %v790_v60 = vld [vmem:[#allocation5 + $0xd58] sm:$0xff] }
  0x98   : > { %1242 = vmatprep.subr.mxu1 %v652_v61  ;;  %1034 = vmatpush2.msra.mxu0 %v459_v62  ;;  %v408_v61 = vld [vmem:[#allocation5 + $0x168] sm:$0xff]  ;;  %v789_v62 = vld [vmem:[#allocation5 + $0xd50] sm:$0xff] }
  0x99   : > { %1035 = vmatprep.mubr.f32.mxu0 %v3795_v63  ;;  %1243 = vmatpush2.msra.mxu1 %v651_v0  ;;  %v407_v0 = vld [vmem:[#allocation5 + $0x160] sm:$0xff] }
  0x9a   : > { %1244 = vmatprep.mubr.f32.mxu1 %v222_v1  ;;  %1036 = vmatmul.mubr.f32.vlgmr.msra.gmra.mxu0 %v3799_v2  ;;  %v3865_v1 = vld [vmem:[%s3784_s23 + $0x158] sm:$0xff] }
  0x9b   : > { %1245 = vmatmul.mubr.f32.vlgmr.msra.gmra.mxu1 %v221_v3  ;;  %1389 = vmatprep.subr.mxu0 %v838_v4  ;;  %v264_v3 = vld [vmem:[%s3784_s23 + $0x168] sm:$0xff] }
  0x9c   : > { %1598 = vmatprep.subr.mxu1 %v456_v5  ;;  %1390 = vmatpush1.msra.mxu0 %v837_v6  ;;  %v784_v4 = vld [vmem:[#allocation5 + $0xd28] sm:$0xff]  ;;  %v402_v5 = vld [vmem:[#allocation5 + $0x138] sm:$0xff]  ;;  %v3869_v6 = vld [vmem:[%s3784_s23 + $0x150] sm:$0xff] }
  0x9d   : > { %1599 = vmatpush1.msra.mxu1 %v455_v7  ;;  %1041 = vmatprep.mubr.f32.mxu0 %v3805_v8  ;;  %v263_v7 = vld [vmem:[%s3784_s23 + $0x160] sm:$0xff] }
  0x9e   : > { %1250 = vmatprep.mubr.f32.mxu1 %v228_v9  ;;  %1391 = vmatprep.subr.mxu0 %v832_v10  ;;  %v783_v9 = vld [vmem:[#allocation5 + $0xd20] sm:$0xff]  ;;  %v401_v10 = vld [vmem:[#allocation5 + $0x130] sm:$0xff] }
  0x9f   : > { %1600 = vmatprep.subr.mxu1 %v450_v11  ;;  %1042 = vmatmul.mubr.f32.gmra.mxu0 %v3809_v12  ;;  %v778_v11 = vld [vmem:[#allocation5 + $0xcf8] sm:$0xff] }
  0xa0   : > { %1251 = vmatmul.mubr.f32.gmra.mxu1 %v227_v13  ;;  %1392 = vmatpush1.msra.mxu0 %v831_v14  ;;  %v396_v13 = vld [vmem:[#allocation5 + $0x108] sm:$0xff] }
  0xa1   : > { %1601 = vmatpush1.msra.mxu1 %v449_v15  ;;  %1393 = vmatprep.subr.mxu0 %v826_v16  ;;  %v3875_v14 = vld [vmem:[%s3784_s23 + $0x188] sm:$0xff]  ;;  %v270_v15 = vld [vmem:[%s3784_s23 + $0x198] sm:$0xff]  ;;  %v777_v16 = vld [vmem:[#allocation5 + $0xcf0] sm:$0xff] }
  0xa2   : > { %1602 = vmatprep.subr.mxu1 %v444_v17  ;;  %1047 = vmatprep.mubr.f32.mxu0 %v3815_v18  ;;  %v395_v17 = vld [vmem:[#allocation5 + $0x100] sm:$0xff] }
  0xa3   : > { %1256 = vmatprep.mubr.f32.mxu1 %v234_v19  ;;  %1394 = vmatpush1.msra.mxu0 %v825_v20  ;;  %v3879_v19 = vld [vmem:[%s3784_s23 + $0x180] sm:$0xff]  ;;  %v269_v20 = vld [vmem:[%s3784_s23 + $0x190] sm:$0xff] }
  0xa4   : > { %1603 = vmatpush1.msra.mxu1 %v443_v21  ;;  %1048 = vmatmul.mubr.f32.gmra.mxu0 %v3819_v22  ;;  %v772_v21 = vld [vmem:[#allocation5 + $0xcc8] sm:$0xff] }
  0xa5   : > { %1257 = vmatmul.mubr.f32.gmra.mxu1 %v233_v23  ;;  %1395 = vmatprep.subr.mxu0 %v820_v24  ;;  %v390_v23 = vld [vmem:[#allocation5 + $0xd8] sm:$0xff]  ;;  %v771_v24 = vld [vmem:[#allocation5 + $0xcc0] sm:$0xff] }
  0xa6   : > { %1604 = vmatprep.subr.mxu1 %v438_v25  ;;  %1396 = vmatpush1.msra.mxu0 %v819_v26  ;;  %v389_v25 = vld [vmem:[#allocation5 + $0xd0] sm:$0xff]  ;;  %v3885_v26 = vld [vmem:[%s3784_s23 + $0x1b8] sm:$0xff] }
  0xa7   : > { %1605 = vmatpush1.msra.mxu1 %v437_v27  ;;  %1053 = vmatprep.mubr.f32.mxu0 %v3825_v28  ;;  %v276_v27 = vld [vmem:[%s3784_s23 + $0x1c8] sm:$0xff] }
  0xa8   : > { %1262 = vmatprep.mubr.f32.mxu1 %v240_v29  ;;  %1054 = vmatmul.mubr.f32.gmra.mxu0 %v3829_v30  ;;  %v3889_v29 = vld [vmem:[%s3784_s23 + $0x1b0] sm:$0xff] }
  0xa9   : > { %1263 = vmatmul.mubr.f32.gmra.mxu1 %v239_v31  ;;  %1397 = vmatprep.subr.mxu0 %v814_v32  ;;  %v275_v31 = vld [vmem:[%s3784_s23 + $0x1c0] sm:$0xff]  ;;  %v766_v32 = vld [vmem:[#allocation5 + $0xc98] sm:$0xff] }
  0xaa   : > { %1606 = vmatprep.subr.mxu1 %v432_v33  ;;  %1398 = vmatpush1.msra.mxu0 %v813_v34  ;;  %v384_v33 = vld [vmem:[#allocation5 + $0xa8] sm:$0xff]  ;;  %v765_v34 = vld [vmem:[#allocation5 + $0xc90] sm:$0xff] }
  0xab   : > { %1607 = vmatpush1.msra.mxu1 %v431_v35  ;;  %1059 = vmatprep.mubr.f32.mxu0 %v3835_v36  ;;  %v383_v35 = vld [vmem:[#allocation5 + $0xa0] sm:$0xff] }
  0xac   : > { %1268 = vmatprep.mubr.f32.mxu1 %v246_v37  ;;  %1399 = vmatprep.subr.mxu0 %v808_v38  ;;  %v3895_v37 = vld [vmem:[%s3784_s23 + $0x1e8] sm:$0xff]  ;;  %v282_v38 = vld [vmem:[%s3784_s23 + $0x1f8] sm:$0xff] }
  0xad   : > { %1608 = vmatprep.subr.mxu1 %v426_v39  ;;  %1060 = vmatmul.mubr.f32.gmra.mxu0 %v3839_v40  ;;  %v760_v39 = vld [vmem:[#allocation5 + $0xc68] sm:$0xff] }
  0xae   : > { %1269 = vmatmul.mubr.f32.gmra.mxu1 %v245_v41  ;;  %1400 = vmatpush1.msra.mxu0 %v807_v42  ;;  %v378_v41 = vld [vmem:[#allocation5 + $0x78] sm:$0xff]  ;;  %v3899_v42 = vld [vmem:[%s3784_s23 + $0x1e0] sm:$0xff] }
  0xaf   : > { %1609 = vmatpush1.msra.mxu1 %v425_v43  ;;  %1401 = vmatprep.subr.mxu0 %v802_v44  ;;  %v281_v43 = vld [vmem:[%s3784_s23 + $0x1f0] sm:$0xff]  ;;  %v759_v44 = vld [vmem:[#allocation5 + $0xc60] sm:$0xff] }
  0xb0   : > { %1610 = vmatprep.subr.mxu1 %v420_v45  ;;  %1065 = vmatprep.mubr.f32.mxu0 %v3845_v46  ;;  %v377_v45 = vld [vmem:[#allocation5 + $0x70] sm:$0xff] }
  0xb1   : > { %1274 = vmatprep.mubr.f32.mxu1 %v252_v47  ;;  %1402 = vmatpush1.msra.mxu0 %v801_v48  ;;  %v754_v47 = vld [vmem:[#allocation5 + $0xc38] sm:$0xff]  ;;  %v372_v48 = vld [vmem:[#allocation5 + $0x48] sm:$0xff] }
  0xb2   : > { %1611 = vmatpush1.msra.mxu1 %v419_v49  ;;  %1066 = vmatmul.mubr.f32.gmra.mxu0 %v3849_v50  ;;  %v3905_v49 = vld [vmem:[%s3784_s23 + $0x218] sm:$0xff] }
  0xb3   : > { %1275 = vmatmul.mubr.f32.gmra.mxu1 %v251_v51  ;;  %1403 = vmatprep.subr.mxu0 %v796_v52  ;;  %v288_v51 = vld [vmem:[%s3784_s23 + $0x228] sm:$0xff]  ;;  %v753_v52 = vld [vmem:[#allocation5 + $0xc30] sm:$0xff] }
  0xb4   : > { %1612 = vmatprep.subr.mxu1 %v414_v53  ;;  %1404 = vmatpush1.msra.mxu0 %v795_v54  ;;  %v371_v53 = vld [vmem:[#allocation5 + $0x40] sm:$0xff]  ;;  %v3909_v54 = vld [vmem:[%s3784_s23 + $0x210] sm:$0xff] }
  0xb5   : > { %1613 = vmatpush1.msra.mxu1 %v413_v55  ;;  %1071 = vmatprep.mubr.f32.mxu0 %v3855_v56  ;;  %v287_v55 = vld [vmem:[%s3784_s23 + $0x220] sm:$0xff] }
  0xb6   : > { %1280 = vmatprep.mubr.f32.mxu1 %v258_v57  ;;  %1072 = vmatmul.mubr.f32.gmra.mxu0 %v3859_v58  ;;  %v748_v57 = vld [vmem:[#allocation5 + $0xc08] sm:$0xff] }
  0xb7   : > { %1281 = vmatmul.mubr.f32.gmra.mxu1 %v257_v59  ;;  %1405 = vmatprep.subr.mxu0 %v790_v60  ;;  %v366_v59 = vld [vmem:[#allocation5 + $0x18] sm:$0xff]  ;;  %v747_v60 = vld [vmem:[#allocation5 + $0xc00] sm:$0xff] }
  0xb8   : > { %1614 = vmatprep.subr.mxu1 %v408_v61  ;;  %1406 = vmatpush1.msra.mxu0 %v789_v62  ;;  %v365_v61 = vld [vmem:[#allocation5 + $0x10] sm:$0xff]  ;;  %v3915_v62 = vld [vmem:[%s3784_s23 + $0x248] sm:$0xff] }
  0xb9   : > { %1615 = vmatpush1.msra.mxu1 %v407_v0  ;;  %1077 = vmatprep.mubr.f32.mxu0 %v3865_v1  ;;  %v294_v0 = vld [vmem:[%s3784_s23 + $0x258] sm:$0xff] }
  0xba   : > { %1286 = vmatprep.mubr.f32.mxu1 %v264_v3  ;;  %1407 = vmatprep.subr.mxu0 %v784_v4  ;;  %v3919_v3 = vld [vmem:[%s3784_s23 + $0x240] sm:$0xff]  ;;  %v293_v4 = vld [vmem:[%s3784_s23 + $0x250] sm:$0xff] }
  0xbb   : > { %1616 = vmatprep.subr.mxu1 %v402_v5  ;;  %1078 = vmatmul.mubr.f32.gmra.mxu0 %v3869_v6  ;;  %v934_v5 = vld [vmem:[#allocation5 + $0x11d8] sm:$0xff] }
  0xbc   : > { %1287 = vmatmul.mubr.f32.gmra.mxu1 %v263_v7  ;;  %1408 = vmatpush1.msra.mxu0 %v783_v9  ;;  %v552_v7 = vld [vmem:[#allocation5 + $0x5e8] sm:$0xff]  ;;  %v933_v9 = vld [vmem:[#allocation5 + $0x11d0] sm:$0xff] }
  0xbd   : > { %1617 = vmatpush1.msra.mxu1 %v401_v10  ;;  %1409 = vmatprep.subr.mxu0 %v778_v11  ;;  %v551_v10 = vld [vmem:[#allocation5 + $0x5e0] sm:$0xff]  ;;  %v3925_v11 = vld [vmem:[%s3784_s23 + $0x278] sm:$0xff] }
  0xbe   : > { %1618 = vmatprep.subr.mxu1 %v396_v13  ;;  %1083 = vmatprep.mubr.f32.mxu0 %v3875_v14  ;;  %v300_v13 = vld [vmem:[%s3784_s23 + $0x288] sm:$0xff] }
  0xbf   : > { %1292 = vmatprep.mubr.f32.mxu1 %v270_v15  ;;  %1410 = vmatpush1.msra.mxu0 %v777_v16  ;;  %v928_v15 = vld [vmem:[#allocation5 + $0x11a8] sm:$0xff]  ;;  %v546_v16 = vld [vmem:[#allocation5 + $0x5b8] sm:$0xff] }
  0xc0   : > { %1619 = vmatpush1.msra.mxu1 %v395_v17  ;;  %1084 = vmatmul.mubr.f32.gmra.mxu0 %v3879_v19  ;;  %v3929_v17 = vld [vmem:[%s3784_s23 + $0x270] sm:$0xff] }
  0xc1   : > { %1293 = vmatmul.mubr.f32.gmra.mxu1 %v269_v20  ;;  %1411 = vmatprep.subr.mxu0 %v772_v21  ;;  %v299_v20 = vld [vmem:[%s3784_s23 + $0x280] sm:$0xff] }
  0xc2   : > { %1620 = vmatprep.subr.mxu1 %v390_v23  ;;  %1412 = vmatpush1.msra.mxu0 %v771_v24  ;;  %v927_v21 = vld [vmem:[#allocation5 + $0x11a0] sm:$0xff]  ;;  %v545_v23 = vld [vmem:[#allocation5 + $0x5b0] sm:$0xff]  ;;  %v922_v24 = vld [vmem:[#allocation5 + $0x1178] sm:$0xff] }
  0xc3   : > { %1621 = vmatpush1.msra.mxu1 %v389_v25  ;;  %1089 = vmatprep.mubr.f32.mxu0 %v3885_v26  ;;  %v540_v25 = vld [vmem:[#allocation5 + $0x588] sm:$0xff] }
  0xc4   : > { %1298 = vmatprep.mubr.f32.mxu1 %v276_v27  ;;  %1090 = vmatmul.mubr.f32.gmra.mxu0 %v3889_v29  ;;  %v3935_v27 = vld [vmem:[%s3784_s23 + $0x2a8] sm:$0xff] }
  0xc5   : > { %1299 = vmatmul.mubr.f32.gmra.mxu1 %v275_v31  ;;  %1413 = vmatprep.subr.mxu0 %v766_v32  ;;  %v306_v31 = vld [vmem:[%s3784_s23 + $0x2b8] sm:$0xff]  ;;  %v921_v32 = vld [vmem:[#allocation5 + $0x1170] sm:$0xff] }
  0xc6   : > { %1622 = vmatprep.subr.mxu1 %v384_v33  ;;  %1414 = vmatpush1.msra.mxu0 %v765_v34  ;;  %v539_v33 = vld [vmem:[#allocation5 + $0x580] sm:$0xff] }
  0xc7   : > { %1623 = vmatpush1.msra.mxu1 %v383_v35  ;;  %1095 = vmatprep.mubr.f32.mxu0 %v3895_v37  ;;  %v3939_v34 = vld [vmem:[%s3784_s23 + $0x2a0] sm:$0xff]  ;;  %v305_v35 = vld [vmem:[%s3784_s23 + $0x2b0] sm:$0xff] }
  0xc8   : > { %1304 = vmatprep.mubr.f32.mxu1 %v282_v38  ;;  %1415 = vmatprep.subr.mxu0 %v760_v39  ;;  %v916_v38 = vld [vmem:[#allocation5 + $0x1148] sm:$0xff]  ;;  %v534_v39 = vld [vmem:[#allocation5 + $0x558] sm:$0xff] }
  0xc9   : > { %1624 = vmatprep.subr.mxu1 %v378_v41  ;;  %1096 = vmatmul.mubr.f32.gmra.mxu0 %v3899_v42  ;;  %v915_v41 = vld [vmem:[#allocation5 + $0x1140] sm:$0xff] }
  0xca   : > { %1305 = vmatmul.mubr.f32.gmra.mxu1 %v281_v43  ;;  %1416 = vmatpush1.msra.mxu0 %v759_v44  ;;  %v533_v43 = vld [vmem:[#allocation5 + $0x550] sm:$0xff]  ;;  %v3945_v44 = vld [vmem:[%s3784_s23 + $0x2d8] sm:$0xff] }
  0xcb   : > { %1625 = vmatpush1.msra.mxu1 %v377_v45  ;;  %1417 = vmatprep.subr.mxu0 %v754_v47  ;;  %v312_v45 = vld [vmem:[%s3784_s23 + $0x2e8] sm:$0xff]  ;;  %v3949_v47 = vld [vmem:[%s3784_s23 + $0x2d0] sm:$0xff] }
  0xcc   : > { %1626 = vmatprep.subr.mxu1 %v372_v48  ;;  %1101 = vmatprep.mubr.f32.mxu0 %v3905_v49  ;;  %v311_v48 = vld [vmem:[%s3784_s23 + $0x2e0] sm:$0xff] }
  0xcd   : > { %1310 = vmatprep.mubr.f32.mxu1 %v288_v51  ;;  %1418 = vmatpush1.msra.mxu0 %v753_v52  ;;  %v910_v51 = vld [vmem:[#allocation5 + $0x1118] sm:$0xff]  ;;  %v528_v52 = vld [vmem:[#allocation5 + $0x528] sm:$0xff] }
  0xce   : > { %1627 = vmatpush1.msra.mxu1 %v371_v53  ;;  %1102 = vmatmul.mubr.f32.gmra.mxu0 %v3909_v54  ;;  %v909_v53 = vld [vmem:[#allocation5 + $0x1110] sm:$0xff] }
  0xcf   : > { %1311 = vmatmul.mubr.f32.gmra.mxu1 %v287_v55  ;;  %1419 = vmatprep.subr.mxu0 %v748_v57  ;;  %v527_v55 = vld [vmem:[#allocation5 + $0x520] sm:$0xff]  ;;  %v3955_v57 = vld [vmem:[%s3784_s23 + $0x308] sm:$0xff] }
  0xd0   : > { %1628 = vmatprep.subr.mxu1 %v366_v59  ;;  %1420 = vmatpush1.msra.mxu0 %v747_v60  ;;  %v318_v59 = vld [vmem:[%s3784_s23 + $0x318] sm:$0xff]  ;;  %v904_v60 = vld [vmem:[#allocation5 + $0x10e8] sm:$0xff] }
  0xd1   : > { %1629 = vmatpush1.msra.mxu1 %v365_v61  ;;  %1107 = vmatprep.mubr.f32.mxu0 %v3915_v62  ;;  %v522_v61 = vld [vmem:[#allocation5 + $0x4f8] sm:$0xff] }
  0xd2   : > { %1316 = vmatprep.mubr.f32.mxu1 %v294_v0  ;;  %1108 = vmatmul.mubr.f32.gmra.mxu0 %v3919_v3  ;;  %v3959_v0 = vld [vmem:[%s3784_s23 + $0x300] sm:$0xff] }
  0xd3   : > { %1317 = vmatmul.mubr.f32.gmra.mxu1 %v293_v4  ;;  %1421 = vmatprep.subr.mxu0 %v934_v5  ;;  %v317_v4 = vld [vmem:[%s3784_s23 + $0x310] sm:$0xff]  ;;  %v903_v5 = vld [vmem:[#allocation5 + $0x10e0] sm:$0xff] }
  0xd4   : > { %1630 = vmatprep.subr.mxu1 %v552_v7  ;;  %1422 = vmatpush2.msra.mxu0 %v933_v9  ;;  %v521_v7 = vld [vmem:[#allocation5 + $0x4f0] sm:$0xff]  ;;  %v898_v9 = vld [vmem:[#allocation5 + $0x10b8] sm:$0xff] }
  0xd5   : > { %1631 = vmatpush2.msra.mxu1 %v551_v10  ;;  %1113 = vmatprep.mubr.f32.mxu0 %v3925_v11  ;;  %v516_v10 = vld [vmem:[#allocation5 + $0x4c8] sm:$0xff] }
  0xd6   : > { %1322 = vmatprep.mubr.f32.mxu1 %v300_v13  ;;  %1423 = vmatprep.subr.mxu0 %v928_v15  ;;  %v3965_v13 = vld [vmem:[%s3784_s23 + $0x338] sm:$0xff]  ;;  %v324_v15 = vld [vmem:[%s3784_s23 + $0x348] sm:$0xff] }
  0xd7   : > { %1632 = vmatprep.subr.mxu1 %v546_v16  ;;  %1114 = vmatmul.mubr.f32.gmra.mxu0 %v3929_v17  ;;  %v897_v16 = vld [vmem:[#allocation5 + $0x10b0] sm:$0xff] }
  0xd8   : > { %1323 = vmatmul.mubr.f32.gmra.mxu1 %v299_v20  ;;  %1424 = vmatpush2.msra.mxu0 %v927_v21  ;;  %v515_v20 = vld [vmem:[#allocation5 + $0x4c0] sm:$0xff]  ;;  %v3969_v21 = vld [vmem:[%s3784_s23 + $0x330] sm:$0xff] }
  0xd9   : > { %1633 = vmatpush2.msra.mxu1 %v545_v23  ;;  %1425 = vmatprep.subr.mxu0 %v922_v24  ;;  %v323_v23 = vld [vmem:[%s3784_s23 + $0x340] sm:$0xff]  ;;  %v892_v24 = vld [vmem:[#allocation5 + $0x1088] sm:$0xff] }
  0xda   : > { %1634 = vmatprep.subr.mxu1 %v540_v25  ;;  %1119 = vmatprep.mubr.f32.mxu0 %v3935_v27  ;;  %v510_v25 = vld [vmem:[#allocation5 + $0x498] sm:$0xff] }
  0xdb   : > { %1328 = vmatprep.mubr.f32.mxu1 %v306_v31  ;;  %1426 = vmatpush2.msra.mxu0 %v921_v32  ;;  %v891_v31 = vld [vmem:[#allocation5 + $0x1080] sm:$0xff]  ;;  %v509_v32 = vld [vmem:[#allocation5 + $0x490] sm:$0xff] }
  0xdc   : > { %1635 = vmatpush2.msra.mxu1 %v539_v33  ;;  %1120 = vmatmul.mubr.f32.gmra.mxu0 %v3939_v34  ;;  %v3975_v33 = vld [vmem:[%s3784_s23 + $0x368] sm:$0xff] }
  0xdd   : > { %1329 = vmatmul.mubr.f32.gmra.mxu1 %v305_v35  ;;  %1427 = vmatprep.subr.mxu0 %v916_v38  ;;  %v330_v35 = vld [vmem:[%s3784_s23 + $0x378] sm:$0xff]  ;;  %v3979_v38 = vld [vmem:[%s3784_s23 + $0x360] sm:$0xff] }
  0xde   : > { %1636 = vmatprep.subr.mxu1 %v534_v39  ;;  %1428 = vmatpush2.msra.mxu0 %v915_v41  ;;  %v329_v39 = vld [vmem:[%s3784_s23 + $0x370] sm:$0xff]  ;;  %v886_v41 = vld [vmem:[#allocation5 + $0x1058] sm:$0xff] }
  0xdf   : > { %1637 = vmatpush2.msra.mxu1 %v533_v43  ;;  %1125 = vmatprep.mubr.f32.mxu0 %v3945_v44  ;;  %v504_v43 = vld [vmem:[#allocation5 + $0x468] sm:$0xff] }
  0xe0   : > { %1334 = vmatprep.mubr.f32.mxu1 %v312_v45  ;;  %1126 = vmatmul.mubr.f32.gmra.mxu0 %v3949_v47  ;;  %v885_v45 = vld [vmem:[#allocation5 + $0x1050] sm:$0xff] }
  0xe1   : > { %1335 = vmatmul.mubr.f32.gmra.mxu1 %v311_v48  ;;  %1429 = vmatprep.subr.mxu0 %v910_v51  ;;  %v503_v48 = vld [vmem:[#allocation5 + $0x460] sm:$0xff]  ;;  %v3985_v51 = vld [vmem:[%s3784_s23 + $0x398] sm:$0xff] }
  0xe2   : > { %1638 = vmatprep.subr.mxu1 %v528_v52  ;;  %1430 = vmatpush2.msra.mxu0 %v909_v53  ;;  %v336_v52 = vld [vmem:[%s3784_s23 + $0x3a8] sm:$0xff] }
  0xe3   : > { %1639 = vmatpush2.msra.mxu1 %v527_v55  ;;  %1131 = vmatprep.mubr.f32.mxu0 %v3955_v57  ;;  %v880_v53 = vld [vmem:[#allocation5 + $0x1028] sm:$0xff]  ;;  %v498_v55 = vld [vmem:[#allocation5 + $0x438] sm:$0xff] }
  0xe4   : > { %1340 = vmatprep.mubr.f32.mxu1 %v318_v59  ;;  %1431 = vmatprep.subr.mxu0 %v904_v60  ;;  %v3989_v59 = vld [vmem:[%s3784_s23 + $0x390] sm:$0xff]  ;;  %v335_v60 = vld [vmem:[%s3784_s23 + $0x3a0] sm:$0xff] }
  0xe5   : > { %1640 = vmatprep.subr.mxu1 %v522_v61  ;;  %1132 = vmatmul.mubr.f32.gmra.mxu0 %v3959_v0  ;;  %v879_v61 = vld [vmem:[#allocation5 + $0x1020] sm:$0xff] }
  0xe6   : > { %1341 = vmatmul.mubr.f32.gmra.mxu1 %v317_v4  ;;  %1432 = vmatpush2.msra.mxu0 %v903_v5  ;;  %v497_v4 = vld [vmem:[#allocation5 + $0x430] sm:$0xff]  ;;  %v874_v5 = vld [vmem:[#allocation5 + $0xff8] sm:$0xff] }
  0xe7   : > { %1641 = vmatpush2.msra.mxu1 %v521_v7  ;;  %1433 = vmatprep.subr.mxu0 %v898_v9  ;;  %v492_v7 = vld [vmem:[#allocation5 + $0x408] sm:$0xff] }
  0xe8   : > { %1642 = vmatprep.subr.mxu1 %v516_v10  ;;  %1137 = vmatprep.mubr.f32.mxu0 %v3965_v13  ;;  %v3995_v9 = vld [vmem:[%s3784_s23 + $0x3c8] sm:$0xff]  ;;  %v342_v10 = vld [vmem:[%s3784_s23 + $0x3d8] sm:$0xff] }
  0xe9   : > { %1346 = vmatprep.mubr.f32.mxu1 %v324_v15  ;;  %1434 = vmatpush2.msra.mxu0 %v897_v16  ;;  %v873_v15 = vld [vmem:[#allocation5 + $0xff0] sm:$0xff]  ;;  %v491_v16 = vld [vmem:[#allocation5 + $0x400] sm:$0xff] }
  0xea   : > { %1643 = vmatpush2.msra.mxu1 %v515_v20  ;;  %1138 = vmatmul.mubr.f32.gmra.mxu0 %v3969_v21  ;;  %v3999_v20 = vld [vmem:[%s3784_s23 + $0x3c0] sm:$0xff] }
  0xeb   : > { %1347 = vmatmul.mubr.f32.gmra.mxu1 %v323_v23  ;;  %1435 = vmatprep.subr.mxu0 %v892_v24  ;;  %v341_v23 = vld [vmem:[%s3784_s23 + $0x3d0] sm:$0xff]  ;;  %v868_v24 = vld [vmem:[#allocation5 + $0xfc8] sm:$0xff] }
  0xec   : > { %1644 = vmatprep.subr.mxu1 %v510_v25  ;;  %1436 = vmatpush2.msra.mxu0 %v891_v31  ;;  %v486_v25 = vld [vmem:[#allocation5 + $0x3d8] sm:$0xff]  ;;  %v867_v31 = vld [vmem:[#allocation5 + $0xfc0] sm:$0xff] }
  0xed   : > { %1645 = vmatpush2.msra.mxu1 %v509_v32  ;;  %1143 = vmatprep.mubr.f32.mxu0 %v3975_v33  ;;  %v485_v32 = vld [vmem:[#allocation5 + $0x3d0] sm:$0xff] }
  0xee   : > { %1352 = vmatprep.mubr.f32.mxu1 %v330_v35  ;;  %1144 = vmatmul.mubr.f32.gmra.mxu0 %v3979_v38  ;;  %v4005_v35 = vld [vmem:[%s3784_s23 + $0x3f8] sm:$0xff] }
  0xef   : > { %1353 = vmatmul.mubr.f32.gmra.mxu1 %v329_v39  ;;  %1437 = vmatprep.subr.mxu0 %v886_v41  ;;  %v348_v39 = vld [vmem:[%s3784_s23 + $0x408] sm:$0xff]  ;;  %v4009_v41 = vld [vmem:[%s3784_s23 + $0x3f0] sm:$0xff] }
  0xf0   : > { %1646 = vmatprep.subr.mxu1 %v504_v43  ;;  %1438 = vmatpush2.msra.mxu0 %v885_v45  ;;  %v347_v43 = vld [vmem:[%s3784_s23 + $0x400] sm:$0xff]  ;;  %v862_v45 = vld [vmem:[#allocation5 + $0xf98] sm:$0xff] }
  0xf1   : > { %1647 = vmatpush2.msra.mxu1 %v503_v48  ;;  %1149 = vmatprep.mubr.f32.mxu0 %v3985_v51  ;;  %v480_v48 = vld [vmem:[#allocation5 + $0x3a8] sm:$0xff] }
  0xf2   : > { %1358 = vmatprep.mubr.f32.mxu1 %v336_v52  ;;  %1439 = vmatprep.subr.mxu0 %v880_v53  ;;  %v861_v52 = vld [vmem:[#allocation5 + $0xf90] sm:$0xff]  ;;  %v479_v53 = vld [vmem:[#allocation5 + $0x3a0] sm:$0xff] }
  0xf3   : > { %1648 = vmatprep.subr.mxu1 %v498_v55  ;;  %1150 = vmatmul.mubr.f32.gmra.mxu0 %v3989_v59  ;;  %v4015_v55 = vld [vmem:[%s3784_s23 + $0x428] sm:$0xff] }
  0xf4   : > { %1359 = vmatmul.mubr.f32.gmra.mxu1 %v335_v60  ;;  %1440 = vmatpush2.msra.mxu0 %v879_v61  ;;  %v354_v60 = vld [vmem:[%s3784_s23 + $0x438] sm:$0xff]  ;;  %v856_v61 = vld [vmem:[#allocation5 + $0xf68] sm:$0xff] }
  0xf5   : > { %1649 = vmatpush2.msra.mxu1 %v497_v4  ;;  %1441 = vmatprep.subr.mxu0 %v874_v5  ;;  %v474_v4 = vld [vmem:[#allocation5 + $0x378] sm:$0xff]  ;;  %v4019_v5 = vld [vmem:[%s3784_s23 + $0x420] sm:$0xff] }
  0xf6   : > { %1650 = vmatprep.subr.mxu1 %v492_v7  ;;  %1155 = vmatprep.mubr.f32.mxu0 %v3995_v9  ;;  %v353_v7 = vld [vmem:[%s3784_s23 + $0x430] sm:$0xff] }
  0xf7   : > { %1364 = vmatprep.mubr.f32.mxu1 %v342_v10  ;;  %1442 = vmatpush2.msra.mxu0 %v873_v15  ;;  %v855_v10 = vld [vmem:[#allocation5 + $0xf60] sm:$0xff]  ;;  %v473_v15 = vld [vmem:[#allocation5 + $0x370] sm:$0xff] }
  0xf8   : > { %1651 = vmatpush2.msra.mxu1 %v491_v16  ;;  %1156 = vmatmul.mubr.f32.gmra.mxu0 %v3999_v20  ;;  %v850_v16 = vld [vmem:[#allocation5 + $0xf38] sm:$0xff] }
  0xf9   : > { %1365 = vmatmul.mubr.f32.gmra.mxu1 %v341_v23  ;;  %1443 = vmatprep.subr.mxu0 %v868_v24  ;;  %v468_v23 = vld [vmem:[#allocation5 + $0x348] sm:$0xff]  ;;  %v4025_v24 = vld [vmem:[%s3784_s23 + $0x458] sm:$0xff] }
  0xfa   : > { %1652 = vmatprep.subr.mxu1 %v486_v25  ;;  %1444 = vmatpush2.msra.mxu0 %v867_v31  ;;  %v360_v25 = vld [vmem:[%s3784_s23 + $0x468] sm:$0xff]  ;;  %v849_v31 = vld [vmem:[#allocation5 + $0xf30] sm:$0xff] }
  0xfb   : > { %1653 = vmatpush2.msra.mxu1 %v485_v32  ;;  %1161 = vmatprep.mubr.f32.mxu0 %v4005_v35  ;;  %v467_v32 = vld [vmem:[#allocation5 + $0x340] sm:$0xff] }
  0xfc   : > { %1370 = vmatprep.mubr.f32.mxu1 %v348_v39  ;;  %1162 = vmatmul.mubr.f32.gmra.mxu0 %v4009_v41  ;;  %v4029_v39 = vld [vmem:[%s3784_s23 + $0x450] sm:$0xff] }
  0xfd   : > { %1371 = vmatmul.mubr.f32.gmra.mxu1 %v347_v43  ;;  %1445 = vmatprep.subr.mxu0 %v862_v45  ;;  %v359_v43 = vld [vmem:[%s3784_s23 + $0x460] sm:$0xff]  ;;  %v844_v45 = vld [vmem:[#allocation5 + $0xf08] sm:$0xff] }
  0xfe   : > { %1654 = vmatprep.subr.mxu1 %v480_v48  ;;  %1446 = vmatpush2.msra.mxu0 %v861_v52  ;;  %v462_v48 = vld [vmem:[#allocation5 + $0x318] sm:$0xff]  ;;  %v843_v52 = vld [vmem:[#allocation5 + $0xf00] sm:$0xff] }
  0xff   : > { %1655 = vmatpush2.msra.mxu1 %v479_v53  ;;  %1167 = vmatprep.mubr.f32.mxu0 %v4015_v55  ;;  %v461_v53 = vld [vmem:[#allocation5 + $0x310] sm:$0xff] }
 0x100   : > { %1376 = vmatprep.mubr.f32.mxu1 %v354_v60  ;;  %1447 = vmatprep.subr.mxu0 %v856_v61  ;;  %v4035_v60 = vld [vmem:[%s3784_s23 + $0x28] sm:$0xff]  ;;  %v4038_v61 = vld [vmem:[%s3784_s23 + $0x20] sm:$0xff] }
 0x101   : > { %1656 = vmatprep.subr.mxu1 %v474_v4  ;;  %1168 = vmatmul.mubr.f32.gmra.mxu0 %v4019_v5  ;;  %v648_v4 = vld [vmem:[#allocation5 + $0x8e8] sm:$0xff] }
 0x102   : > { %1377 = vmatmul.mubr.f32.gmra.mxu1 %v353_v7  ;;  %1448 = vmatpush2.msra.mxu0 %v855_v10  ;;  %v840_v7 = vld [vmem:[#allocation5 + $0xee8] sm:$0xff]  ;;  %v647_v10 = vld [vmem:[#allocation5 + $0x8e0] sm:$0xff] }
 0x103   : > { %1657 = vmatpush2.msra.mxu1 %v473_v15  ;;  %1449 = vmatprep.subr.mxu0 %v850_v16  ;;  %v839_v15 = vld [vmem:[#allocation5 + $0xee0] sm:$0xff]  ;;  %v4045_v16 = vld [vmem:[%s3784_s23 + $0x58] sm:$0xff] }
 0x104   : > { %1658 = vmatprep.subr.mxu1 %v468_v23  ;;  %1173 = vmatprep.mubr.f32.mxu0 %v4025_v24  ;;  %v642_v23 = vld [vmem:[#allocation5 + $0x8b8] sm:$0xff] }
 0x105   : > { %1382 = vmatprep.mubr.f32.mxu1 %v360_v25  ;;  %1450 = vmatpush2.msra.mxu0 %v849_v31  ;;  %v834_v25 = vld [vmem:[#allocation5 + $0xeb8] sm:$0xff]  ;;  %v4048_v31 = vld [vmem:[%s3784_s23 + $0x50] sm:$0xff] }
 0x106   : > { %1659 = vmatpush2.msra.mxu1 %v467_v32  ;;  %1174 = vmatmul.mubr.f32.gmra.mxu0 %v4029_v39  ;;  %v833_v32 = vld [vmem:[#allocation5 + $0xeb0] sm:$0xff] }
 0x107   : > { %1383 = vmatmul.mubr.f32.gmra.mxu1 %v359_v43  ;;  %1451 = vmatprep.subr.mxu0 %v844_v45  ;;  %v828_v43 = vld [vmem:[#allocation5 + $0xe88] sm:$0xff] }
 0x108   : > { %1660 = vmatprep.subr.mxu1 %v462_v48  ;;  %1452 = vmatpush2.msra.mxu0 %v843_v52  ;;  %v4055_v45 = vld [vmem:[%s3784_s23 + $0x88] sm:$0xff]  ;;  %v635_v48 = vld [vmem:[#allocation5 + $0x880] sm:$0xff] }
 0x109   : > { %1661 = vmatpush2.msra.mxu1 %v461_v53  ;;  %1453 = vmatprep.mubr.f32.mxu0 %v4035_v60  ;;  %v827_v52 = vld [vmem:[#allocation5 + $0xe80] sm:$0xff]  ;;  %v630_v53 = vld [vmem:[#allocation5 + $0x858] sm:$0xff] }
 0x10a   : > { %1662 = vmatprep.mubr.f32.mxu1 %v3795_v63  ;;  %1454 = vmatmul.mubr.f32.vlgmr.msra.gmra.mxu0 %v4038_v61  ;;  %v641_v63 = vld [vmem:[#allocation5 + $0x8b0] sm:$0xff] }
 0x10b   : > { %1663 = vmatmul.mubr.f32.vlgmr.msra.gmra.mxu1 %v3799_v2  ;;  %1807 = vmatprep.subr.mxu0 %v648_v4  ;;  %v636_v2 = vld [vmem:[#allocation5 + $0x888] sm:$0xff]  ;;  %v822_v4 = vld [vmem:[#allocation5 + $0xe58] sm:$0xff] }
 0x10c   : > { %2016 = vmatprep.subr.mxu1 %v840_v7  ;;  %1808 = vmatpush1.msra.mxu0 %v647_v10  ;;  %v821_v7 = vld [vmem:[#allocation5 + $0xe50] sm:$0xff]  ;;  %v4065_v10 = vld [vmem:[%s3784_s23 + $0xb8] sm:$0xff] }
 0x10d   : > { %2017 = vmatpush1.msra.mxu1 %v839_v15  ;;  %1459 = vmatprep.mubr.f32.mxu0 %v4045_v16  ;;  %v4068_v15 = vld [vmem:[%s3784_s23 + $0xb0] sm:$0xff] }
 0x10e   : > { %1668 = vmatprep.mubr.f32.mxu1 %v3805_v8  ;;  %1809 = vmatprep.subr.mxu0 %v642_v23  ;;  %v4058_v8 = vld [vmem:[%s3784_s23 + $0x80] sm:$0xff]  ;;  %v816_v23 = vld [vmem:[#allocation5 + $0xe28] sm:$0xff] }
 0x10f   : > { %2018 = vmatprep.subr.mxu1 %v834_v25  ;;  %1460 = vmatmul.mubr.f32.gmra.mxu0 %v4048_v31  ;;  %v623_v25 = vld [vmem:[#allocation5 + $0x820] sm:$0xff] }
 0x110   : > { %1669 = vmatmul.mubr.f32.gmra.mxu1 %v3809_v12  ;;  %1810 = vmatpush1.msra.mxu0 %v641_v63  ;;  %v629_v12 = vld [vmem:[#allocation5 + $0x850] sm:$0xff]  ;;  %v815_v63 = vld [vmem:[#allocation5 + $0xe20] sm:$0xff] }
 0x111   : > { %2019 = vmatpush1.msra.mxu1 %v833_v32  ;;  %1811 = vmatprep.subr.mxu0 %v636_v2  ;;  %v618_v32 = vld [vmem:[#allocation5 + $0x7f8] sm:$0xff] }
 0x112   : > { %2020 = vmatprep.subr.mxu1 %v828_v43  ;;  %1465 = vmatprep.mubr.f32.mxu0 %v4055_v45  ;;  %v810_v2 = vld [vmem:[#allocation5 + $0xdf8] sm:$0xff]  ;;  %v4078_v43 = vld [vmem:[%s3784_s23 + $0xe0] sm:$0xff] }
 0x113   : > { %1674 = vmatprep.mubr.f32.mxu1 %v3815_v18  ;;  %1812 = vmatpush1.msra.mxu0 %v635_v48  ;;  %v624_v18 = vld [vmem:[#allocation5 + $0x828] sm:$0xff]  ;;  %v809_v48 = vld [vmem:[#allocation5 + $0xdf0] sm:$0xff] }
 0x114   : > { %2021 = vmatpush1.msra.mxu1 %v827_v52  ;;  %1466 = vmatmul.mubr.f32.gmra.mxu0 %v4058_v8  ;;  %v804_v52 = vld [vmem:[#allocation5 + $0xdc8] sm:$0xff] }
 0x115   : > { %1675 = vmatmul.mubr.f32.gmra.mxu1 %v3819_v22  ;;  %1813 = vmatprep.subr.mxu0 %v630_v53  ;;  %v4075_v22 = vld [vmem:[%s3784_s23 + $0xe8] sm:$0xff]  ;;  %v4085_v53 = vld [vmem:[%s3784_s23 + $0x118] sm:$0xff] }
 0x116   : > { %2022 = vmatprep.subr.mxu1 %v822_v4  ;;  %1814 = vmatpush1.msra.mxu0 %v629_v12  ;;  %v611_v4 = vld [vmem:[#allocation5 + $0x7c0] sm:$0xff] }
 0x117   : > { %2023 = vmatpush1.msra.mxu1 %v821_v7  ;;  %1471 = vmatprep.mubr.f32.mxu0 %v4065_v10  ;;  %v803_v12 = vld [vmem:[#allocation5 + $0xdc0] sm:$0xff]  ;;  %v606_v7 = vld [vmem:[#allocation5 + $0x798] sm:$0xff] }
 0x118   : > { %1680 = vmatprep.mubr.f32.mxu1 %v3825_v28  ;;  %1472 = vmatmul.mubr.f32.gmra.mxu0 %v4068_v15  ;;  %v617_v28 = vld [vmem:[#allocation5 + $0x7f0] sm:$0xff] }
 0x119   : > { %1681 = vmatmul.mubr.f32.gmra.mxu1 %v3829_v30  ;;  %1815 = vmatprep.subr.mxu0 %v624_v18  ;;  %v612_v30 = vld [vmem:[#allocation5 + $0x7c8] sm:$0xff]  ;;  %v798_v18 = vld [vmem:[#allocation5 + $0xd98] sm:$0xff] }
 0x11a   : > { %2024 = vmatprep.subr.mxu1 %v816_v23  ;;  %1816 = vmatpush1.msra.mxu0 %v623_v25  ;;  %v797_v23 = vld [vmem:[#allocation5 + $0xd90] sm:$0xff]  ;;  %v4095_v25 = vld [vmem:[%s3784_s23 + $0x148] sm:$0xff] }
 0x11b   : > { %2025 = vmatpush1.msra.mxu1 %v815_v63  ;;  %1477 = vmatprep.mubr.f32.mxu0 %v4075_v22  ;;  %v4098_v63 = vld [vmem:[%s3784_s23 + $0x140] sm:$0xff] }
 0x11c   : > { %1686 = vmatprep.mubr.f32.mxu1 %v3835_v36  ;;  %1817 = vmatprep.subr.mxu0 %v618_v32  ;;  %v4088_v36 = vld [vmem:[%s3784_s23 + $0x110] sm:$0xff]  ;;  %v792_v32 = vld [vmem:[#allocation5 + $0xd68] sm:$0xff] }
 0x11d   : > { %2026 = vmatprep.subr.mxu1 %v810_v2  ;;  %1478 = vmatmul.mubr.f32.gmra.mxu0 %v4078_v43  ;;  %v599_v2 = vld [vmem:[#allocation5 + $0x760] sm:$0xff] }
 0x11e   : > { %1687 = vmatmul.mubr.f32.gmra.mxu1 %v3839_v40  ;;  %1818 = vmatpush1.msra.mxu0 %v617_v28  ;;  %v605_v40 = vld [vmem:[#allocation5 + $0x790] sm:$0xff]  ;;  %v791_v28 = vld [vmem:[#allocation5 + $0xd60] sm:$0xff] }
 0x11f   : > { %2027 = vmatpush1.msra.mxu1 %v809_v48  ;;  %1819 = vmatprep.subr.mxu0 %v612_v30  ;;  %v594_v48 = vld [vmem:[#allocation5 + $0x738] sm:$0xff] }
 0x120   : > { %2028 = vmatprep.subr.mxu1 %v804_v52  ;;  %1483 = vmatprep.mubr.f32.mxu0 %v4085_v53  ;;  %v786_v30 = vld [vmem:[#allocation5 + $0xd38] sm:$0xff]  ;;  %v4108_v52 = vld [vmem:[%s3784_s23 + $0x170] sm:$0xff] }
 0x121   : > { %1692 = vmatprep.mubr.f32.mxu1 %v3845_v46  ;;  %1820 = vmatpush1.msra.mxu0 %v611_v4  ;;  %v600_v46 = vld [vmem:[#allocation5 + $0x768] sm:$0xff]  ;;  %v785_v4 = vld [vmem:[#allocation5 + $0xd30] sm:$0xff] }
 0x122   : > { %2029 = vmatpush1.msra.mxu1 %v803_v12  ;;  %1484 = vmatmul.mubr.f32.gmra.mxu0 %v4088_v36  ;;  %v780_v12 = vld [vmem:[#allocation5 + $0xd08] sm:$0xff] }
 0x123   : > { %1693 = vmatmul.mubr.f32.gmra.mxu1 %v3849_v50  ;;  %1821 = vmatprep.subr.mxu0 %v606_v7  ;;  %v4105_v50 = vld [vmem:[%s3784_s23 + $0x178] sm:$0xff]  ;;  %v4115_v7 = vld [vmem:[%s3784_s23 + $0x1a8] sm:$0xff] }
 0x124   : > { %2030 = vmatprep.subr.mxu1 %v798_v18  ;;  %1822 = vmatpush1.msra.mxu0 %v605_v40  ;;  %v587_v18 = vld [vmem:[#allocation5 + $0x700] sm:$0xff] }
 0x125   : > { %2031 = vmatpush1.msra.mxu1 %v797_v23  ;;  %1489 = vmatprep.mubr.f32.mxu0 %v4095_v25  ;;  %v779_v40 = vld [vmem:[#allocation5 + $0xd00] sm:$0xff]  ;;  %v582_v23 = vld [vmem:[#allocation5 + $0x6d8] sm:$0xff] }
 0x126   : > { %1698 = vmatprep.mubr.f32.mxu1 %v3855_v56  ;;  %1490 = vmatmul.mubr.f32.gmra.mxu0 %v4098_v63  ;;  %v593_v56 = vld [vmem:[#allocation5 + $0x730] sm:$0xff] }
 0x127   : > { %1699 = vmatmul.mubr.f32.gmra.mxu1 %v3859_v58  ;;  %1823 = vmatprep.subr.mxu0 %v600_v46  ;;  %v588_v58 = vld [vmem:[#allocation5 + $0x708] sm:$0xff]  ;;  %v774_v46 = vld [vmem:[#allocation5 + $0xcd8] sm:$0xff] }
 0x128   : > { %2032 = vmatprep.subr.mxu1 %v792_v32  ;;  %1824 = vmatpush1.msra.mxu0 %v599_v2  ;;  %v773_v32 = vld [vmem:[#allocation5 + $0xcd0] sm:$0xff]  ;;  %v4125_v2 = vld [vmem:[%s3784_s23 + $0x1d8] sm:$0xff] }
 0x129   : > { %2033 = vmatpush1.msra.mxu1 %v791_v28  ;;  %1495 = vmatprep.mubr.f32.mxu0 %v4105_v50  ;;  %v4128_v28 = vld [vmem:[%s3784_s23 + $0x1d0] sm:$0xff] }
 0x12a   : > { %1704 = vmatprep.mubr.f32.mxu1 %v3865_v1  ;;  %1825 = vmatprep.subr.mxu0 %v594_v48  ;;  %v4118_v1 = vld [vmem:[%s3784_s23 + $0x1a0] sm:$0xff]  ;;  %v768_v48 = vld [vmem:[#allocation5 + $0xca8] sm:$0xff] }
 0x12b   : > { %2034 = vmatprep.subr.mxu1 %v786_v30  ;;  %1496 = vmatmul.mubr.f32.gmra.mxu0 %v4108_v52  ;;  %v575_v30 = vld [vmem:[#allocation5 + $0x6a0] sm:$0xff] }
 0x12c   : > { %1705 = vmatmul.mubr.f32.gmra.mxu1 %v3869_v6  ;;  %1826 = vmatpush1.msra.mxu0 %v593_v56  ;;  %v581_v6 = vld [vmem:[#allocation5 + $0x6d0] sm:$0xff]  ;;  %v767_v56 = vld [vmem:[#allocation5 + $0xca0] sm:$0xff] }
 0x12d   : > { %2035 = vmatpush1.msra.mxu1 %v785_v4  ;;  %1827 = vmatprep.subr.mxu0 %v588_v58  ;;  %v570_v4 = vld [vmem:[#allocation5 + $0x678] sm:$0xff] }
 0x12e   : > { %2036 = vmatprep.subr.mxu1 %v780_v12  ;;  %1501 = vmatprep.mubr.f32.mxu0 %v4115_v7  ;;  %v762_v58 = vld [vmem:[#allocation5 + $0xc78] sm:$0xff]  ;;  %v4138_v12 = vld [vmem:[%s3784_s23 + $0x200] sm:$0xff] }
 0x12f   : > { %1710 = vmatprep.mubr.f32.mxu1 %v3875_v14  ;;  %1828 = vmatpush1.msra.mxu0 %v587_v18  ;;  %v576_v14 = vld [vmem:[#allocation5 + $0x6a8] sm:$0xff]  ;;  %v761_v18 = vld [vmem:[#allocation5 + $0xc70] sm:$0xff] }
 0x130   : > { %2037 = vmatpush1.msra.mxu1 %v779_v40  ;;  %1502 = vmatmul.mubr.f32.gmra.mxu0 %v4118_v1  ;;  %v756_v40 = vld [vmem:[#allocation5 + $0xc48] sm:$0xff] }
 0x131   : > { %1711 = vmatmul.mubr.f32.gmra.mxu1 %v3879_v19  ;;  %1829 = vmatprep.subr.mxu0 %v582_v23  ;;  %v4135_v19 = vld [vmem:[%s3784_s23 + $0x208] sm:$0xff]  ;;  %v4145_v23 = vld [vmem:[%s3784_s23 + $0x238] sm:$0xff] }
 0x132   : > { %2038 = vmatprep.subr.mxu1 %v774_v46  ;;  %1830 = vmatpush1.msra.mxu0 %v581_v6  ;;  %v563_v46 = vld [vmem:[#allocation5 + $0x640] sm:$0xff] }
 0x133   : > { %2039 = vmatpush1.msra.mxu1 %v773_v32  ;;  %1507 = vmatprep.mubr.f32.mxu0 %v4125_v2  ;;  %v755_v6 = vld [vmem:[#allocation5 + $0xc40] sm:$0xff]  ;;  %v558_v32 = vld [vmem:[#allocation5 + $0x618] sm:$0xff] }
 0x134   : > { %1716 = vmatprep.mubr.f32.mxu1 %v3885_v26  ;;  %1508 = vmatmul.mubr.f32.gmra.mxu0 %v4128_v28  ;;  %v569_v26 = vld [vmem:[#allocation5 + $0x670] sm:$0xff] }
 0x135   : > { %1717 = vmatmul.mubr.f32.gmra.mxu1 %v3889_v29  ;;  %1831 = vmatprep.subr.mxu0 %v576_v14  ;;  %v564_v29 = vld [vmem:[#allocation5 + $0x648] sm:$0xff]  ;;  %v750_v14 = vld [vmem:[#allocation5 + $0xc18] sm:$0xff] }
 0x136   : > { %2040 = vmatprep.subr.mxu1 %v768_v48  ;;  %1832 = vmatpush1.msra.mxu0 %v575_v30  ;;  %v749_v48 = vld [vmem:[#allocation5 + $0xc10] sm:$0xff]  ;;  %v4155_v30 = vld [vmem:[%s3784_s23 + $0x268] sm:$0xff] }
 0x137   : > { %2041 = vmatpush1.msra.mxu1 %v767_v56  ;;  %1513 = vmatprep.mubr.f32.mxu0 %v4135_v19  ;;  %v4158_v56 = vld [vmem:[%s3784_s23 + $0x260] sm:$0xff] }
 0x138   : > { %1722 = vmatprep.mubr.f32.mxu1 %v3895_v37  ;;  %1833 = vmatprep.subr.mxu0 %v570_v4  ;;  %v4148_v37 = vld [vmem:[%s3784_s23 + $0x230] sm:$0xff]  ;;  %v936_v4 = vld [vmem:[#allocation5 + $0x11e8] sm:$0xff] }
 0x139   : > { %2042 = vmatprep.subr.mxu1 %v762_v58  ;;  %1514 = vmatmul.mubr.f32.gmra.mxu0 %v4138_v12  ;;  %v743_v58 = vld [vmem:[#allocation5 + $0xbe0] sm:$0xff] }
 0x13a   : > { %1723 = vmatmul.mubr.f32.gmra.mxu1 %v3899_v42  ;;  %1834 = vmatpush1.msra.mxu0 %v569_v26  ;;  %v557_v42 = vld [vmem:[#allocation5 + $0x610] sm:$0xff]  ;;  %v935_v26 = vld [vmem:[#allocation5 + $0x11e0] sm:$0xff] }
 0x13b   : > { %2043 = vmatpush1.msra.mxu1 %v761_v18  ;;  %1835 = vmatprep.subr.mxu0 %v564_v29  ;;  %v738_v18 = vld [vmem:[#allocation5 + $0xbb8] sm:$0xff] }
 0x13c   : > { %2044 = vmatprep.subr.mxu1 %v756_v40  ;;  %1519 = vmatprep.mubr.f32.mxu0 %v4145_v23  ;;  %v930_v29 = vld [vmem:[#allocation5 + $0x11b8] sm:$0xff]  ;;  %v4168_v40 = vld [vmem:[%s3784_s23 + $0x290] sm:$0xff] }
 0x13d   : > { %1728 = vmatprep.mubr.f32.mxu1 %v3905_v49  ;;  %1836 = vmatpush1.msra.mxu0 %v563_v46  ;;  %v744_v49 = vld [vmem:[#allocation5 + $0xbe8] sm:$0xff]  ;;  %v929_v46 = vld [vmem:[#allocation5 + $0x11b0] sm:$0xff] }
 0x13e   : > { %2045 = vmatpush1.msra.mxu1 %v755_v6  ;;  %1520 = vmatmul.mubr.f32.gmra.mxu0 %v4148_v37  ;;  %v924_v6 = vld [vmem:[#allocation5 + $0x1188] sm:$0xff] }
 0x13f   : > { %1729 = vmatmul.mubr.f32.gmra.mxu1 %v3909_v54  ;;  %1837 = vmatprep.subr.mxu0 %v558_v32  ;;  %v4165_v54 = vld [vmem:[%s3784_s23 + $0x298] sm:$0xff]  ;;  %v4175_v32 = vld [vmem:[%s3784_s23 + $0x2c8] sm:$0xff] }
 0x140   : > { %2046 = vmatprep.subr.mxu1 %v750_v14  ;;  %1838 = vmatpush1.msra.mxu0 %v557_v42  ;;  %v731_v14 = vld [vmem:[#allocation5 + $0xb80] sm:$0xff] }
 0x141   : > { %2047 = vmatpush1.msra.mxu1 %v749_v48  ;;  %1525 = vmatprep.mubr.f32.mxu0 %v4155_v30  ;;  %v923_v42 = vld [vmem:[#allocation5 + $0x1180] sm:$0xff]  ;;  %v726_v48 = vld [vmem:[#allocation5 + $0xb58] sm:$0xff] }
 0x142   : > { %1734 = vmatprep.mubr.f32.mxu1 %v3915_v62  ;;  %1526 = vmatmul.mubr.f32.gmra.mxu0 %v4158_v56  ;;  %v737_v62 = vld [vmem:[#allocation5 + $0xbb0] sm:$0xff] }
 0x143   : > { %1735 = vmatmul.mubr.f32.gmra.mxu1 %v3919_v3  ;;  %1839 = vmatprep.subr.mxu0 %v744_v49  ;;  %v732_v3 = vld [vmem:[#allocation5 + $0xb88] sm:$0xff]  ;;  %v918_v49 = vld [vmem:[#allocation5 + $0x1158] sm:$0xff] }
 0x144   : > { %2048 = vmatprep.subr.mxu1 %v936_v4  ;;  %1840 = vmatpush2.msra.mxu0 %v743_v58  ;;  %v917_v4 = vld [vmem:[#allocation5 + $0x1150] sm:$0xff]  ;;  %v941_v58 = vlaneseq }
 0x145   : > { %2049 = vmatpush2.msra.mxu1 %v935_v26  ;;  %1531 = vmatprep.mubr.f32.mxu0 %v4165_v54  ;;  %v314_v26 = vld [vmem:[%s3784_s23 + $0x2f8] sm:$0xff] }
 0x146   : > { %1740 = vmatprep.mubr.f32.mxu1 %v3925_v11  ;;  %1841 = vmatprep.subr.mxu0 %v738_v18  ;;  %v4178_v11 = vld [vmem:[%s3784_s23 + $0x2c0] sm:$0xff]  ;;  %v313_v18 = vld [vmem:[%s3784_s23 + $0x2f0] sm:$0xff] }
 0x147   : > { %2050 = vmatprep.subr.mxu1 %v930_v29  ;;  %1532 = vmatmul.mubr.f32.gmra.mxu0 %v4168_v40  ;;  %v720_v29 = vld [vmem:[#allocation5 + $0xb28] sm:$0xff] }
 0x148   : > { %1741 = vmatmul.mubr.f32.gmra.mxu1 %v3929_v17  ;;  %1842 = vmatpush2.msra.mxu0 %v737_v62  ;;  %v725_v17 = vld [vmem:[#allocation5 + $0xb50] sm:$0xff]  ;;  %v719_v62 = vld [vmem:[#allocation5 + $0xb20] sm:$0xff] }
 0x149   : > { %2051 = vmatpush2.msra.mxu1 %v929_v46  ;;  %1843 = vmatprep.subr.mxu0 %v732_v3  ;;  %v911_v46 = vld [vmem:[#allocation5 + $0x1120] sm:$0xff]  ;;  %v4187_v3 = vshrl.u32 %v941_v58, 7  ;;  %v326_v58 = vld [vmem:[%s3784_s23 + $0x358] sm:$0xff] }
 0x14a   : > { %2052 = vmatprep.subr.mxu1 %v924_v6  ;;  %1537 = vmatprep.mubr.f32.mxu0 %v4175_v32  ;;  %v714_v6 = vld [vmem:[#allocation5 + $0xaf8] sm:$0xff] }
 0x14b   : > { %1746 = vmatprep.mubr.f32.mxu1 %v3935_v27  ;;  %1844 = vmatpush2.msra.mxu0 %v731_v14  ;;  %v912_v27 = vld [vmem:[#allocation5 + $0x1128] sm:$0xff]  ;;  %5400 = vst [vmem:[#allocation12_spill] sm:$0xff] %v4187_v3  ;;  %v906_v14 = vld [vmem:[#allocation5 + $0x10f8] sm:$0xff] }
 0x14c   : > { %2053 = vmatpush2.msra.mxu1 %v923_v42  ;;  %1538 = vmatmul.mubr.f32.gmra.mxu0 %v4178_v11  ;;  %v319_v42 = vld [vmem:[%s3784_s23 + $0x320] sm:$0xff] }
 0x14d   : > { %1747 = vmatmul.mubr.f32.gmra.mxu1 %v3939_v34  ;;  %1845 = vmatprep.subr.mxu0 %v726_v48  ;;  %v320_v34 = vld [vmem:[%s3784_s23 + $0x328] sm:$0xff]  ;;  %v905_v48 = vld [vmem:[#allocation5 + $0x10f0] sm:$0xff] }
 0x14e   : > { %2054 = vmatprep.subr.mxu1 %v918_v49  ;;  %1846 = vmatpush2.msra.mxu0 %v725_v17  ;;  %v943_v49 = vsub.s32 0, %v4187_v3  ;;  %v900_v17 = vld [vmem:[#allocation5 + $0x10c8] sm:$0xff] }
 0x14f   : > { %2055 = vmatpush2.msra.mxu1 %v917_v4  ;;  %1543 = vmatprep.mubr.f32.mxu0 %v314_v26  ;;  %v4194_v4 = vld [vmem:[#allocation7] sm:$0x3f] }
 0x150   : > { %1752 = vmatprep.mubr.f32.mxu1 %v3945_v44  ;;  %1544 = vmatmul.mubr.f32.gmra.mxu0 %v313_v18  ;;  %v713_v44 = vld [vmem:[#allocation5 + $0xaf0] sm:$0xff]  ;;  %v707_v26 = vld [vmem:[#allocation5 + $0xac0] sm:$0xff] }
 0x151   : > { %1753 = vmatmul.mubr.f32.gmra.mxu1 %v3949_v47  ;;  %1847 = vmatprep.subr.mxu0 %v720_v29  ;;  %v708_v47 = vld [vmem:[#allocation5 + $0xac8] sm:$0xff]  ;;  %v325_v18 = vld [vmem:[%s3784_s23 + $0x350] sm:$0xff]  ;;  %v4200_v29 = vrot.slane %v4194_v4, %v943_v49 }
 0x152   : > { %2056 = vmatprep.subr.mxu1 %v912_v27  ;;  %1848 = vmatpush2.msra.mxu0 %v719_v62  ;;  %v702_v27 = vld [vmem:[#allocation5 + $0xa98] sm:$0xff] }
 0x153   : > { %2057 = vmatpush2.msra.mxu1 %v911_v46  ;;  %1549 = vmatprep.mubr.f32.mxu0 %v320_v34  ;;  %v894_v62 = vld [vmem:[#allocation5 + $0x1098] sm:$0xff]  ;;  %v893_v46 = vld [vmem:[#allocation5 + $0x1090] sm:$0xff]  ;;  %v332_v34 = vld [vmem:[%s3784_s23 + $0x388] sm:$0xff] }
 0x154   : > { %1758 = vmatprep.mubr.f32.mxu1 %v3955_v57  ;;  %1849 = vmatprep.subr.mxu0 %v714_v6  ;;  %v899_v57 = vld [vmem:[#allocation5 + $0x10c0] sm:$0xff] }
 0x155   : > { %2058 = vmatprep.subr.mxu1 %v906_v14  ;;  %1550 = vmatmul.mubr.f32.gmra.mxu0 %v319_v42  ;;  %v331_v42 = vld [vmem:[%s3784_s23 + $0x380] sm:$0xff] }
 0x156   : > { %1759 = vmatmul.mubr.f32.gmra.mxu1 %v3959_v0  ;;  %1850 = vmatpush2.msra.mxu0 %v713_v44  ;;  %v701_v0 = vld [vmem:[#allocation5 + $0xa90] sm:$0xff] }
 0x157   : > { %2059 = vmatpush2.msra.mxu1 %v905_v48  ;;  %1851 = vmatprep.subr.mxu0 %v708_v47  ;;  %v888_v48 = vld [vmem:[#allocation5 + $0x1068] sm:$0xff] }
 0x158   : > { %2060 = vmatprep.subr.mxu1 %v900_v17  ;;  %1555 = vmatprep.mubr.f32.mxu0 %v326_v58  ;;  %v887_v17 = vld [vmem:[#allocation5 + $0x1060] sm:$0xff] }
 0x159   : > { %1764 = vmatprep.mubr.f32.mxu1 %v3965_v13  ;;  %1852 = vmatpush2.msra.mxu0 %v707_v26  ;;  %v696_v13 = vld [vmem:[#allocation5 + $0xa68] sm:$0xff]  ;;  %v338_v26 = vld [vmem:[%s3784_s23 + $0x3b8] sm:$0xff] }
 0x15a   : > { %2061 = vmatpush2.msra.mxu1 %v899_v57  ;;  %1556 = vmatmul.mubr.f32.gmra.mxu0 %v325_v18  ;;  %v1037_v6 = vpop.f32.mrf.mxu0  ;;  %v690_v57 = vld [vmem:[#allocation5 + $0xa38] sm:$0xff] }
 0x15b   : > { %1765 = vmatmul.mubr.f32.gmra.mxu1 %v3969_v21  ;;  %v1246_v14 = vpop.f32.mrf.mxu1  ;;  %1853 = vmatprep.subr.mxu0 %v702_v27  ;;  %v1038_v44 = vadd.f32 %v1037_v6, %v4200_v29  ;;  %v695_v21 = vld [vmem:[#allocation5 + $0xa60] sm:$0xff]  ;;  %v882_v18 = vld [vmem:[#allocation5 + $0x1038] sm:$0xff] }
 0x15c   : > { %2062 = vmatprep.subr.mxu1 %v894_v62  ;;  %1854 = vmatpush2.msra.mxu0 %v701_v0  ;;  %v4207_v49 = vpop.f32.mrf.mxu0  ;;  %v337_v0 = vld [vmem:[%s3784_s23 + $0x3b0] sm:$0xff] }
 0x15d   : > { %2063 = vmatpush2.msra.mxu1 %v893_v46  ;;  %v4209_v47 = vpop.f32.mrf.mxu1  ;;  %1561 = vmatprep.mubr.f32.mxu0 %v332_v34  ;;  %v4212_v58 = vadd.f32 %v1246_v14, %v1038_v44  ;;  %v689_v46 = vld [vmem:[#allocation5 + $0xa30] sm:$0xff]  ;;  %v684_v14 = vld [vmem:[#allocation5 + $0xa08] sm:$0xff] }
 0x15e   : > { %1770 = vmatprep.mubr.f32.mxu1 %v3975_v33  ;;  %1562 = vmatmul.mubr.f32.gmra.mxu0 %v331_v42  ;;  %v881_v34 = vld [vmem:[#allocation5 + $0x1030] sm:$0xff]  ;;  %v876_v42 = vld [vmem:[#allocation5 + $0x1008] sm:$0xff] }
 0x15f   : > { %1771 = vmatmul.mubr.f32.gmra.mxu1 %v3979_v38  ;;  %1855 = vmatprep.subr.mxu0 %v696_v13  ;;  %v1043_v27 = vpop.f32.mrf.mxu0  ;;  %v344_v13 = vld [vmem:[%s3784_s23 + $0x3e8] sm:$0xff] }
 0x160   : > { %2064 = vmatprep.subr.mxu1 %v888_v48  ;;  %v1252_v62 = vpop.f32.mrf.mxu1  ;;  %1856 = vmatpush2.msra.mxu0 %v695_v21  ;;  %v1044_v33 = vadd.f32 %v1043_v27, %v4200_v29  ;;  %v875_v48 = vld [vmem:[#allocation5 + $0x1000] sm:$0xff]  ;;  %v870_v27 = vld [vmem:[#allocation5 + $0xfd8] sm:$0xff] }
 0x161   : > { %2065 = vmatpush2.msra.mxu1 %v887_v17  ;;  %1567 = vmatprep.mubr.f32.mxu0 %v338_v26  ;;  %v4219_v6 = vpop.f32.mrf.mxu0  ;;  %v343_v26 = vld [vmem:[%s3784_s23 + $0x3e0] sm:$0xff] }
 0x162   : > { %1776 = vmatprep.mubr.f32.mxu1 %v3985_v51  ;;  %v4221_v38 = vpop.f32.mrf.mxu1  ;;  %1857 = vmatprep.subr.mxu0 %v690_v57  ;;  %v4223_v44 = vadd.f32 %v1252_v62, %v1044_v33  ;;  %v683_v51 = vld [vmem:[#allocation5 + $0xa00] sm:$0xff]  ;;  %v869_v33 = vld [vmem:[#allocation5 + $0xfd0] sm:$0xff] }
 0x163   : > { %2066 = vmatprep.subr.mxu1 %v882_v18  ;;  %1568 = vmatmul.mubr.f32.gmra.mxu0 %v337_v0  ;;  %v678_v18 = vld [vmem:[#allocation5 + $0x9d8] sm:$0xff]  ;;  %v677_v0 = vld [vmem:[#allocation5 + $0x9d0] sm:$0xff] }
 0x164   : > { %1777 = vmatmul.mubr.f32.gmra.mxu1 %v3989_v59  ;;  %1858 = vmatpush2.msra.mxu0 %v689_v46  ;;  %v1049_v21 = vpop.f32.mrf.mxu0 }
 0x165   : > { %2067 = vmatpush2.msra.mxu1 %v881_v34  ;;  %v1258_v17 = vpop.f32.mrf.mxu1  ;;  %1859 = vmatprep.subr.mxu0 %v684_v14  ;;  %v1050_v57 = vadd.f32 %v1049_v21, %v4200_v29  ;;  %v350_v34 = vld [vmem:[%s3784_s23 + $0x418] sm:$0xff] }
 0x166   : > { %2068 = vmatprep.subr.mxu1 %v876_v42  ;;  %1573 = vmatprep.mubr.f32.mxu0 %v344_v13  ;;  %v4230_v59 = vpop.f32.mrf.mxu0 }
 0x167   : > { %1782 = vmatprep.mubr.f32.mxu1 %v3995_v9  ;;  %v4232_v62 = vpop.f32.mrf.mxu1  ;;  %1860 = vmatpush2.msra.mxu0 %v683_v51  ;;  %v4234_v46 = vadd.f32 %v1258_v17, %v1050_v57  ;;  %v349_v9 = vld [vmem:[%s3784_s23 + $0x410] sm:$0xff]  ;;  %v672_v51 = vld [vmem:[#allocation5 + $0x9a8] sm:$0xff] }
 0x168   : > { %2069 = vmatpush2.msra.mxu1 %v875_v48  ;;  %1574 = vmatmul.mubr.f32.gmra.mxu0 %v343_v26  ;;  %v1055_v14 = vpop.f32.mrf.mxu0  ;;  %v864_v48 = vld [vmem:[#allocation5 + $0xfa8] sm:$0xff]  ;;  %v863_v26 = vld [vmem:[#allocation5 + $0xfa0] sm:$0xff] }
 0x169   : > { %1783 = vmatmul.mubr.f32.gmra.mxu1 %v3999_v20  ;;  %v1264_v42 = vpop.f32.mrf.mxu1  ;;  %1861 = vmatprep.subr.mxu0 %v678_v18  ;;  %v1056_v13 = vadd.f32 %v1055_v14, %v4200_v29  ;;  %v671_v20 = vld [vmem:[#allocation5 + $0x9a0] sm:$0xff]  ;;  %v356_v18 = vld [vmem:[%s3784_s23 + $0x448] sm:$0xff] }
 0x16a   : > { %2070 = vmatprep.subr.mxu1 %v870_v27  ;;  %1862 = vmatpush2.msra.mxu0 %v677_v0  ;;  %v4240_v21 = vpop.f32.mrf.mxu0  ;;  %v666_v27 = vld [vmem:[#allocation5 + $0x978] sm:$0xff] }
 0x16b   : > { %2071 = vmatpush2.msra.mxu1 %v869_v33  ;;  %v4242_v17 = vpop.f32.mrf.mxu1  ;;  %1579 = vmatprep.mubr.f32.mxu0 %v350_v34  ;;  %v4245_v57 = vadd.f32 %v1264_v42, %v1056_v13  ;;  %v858_v0 = vld [vmem:[#allocation5 + $0xf78] sm:$0xff]  ;;  %v355_v34 = vld [vmem:[%s3784_s23 + $0x440] sm:$0xff]  ;;  %v665_v42 = vld [vmem:[#allocation5 + $0x970] sm:$0xff] }
 0x16c   : > { %1788 = vmatprep.mubr.f32.mxu1 %v4005_v35  ;;  %1580 = vmatmul.mubr.f32.gmra.mxu0 %v349_v9  ;;  %v857_v9 = vld [vmem:[#allocation5 + $0xf70] sm:$0xff] }
 0x16d   : > { %5401 = vst [vmem:[#allocation13_spill] sm:$0xff] %v4245_v57  ;;  %1789 = vmatmul.mubr.f32.gmra.mxu1 %v4009_v41  ;;  %1863 = vmatprep.subr.mxu0 %v672_v51  ;;  %v1061_v33 = vpop.f32.mrf.mxu0  ;;  %v660_v51 = vld [vmem:[#allocation5 + $0x948] sm:$0xff] }
 0x16e   : > { %2072 = vmatprep.subr.mxu1 %v864_v48  ;;  %v1270_v14 = vpop.f32.mrf.mxu1  ;;  %1864 = vmatpush2.msra.mxu0 %v671_v20  ;;  %v1062_v35 = vadd.f32 %v1061_v33, %v4200_v29  ;;  %v852_v48 = vld [vmem:[#allocation5 + $0xf48] sm:$0xff] }
 0x16f   : > { %2073 = vmatpush2.msra.mxu1 %v863_v26  ;;  %1585 = vmatprep.mubr.f32.mxu0 %v356_v18  ;;  %v4252_v13 = vpop.f32.mrf.mxu0  ;;  %v362_v26 = vld [vmem:[%s3784_s23 + $0x478] sm:$0xff]  ;;  %v851_v18 = vld [vmem:[#allocation5 + $0xf40] sm:$0xff] }
 0x170   : > { %1794 = vmatprep.mubr.f32.mxu1 %v4015_v55  ;;  %v4254_v41 = vpop.f32.mrf.mxu1  ;;  %1865 = vmatprep.subr.mxu0 %v666_v27  ;;  %v4256_v20 = vadd.f32 %v1270_v14, %v1062_v35  ;;  %v659_v55 = vld [vmem:[#allocation5 + $0x940] sm:$0xff]  ;;  %v846_v14 = vld [vmem:[#allocation5 + $0xf18] sm:$0xff]  ;;  %v653_v35 = vld [vmem:[#allocation5 + $0x910] sm:$0xff] }
 0x171   : > { %5402 = vst [vmem:[#allocation14_spill] sm:$0xff] %v4254_v41  ;;  %2074 = vmatprep.subr.mxu1 %v858_v0  ;;  %1586 = vmatmul.mubr.f32.gmra.mxu0 %v355_v34  ;;  %v361_v41 = vld [vmem:[%s3784_s23 + $0x470] sm:$0xff]  ;;  %v654_v0 = vld [vmem:[#allocation5 + $0x918] sm:$0xff] }
 0x172   : > { %1795 = vmatmul.mubr.f32.gmra.mxu1 %v4019_v5  ;;  %1866 = vmatpush2.msra.mxu0 %v665_v42  ;;  %v1067_v33 = vpop.f32.mrf.mxu0  ;;  %v845_v42 = vld [vmem:[#allocation5 + $0xf10] sm:$0xff] }
 0x173   : > { %2075 = vmatpush2.msra.mxu1 %v857_v9  ;;  %v1276_v57 = vpop.f32.mrf.mxu1  ;;  %1867 = vmatprep.subr.mxu0 %v660_v51  ;;  %v1068_v27 = vadd.f32 %v1067_v33, %v4200_v29 }
 0x174   : > { %2076 = vmatprep.subr.mxu1 %v852_v48  ;;  %1591 = vmatprep.mubr.f32.mxu0 %v362_v26  ;;  %v4263_v34 = vpop.f32.mrf.mxu0  ;;  %v458_v26 = vld [vmem:[#allocation5 + $0x2f8] sm:$0xff] }
 0x175   : > { %1800 = vmatprep.mubr.f32.mxu1 %v4025_v24  ;;  %v4265_v5 = vpop.f32.mrf.mxu1  ;;  %1868 = vmatpush2.msra.mxu0 %v659_v55  ;;  %v4267_v9 = vadd.f32 %v1276_v57, %v1068_v27  ;;  %v650_v55 = vld [vmem:[#allocation5 + $0x8f8] sm:$0xff] }
 0x176   : > { %2077 = vmatpush2.msra.mxu1 %v851_v18  ;;  %1592 = vmatmul.mubr.f32.gmra.mxu0 %v361_v41  ;;  %v1073_v51 = vpop.f32.mrf.mxu0  ;;  %v3256_v57 = vld [vmem:[%s3784_s23 + $0x18] sm:$0xff]  ;;  %v649_v41 = vld [vmem:[#allocation5 + $0x8f0] sm:$0xff] }
 0x177   : > { %1801 = vmatmul.mubr.f32.gmra.mxu1 %v4029_v39  ;;  %v1282_v48 = vpop.f32.mrf.mxu1  ;;  %1869 = vmatprep.subr.mxu0 %v654_v0  ;;  %v1074_v24 = vadd.f32 %v1073_v51, %v4200_v29  ;;  %v457_v39 = vld [vmem:[#allocation5 + $0x2f0] sm:$0xff] }
 0x178   : > { %2078 = vmatprep.subr.mxu1 %v846_v14  ;;  %1870 = vmatpush2.msra.mxu0 %v653_v35  ;;  %v4271_v18 = vpop.f32.mrf.mxu0  ;;  %v3257_v0 = vld [vmem:[%s3784_s23 + $0x10] sm:$0xff]  ;;  %v452_v14 = vld [vmem:[#allocation5 + $0x2c8] sm:$0xff] }
 0x179   : > { %2079 = vmatpush2.msra.mxu1 %v845_v42  ;;  %v4273_v33 = vpop.f32.mrf.mxu1  ;;  %1871 = vmatprep.mubr.f32.mxu0 %v3256_v57  ;;  %v4277_v27 = vadd.f32 %v1282_v48, %v1074_v24  ;;  %v644_v35 = vld [vmem:[#allocation5 + $0x8c8] sm:$0xff]  ;;  %v451_v48 = vld [vmem:[#allocation5 + $0x2c0] sm:$0xff] }
 0x17a   : > { %2080 = vmatprep.mubr.f32.mxu1 %v4035_v60  ;;  %1872 = vmatmul.mubr.f32.vlgmr.msra.gmra.mxu0 %v3257_v0  ;;  %v3258_v57 = vld [vmem:[%s3784_s23 + $0x48] sm:$0xff]  ;;  %v643_v24 = vld [vmem:[#allocation5 + $0x8c0] sm:$0xff] }
 0x17b   : > { %5403 = vst [vmem:[#allocation15_spill] sm:$0xff] %v4277_v27  ;;  %2081 = vmatmul.mubr.f32.vlgmr.msra.gmra.mxu1 %v4038_v61  ;;  %2225 = vmatprep.subr.mxu0 %v458_v26  ;;  %v1079_v42 = vpop.f32.mrf.mxu0  ;;  %v446_v26 = vld [vmem:[#allocation5 + $0x298] sm:$0xff] }
 0x17c   : > { %2434 = vmatprep.subr.mxu1 %v650_v55  ;;  %v1288_v51 = vpop.f32.mrf.mxu1  ;;  %2226 = vmatpush1.msra.mxu0 %v457_v39  ;;  %v1080_v60 = vadd.f32 %v1079_v42, %v4200_v29  ;;  %v638_v55 = vld [vmem:[#allocation5 + $0x898] sm:$0xff]  ;;  %v3259_v39 = vld [vmem:[%s3784_s23 + $0x40] sm:$0xff] }
 0x17d   : > { %2435 = vmatpush1.msra.mxu1 %v649_v41  ;;  %1877 = vmatprep.mubr.f32.mxu0 %v3258_v57  ;;  %v4284_v0 = vpop.f32.mrf.mxu0  ;;  %v637_v41 = vld [vmem:[#allocation5 + $0x890] sm:$0xff] }
 0x17e   : > { %2086 = vmatprep.mubr.f32.mxu1 %v4045_v16  ;;  %v4286_v61 = vpop.f32.mrf.mxu1  ;;  %2227 = vmatprep.subr.mxu0 %v452_v14  ;;  %v4288_v27 = vadd.f32 %v1288_v51, %v1080_v60  ;;  %v445_v16 = vld [vmem:[#allocation5 + $0x290] sm:$0xff]  ;;  %v440_v51 = vld [vmem:[#allocation5 + $0x268] sm:$0xff] }
 0x17f   : > { %2436 = vmatprep.subr.mxu1 %v644_v35  ;;  %1878 = vmatmul.mubr.f32.gmra.mxu0 %v3259_v39  ;;  %v3260_v35 = vld [vmem:[%s3784_s23 + $0x78] sm:$0xff]  ;;  %v632_v60 = vld [vmem:[#allocation5 + $0x868] sm:$0xff] }
 0x180   : > { %5404 = vst [vmem:[#allocation16_spill] sm:$0xff] %v4288_v27  ;;  %2087 = vmatmul.mubr.f32.gmra.mxu1 %v4048_v31  ;;  %2228 = vmatpush1.msra.mxu0 %v451_v48  ;;  %v1085_v42 = vpop.f32.mrf.mxu0  ;;  %v439_v48 = vld [vmem:[#allocation5 + $0x260] sm:$0xff] }
 0x181   : > { %2437 = vmatpush1.msra.mxu1 %v643_v24  ;;  %v1294_v57 = vpop.f32.mrf.mxu1  ;;  %2229 = vmatprep.subr.mxu0 %v446_v26  ;;  %v1086_v14 = vadd.f32 %v1085_v42, %v4200_v29  ;;  %v631_v24 = vld [vmem:[#allocation5 + $0x860] sm:$0xff]  ;;  %v3261_v26 = vld [vmem:[%s3784_s23 + $0x70] sm:$0xff] }
 0x182   : > { %2438 = vmatprep.subr.mxu1 %v638_v55  ;;  %1883 = vmatprep.mubr.f32.mxu0 %v3260_v35  ;;  %v4295_v39 = vpop.f32.mrf.mxu0 }
 0x183   : > { %2092 = vmatprep.mubr.f32.mxu1 %v4055_v45  ;;  %v4297_v31 = vpop.f32.mrf.mxu1  ;;  %2230 = vmatpush1.msra.mxu0 %v445_v16  ;;  %v4299_v27 = vadd.f32 %v1294_v57, %v1086_v14  ;;  %v434_v16 = vld [vmem:[#allocation5 + $0x238] sm:$0xff]  ;;  %v3262_v57 = vld [vmem:[%s3784_s23 + $0xa8] sm:$0xff]  ;;  %v625_v14 = vld [vmem:[#allocation5 + $0x830] sm:$0xff] }
 0x184   : > { %5405 = vst [vmem:[#allocation17_spill] sm:$0xff] %v4297_v31  ;;  %2439 = vmatpush1.msra.mxu1 %v637_v41  ;;  %1884 = vmatmul.mubr.f32.gmra.mxu0 %v3261_v26  ;;  %v1091_v55 = vpop.f32.mrf.mxu0  ;;  %v626_v41 = vld [vmem:[#allocation5 + $0x838] sm:$0xff] }
 0x185   : > { %2093 = vmatmul.mubr.f32.gmra.mxu1 %v4058_v8  ;;  %v1300_v42 = vpop.f32.mrf.mxu1  ;;  %2231 = vmatprep.subr.mxu0 %v440_v51  ;;  %v1092_v45 = vadd.f32 %v1091_v55, %v4200_v29  ;;  %v433_v8 = vld [vmem:[#allocation5 + $0x230] sm:$0xff]  ;;  %v3263_v51 = vld [vmem:[%s3784_s23 + $0xa0] sm:$0xff] }
 0x186   : > { %2440 = vmatprep.subr.mxu1 %v632_v60  ;;  %2232 = vmatpush1.msra.mxu0 %v439_v48  ;;  %v4304_v35 = vpop.f32.mrf.mxu0  ;;  %v428_v60 = vld [vmem:[#allocation5 + $0x208] sm:$0xff] }
 0x187   : > { %2441 = vmatpush1.msra.mxu1 %v631_v24  ;;  %v4306_v31 = vpop.f32.mrf.mxu1  ;;  %1889 = vmatprep.mubr.f32.mxu0 %v3262_v57  ;;  %v4310_v26 = vadd.f32 %v1300_v42, %v1092_v45  ;;  %v620_v48 = vld [vmem:[#allocation5 + $0x808] sm:$0xff]  ;;  %v3264_v57 = vld [vmem:[%s3784_s23 + $0xd8] sm:$0xff]  ;;  %v427_v42 = vld [vmem:[#allocation5 + $0x200] sm:$0xff] }
 0x188   : > { %2098 = vmatprep.mubr.f32.mxu1 %v4065_v10  ;;  %1890 = vmatmul.mubr.f32.gmra.mxu0 %v3263_v51  ;;  %v619_v45 = vld [vmem:[#allocation5 + $0x800] sm:$0xff] }
 0x189   : > { %5406 = vst [vmem:[#allocation18_spill] sm:$0xff] %v4310_v26  ;;  %2099 = vmatmul.mubr.f32.gmra.mxu1 %v4068_v15  ;;  %2233 = vmatprep.subr.mxu0 %v434_v16  ;;  %v1097_v24 = vpop.f32.mrf.mxu0  ;;  %v422_v16 = vld [vmem:[#allocation5 + $0x1d8] sm:$0xff] }
 0x18a   : > { %2442 = vmatprep.subr.mxu1 %v626_v41  ;;  %v1306_v55 = vpop.f32.mrf.mxu1  ;;  %2234 = vmatpush1.msra.mxu0 %v433_v8  ;;  %v1098_v10 = vadd.f32 %v1097_v24, %v4200_v29  ;;  %v614_v41 = vld [vmem:[#allocation5 + $0x7d8] sm:$0xff]  ;;  %v3265_v8 = vld [vmem:[%s3784_s23 + $0xd0] sm:$0xff] }
 0x18b   : > { %2443 = vmatpush1.msra.mxu1 %v625_v14  ;;  %1895 = vmatprep.mubr.f32.mxu0 %v3264_v57  ;;  %v4317_v51 = vpop.f32.mrf.mxu0  ;;  %v613_v14 = vld [vmem:[#allocation5 + $0x7d0] sm:$0xff] }
 0x18c   : > { %2104 = vmatprep.mubr.f32.mxu1 %v4075_v22  ;;  %v4319_v15 = vpop.f32.mrf.mxu1  ;;  %2235 = vmatprep.subr.mxu0 %v428_v60  ;;  %v4321_v26 = vadd.f32 %v1306_v55, %v1098_v10  ;;  %v421_v22 = vld [vmem:[#allocation5 + $0x1d0] sm:$0xff]  ;;  %v416_v55 = vld [vmem:[#allocation5 + $0x1a8] sm:$0xff] }
 0x18d   : > { %2444 = vmatprep.subr.mxu1 %v620_v48  ;;  %1896 = vmatmul.mubr.f32.gmra.mxu0 %v3265_v8  ;;  %v3266_v48 = vld [vmem:[%s3784_s23 + $0x108] sm:$0xff] }
 0x18e   : > { %5407 = vst [vmem:[#allocation19_spill] sm:$0xff] %v4321_v26  ;;  %2105 = vmatmul.mubr.f32.gmra.mxu1 %v4078_v43  ;;  %2236 = vmatpush1.msra.mxu0 %v427_v42  ;;  %v1103_v24 = vpop.f32.mrf.mxu0  ;;  %v608_v10 = vld [vmem:[#allocation5 + $0x7a8] sm:$0xff]  ;;  %v415_v42 = vld [vmem:[#allocation5 + $0x1a0] sm:$0xff] }
 0x18f   : > { %2445 = vmatpush1.msra.mxu1 %v619_v45  ;;  %v1312_v57 = vpop.f32.mrf.mxu1  ;;  %2237 = vmatprep.subr.mxu0 %v422_v16  ;;  %v1104_v60 = vadd.f32 %v1103_v24, %v4200_v29  ;;  %v607_v45 = vld [vmem:[#allocation5 + $0x7a0] sm:$0xff] }
 0x190   : > { %2446 = vmatprep.subr.mxu1 %v614_v41  ;;  %1901 = vmatprep.mubr.f32.mxu0 %v3266_v48  ;;  %v4328_v8 = vpop.f32.mrf.mxu0  ;;  %v3267_v16 = vld [vmem:[%s3784_s23 + $0x100] sm:$0xff] }
 0x191   : > { %2110 = vmatprep.mubr.f32.mxu1 %v4085_v53  ;;  %v4330_v43 = vpop.f32.mrf.mxu1  ;;  %2238 = vmatpush1.msra.mxu0 %v421_v22  ;;  %v4332_v26 = vadd.f32 %v1312_v57, %v1104_v60  ;;  %v410_v22 = vld [vmem:[#allocation5 + $0x178] sm:$0xff]  ;;  %v601_v60 = vld [vmem:[#allocation5 + $0x770] sm:$0xff] }
 0x192   : > { %5408 = vst [vmem:[#allocation20_spill] sm:$0xff] %v4330_v43  ;;  %2447 = vmatpush1.msra.mxu1 %v613_v14  ;;  %1902 = vmatmul.mubr.f32.gmra.mxu0 %v3267_v16  ;;  %v1109_v41 = vpop.f32.mrf.mxu0  ;;  %v602_v14 = vld [vmem:[#allocation5 + $0x778] sm:$0xff] }
 0x193   : > { %2111 = vmatmul.mubr.f32.gmra.mxu1 %v4088_v36  ;;  %v1318_v24 = vpop.f32.mrf.mxu1  ;;  %2239 = vmatprep.subr.mxu0 %v416_v55  ;;  %v1110_v53 = vadd.f32 %v1109_v41, %v4200_v29  ;;  %v3268_v57 = vld [vmem:[%s3784_s23 + $0x138] sm:$0xff]  ;;  %v409_v36 = vld [vmem:[#allocation5 + $0x170] sm:$0xff] }
 0x194   : > { %2448 = vmatprep.subr.mxu1 %v608_v10  ;;  %2240 = vmatpush1.msra.mxu0 %v415_v42  ;;  %v4337_v48 = vpop.f32.mrf.mxu0  ;;  %v3269_v55 = vld [vmem:[%s3784_s23 + $0x130] sm:$0xff]  ;;  %v404_v10 = vld [vmem:[#allocation5 + $0x148] sm:$0xff] }
 0x195   : > { %2449 = vmatpush1.msra.mxu1 %v607_v45  ;;  %v4339_v43 = vpop.f32.mrf.mxu1  ;;  %1907 = vmatprep.mubr.f32.mxu0 %v3268_v57  ;;  %v4343_v16 = vadd.f32 %v1318_v24, %v1110_v53  ;;  %v596_v42 = vld [vmem:[#allocation5 + $0x748] sm:$0xff]  ;;  %v403_v24 = vld [vmem:[#allocation5 + $0x140] sm:$0xff] }
 0x196   : > { %2116 = vmatprep.mubr.f32.mxu1 %v4095_v25  ;;  %1908 = vmatmul.mubr.f32.gmra.mxu0 %v3269_v55  ;;  %v3270_v57 = vld [vmem:[%s3784_s23 + $0x168] sm:$0xff]  ;;  %v595_v53 = vld [vmem:[#allocation5 + $0x740] sm:$0xff] }
 0x197   : > { %5409 = vst [vmem:[#allocation21_spill] sm:$0xff] %v4343_v16  ;;  %2117 = vmatmul.mubr.f32.gmra.mxu1 %v4098_v63  ;;  %2241 = vmatprep.subr.mxu0 %v410_v22  ;;  %v1115_v45 = vpop.f32.mrf.mxu0  ;;  %v398_v22 = vld [vmem:[#allocation5 + $0x118] sm:$0xff] }
 0x198   : > { %2450 = vmatprep.subr.mxu1 %v602_v14  ;;  %v1324_v41 = vpop.f32.mrf.mxu1  ;;  %2242 = vmatpush1.msra.mxu0 %v409_v36  ;;  %v1116_v25 = vadd.f32 %v1115_v45, %v4200_v29  ;;  %v590_v14 = vld [vmem:[#allocation5 + $0x718] sm:$0xff]  ;;  %v3271_v36 = vld [vmem:[%s3784_s23 + $0x160] sm:$0xff] }
 0x199   : > { %2451 = vmatpush1.msra.mxu1 %v601_v60  ;;  %1913 = vmatprep.mubr.f32.mxu0 %v3270_v57  ;;  %v4350_v55 = vpop.f32.mrf.mxu0  ;;  %v589_v60 = vld [vmem:[#allocation5 + $0x710] sm:$0xff] }
 0x19a   : > { %2122 = vmatprep.mubr.f32.mxu1 %v4105_v50  ;;  %v4352_v63 = vpop.f32.mrf.mxu1  ;;  %2243 = vmatprep.subr.mxu0 %v404_v10  ;;  %v4354_v16 = vadd.f32 %v1324_v41, %v1116_v25  ;;  %v397_v50 = vld [vmem:[#allocation5 + $0x110] sm:$0xff]  ;;  %v392_v41 = vld [vmem:[#allocation5 + $0xe8] sm:$0xff] }
 0x19b   : > { %2452 = vmatprep.subr.mxu1 %v596_v42  ;;  %1914 = vmatmul.mubr.f32.gmra.mxu0 %v3271_v36  ;;  %v3272_v42 = vld [vmem:[%s3784_s23 + $0x198] sm:$0xff]  ;;  %v584_v25 = vld [vmem:[#allocation5 + $0x6e8] sm:$0xff] }
 0x19c   : > { %5410 = vst [vmem:[#allocation22_spill] sm:$0xff] %v4354_v16  ;;  %2123 = vmatmul.mubr.f32.gmra.mxu1 %v4108_v52  ;;  %2244 = vmatpush1.msra.mxu0 %v403_v24  ;;  %v1121_v45 = vpop.f32.mrf.mxu0  ;;  %v391_v24 = vld [vmem:[#allocation5 + $0xe0] sm:$0xff] }
 0x19d   : > { %2453 = vmatpush1.msra.mxu1 %v595_v53  ;;  %v1330_v57 = vpop.f32.mrf.mxu1  ;;  %2245 = vmatprep.subr.mxu0 %v398_v22  ;;  %v1122_v10 = vadd.f32 %v1121_v45, %v4200_v29  ;;  %v583_v53 = vld [vmem:[#allocation5 + $0x6e0] sm:$0xff]  ;;  %v3273_v22 = vld [vmem:[%s3784_s23 + $0x190] sm:$0xff] }
 0x19e   : > { %2454 = vmatprep.subr.mxu1 %v590_v14  ;;  %1919 = vmatprep.mubr.f32.mxu0 %v3272_v42  ;;  %v4361_v36 = vpop.f32.mrf.mxu0 }
 0x19f   : > { %2128 = vmatprep.mubr.f32.mxu1 %v4115_v7  ;;  %v4363_v52 = vpop.f32.mrf.mxu1  ;;  %2246 = vmatpush1.msra.mxu0 %v397_v50  ;;  %v4365_v16 = vadd.f32 %v1330_v57, %v1122_v10  ;;  %v386_v50 = vld [vmem:[#allocation5 + $0xb8] sm:$0xff]  ;;  %v3274_v57 = vld [vmem:[%s3784_s23 + $0x1c8] sm:$0xff]  ;;  %v577_v10 = vld [vmem:[#allocation5 + $0x6b0] sm:$0xff] }
 0x1a0   : > { %5411 = vst [vmem:[#allocation23_spill] sm:$0xff] %v4363_v52  ;;  %2455 = vmatpush1.msra.mxu1 %v589_v60  ;;  %1920 = vmatmul.mubr.f32.gmra.mxu0 %v3273_v22  ;;  %v1127_v14 = vpop.f32.mrf.mxu0  ;;  %v578_v60 = vld [vmem:[#allocation5 + $0x6b8] sm:$0xff] }
 0x1a1   : > { %2129 = vmatmul.mubr.f32.gmra.mxu1 %v4118_v1  ;;  %v1336_v45 = vpop.f32.mrf.mxu1  ;;  %2247 = vmatprep.subr.mxu0 %v392_v41  ;;  %v1128_v7 = vadd.f32 %v1127_v14, %v4200_v29  ;;  %v385_v1 = vld [vmem:[#allocation5 + $0xb0] sm:$0xff]  ;;  %v3275_v41 = vld [vmem:[%s3784_s23 + $0x1c0] sm:$0xff] }
 0x1a2   : > { %2456 = vmatprep.subr.mxu1 %v584_v25  ;;  %2248 = vmatpush1.msra.mxu0 %v391_v24  ;;  %v4370_v42 = vpop.f32.mrf.mxu0  ;;  %v380_v25 = vld [vmem:[#allocation5 + $0x88] sm:$0xff] }
 0x1a3   : > { %2457 = vmatpush1.msra.mxu1 %v583_v53  ;;  %v4372_v52 = vpop.f32.mrf.mxu1  ;;  %1925 = vmatprep.mubr.f32.mxu0 %v3274_v57  ;;  %v4376_v22 = vadd.f32 %v1336_v45, %v1128_v7  ;;  %v572_v24 = vld [vmem:[#allocation5 + $0x688] sm:$0xff]  ;;  %v3276_v57 = vld [vmem:[%s3784_s23 + $0x1f8] sm:$0xff]  ;;  %v379_v45 = vld [vmem:[#allocation5 + $0x80] sm:$0xff] }
 0x1a4   : > { %2134 = vmatprep.mubr.f32.mxu1 %v4125_v2  ;;  %1926 = vmatmul.mubr.f32.gmra.mxu0 %v3275_v41  ;;  %v571_v7 = vld [vmem:[#allocation5 + $0x680] sm:$0xff] }
 0x1a5   : > { %5412 = vst [vmem:[#allocation24_spill] sm:$0xff] %v4376_v22  ;;  %2135 = vmatmul.mubr.f32.gmra.mxu1 %v4128_v28  ;;  %2249 = vmatprep.subr.mxu0 %v386_v50  ;;  %v1133_v53 = vpop.f32.mrf.mxu0  ;;  %v374_v50 = vld [vmem:[#allocation5 + $0x58] sm:$0xff] }
 0x1a6   : > { %2458 = vmatprep.subr.mxu1 %v578_v60  ;;  %v1342_v14 = vpop.f32.mrf.mxu1  ;;  %2250 = vmatpush1.msra.mxu0 %v385_v1  ;;  %v1134_v2 = vadd.f32 %v1133_v53, %v4200_v29  ;;  %v566_v60 = vld [vmem:[#allocation5 + $0x658] sm:$0xff]  ;;  %v3277_v1 = vld [vmem:[%s3784_s23 + $0x1f0] sm:$0xff] }
 0x1a7   : > { %2459 = vmatpush1.msra.mxu1 %v577_v10  ;;  %1931 = vmatprep.mubr.f32.mxu0 %v3276_v57  ;;  %v4383_v41 = vpop.f32.mrf.mxu0  ;;  %v565_v10 = vld [vmem:[#allocation5 + $0x650] sm:$0xff] }
 0x1a8   : > { %2140 = vmatprep.mubr.f32.mxu1 %v4135_v19  ;;  %v4385_v28 = vpop.f32.mrf.mxu1  ;;  %2251 = vmatprep.subr.mxu0 %v380_v25  ;;  %v4387_v22 = vadd.f32 %v1342_v14, %v1134_v2  ;;  %v373_v19 = vld [vmem:[#allocation5 + $0x50] sm:$0xff]  ;;  %v368_v14 = vld [vmem:[#allocation5 + $0x28] sm:$0xff] }
 0x1a9   : > { %2460 = vmatprep.subr.mxu1 %v572_v24  ;;  %1932 = vmatmul.mubr.f32.gmra.mxu0 %v3277_v1  ;;  %v3278_v24 = vld [vmem:[%s3784_s23 + $0x228] sm:$0xff] }
 0x1aa   : > { %5413 = vst [vmem:[#allocation25_spill] sm:$0xff] %v4387_v22  ;;  %2141 = vmatmul.mubr.f32.gmra.mxu1 %v4138_v12  ;;  %2252 = vmatpush1.msra.mxu0 %v379_v45  ;;  %v1139_v53 = vpop.f32.mrf.mxu0  ;;  %v560_v2 = vld [vmem:[#allocation5 + $0x628] sm:$0xff]  ;;  %v367_v45 = vld [vmem:[#allocation5 + $0x20] sm:$0xff] }
 0x1ab   : > { %2461 = vmatpush1.msra.mxu1 %v571_v7  ;;  %v1348_v57 = vpop.f32.mrf.mxu1  ;;  %2253 = vmatprep.subr.mxu0 %v374_v50  ;;  %v1140_v25 = vadd.f32 %v1139_v53, %v4200_v29  ;;  %v559_v7 = vld [vmem:[#allocation5 + $0x620] sm:$0xff] }
 0x1ac   : > { %2462 = vmatprep.subr.mxu1 %v566_v60  ;;  %1937 = vmatprep.mubr.f32.mxu0 %v3278_v24  ;;  %v4394_v1 = vpop.f32.mrf.mxu0  ;;  %v3279_v50 = vld [vmem:[%s3784_s23 + $0x220] sm:$0xff] }
 0x1ad   : > { %2146 = vmatprep.mubr.f32.mxu1 %v4145_v23  ;;  %v4396_v12 = vpop.f32.mrf.mxu1  ;;  %2254 = vmatpush1.msra.mxu0 %v373_v19  ;;  %v4398_v22 = vadd.f32 %v1348_v57, %v1140_v25  ;;  %v554_v19 = vld [vmem:[#allocation5 + $0x5f8] sm:$0xff]  ;;  %v745_v25 = vld [vmem:[#allocation5 + $0xbf0] sm:$0xff] }
 0x1ae   : > { %5414 = vst [vmem:[#allocation26_spill] sm:$0xff] %v4396_v12  ;;  %2463 = vmatpush1.msra.mxu1 %v565_v10  ;;  %1938 = vmatmul.mubr.f32.gmra.mxu0 %v3279_v50  ;;  %v1145_v60 = vpop.f32.mrf.mxu0  ;;  %v746_v10 = vld [vmem:[#allocation5 + $0xbf8] sm:$0xff] }
 0x1af   : > { %2147 = vmatmul.mubr.f32.gmra.mxu1 %v4148_v37  ;;  %v1354_v53 = vpop.f32.mrf.mxu1  ;;  %2255 = vmatprep.subr.mxu0 %v368_v14  ;;  %v1146_v23 = vadd.f32 %v1145_v60, %v4200_v29  ;;  %v3280_v57 = vld [vmem:[%s3784_s23 + $0x258] sm:$0xff]  ;;  %v553_v37 = vld [vmem:[#allocation5 + $0x5f0] sm:$0xff] }
 0x1b0   : > { %2464 = vmatprep.subr.mxu1 %v560_v2  ;;  %2256 = vmatpush1.msra.mxu0 %v367_v45  ;;  %v4403_v24 = vpop.f32.mrf.mxu0  ;;  %v3281_v14 = vld [vmem:[%s3784_s23 + $0x250] sm:$0xff]  ;;  %v548_v2 = vld [vmem:[#allocation5 + $0x5c8] sm:$0xff] }
 0x1b1   : > { %2465 = vmatpush1.msra.mxu1 %v559_v7  ;;  %v4405_v12 = vpop.f32.mrf.mxu1  ;;  %1943 = vmatprep.mubr.f32.mxu0 %v3280_v57  ;;  %v4409_v50 = vadd.f32 %v1354_v53, %v1146_v23  ;;  %v740_v45 = vld [vmem:[#allocation5 + $0xbc8] sm:$0xff]  ;;  %v547_v53 = vld [vmem:[#allocation5 + $0x5c0] sm:$0xff] }
 0x1b2   : > { %2152 = vmatprep.mubr.f32.mxu1 %v4155_v30  ;;  %1944 = vmatmul.mubr.f32.gmra.mxu0 %v3281_v14  ;;  %v3282_v57 = vld [vmem:[%s3784_s23 + $0x288] sm:$0xff]  ;;  %v739_v23 = vld [vmem:[#allocation5 + $0xbc0] sm:$0xff] }
 0x1b3   : > { %5415 = vst [vmem:[#allocation27_spill] sm:$0xff] %v4409_v50  ;;  %2153 = vmatmul.mubr.f32.gmra.mxu1 %v4158_v56  ;;  %2257 = vmatprep.subr.mxu0 %v554_v19  ;;  %v1151_v7 = vpop.f32.mrf.mxu0  ;;  %v542_v19 = vld [vmem:[#allocation5 + $0x598] sm:$0xff] }
 0x1b4   : > { %2466 = vmatprep.subr.mxu1 %v746_v10  ;;  %v1360_v60 = vpop.f32.mrf.mxu1  ;;  %2258 = vmatpush2.msra.mxu0 %v553_v37  ;;  %v1152_v30 = vadd.f32 %v1151_v7, %v4200_v29  ;;  %v734_v10 = vld [vmem:[#allocation5 + $0xb98] sm:$0xff]  ;;  %v3283_v37 = vld [vmem:[%s3784_s23 + $0x280] sm:$0xff] }
 0x1b5   : > { %2467 = vmatpush2.msra.mxu1 %v745_v25  ;;  %1949 = vmatprep.mubr.f32.mxu0 %v3282_v57  ;;  %v4416_v14 = vpop.f32.mrf.mxu0  ;;  %v733_v25 = vld [vmem:[#allocation5 + $0xb90] sm:$0xff] }
 0x1b6   : > { %2158 = vmatprep.mubr.f32.mxu1 %v4165_v54  ;;  %v4418_v56 = vpop.f32.mrf.mxu1  ;;  %2259 = vmatprep.subr.mxu0 %v548_v2  ;;  %v4420_v50 = vadd.f32 %v1360_v60, %v1152_v30  ;;  %v541_v54 = vld [vmem:[#allocation5 + $0x590] sm:$0xff]  ;;  %v536_v60 = vld [vmem:[#allocation5 + $0x568] sm:$0xff] }
 0x1b7   : > { %2468 = vmatprep.subr.mxu1 %v740_v45  ;;  %1950 = vmatmul.mubr.f32.gmra.mxu0 %v3283_v37  ;;  %v3284_v45 = vld [vmem:[%s3784_s23 + $0x2b8] sm:$0xff]  ;;  %v728_v30 = vld [vmem:[#allocation5 + $0xb68] sm:$0xff] }
 0x1b8   : > { %5416 = vst [vmem:[#allocation28_spill] sm:$0xff] %v4420_v50  ;;  %2159 = vmatmul.mubr.f32.gmra.mxu1 %v4168_v40  ;;  %2260 = vmatpush2.msra.mxu0 %v547_v53  ;;  %v1157_v7 = vpop.f32.mrf.mxu0  ;;  %v535_v53 = vld [vmem:[#allocation5 + $0x560] sm:$0xff] }
 0x1b9   : > { %2469 = vmatpush2.msra.mxu1 %v739_v23  ;;  %v1366_v57 = vpop.f32.mrf.mxu1  ;;  %2261 = vmatprep.subr.mxu0 %v542_v19  ;;  %v1158_v2 = vadd.f32 %v1157_v7, %v4200_v29  ;;  %v727_v23 = vld [vmem:[#allocation5 + $0xb60] sm:$0xff]  ;;  %v3285_v19 = vld [vmem:[%s3784_s23 + $0x2b0] sm:$0xff] }
 0x1ba   : > { %2470 = vmatprep.subr.mxu1 %v734_v10  ;;  %1955 = vmatprep.mubr.f32.mxu0 %v3284_v45  ;;  %v4427_v37 = vpop.f32.mrf.mxu0  ;;  %v947_v45 = vsub.s32 1, %v4187_v3 }
 0x1bb   : > { %2164 = vmatprep.mubr.f32.mxu1 %v4175_v32  ;;  %v4429_v40 = vpop.f32.mrf.mxu1  ;;  %2262 = vmatpush2.msra.mxu0 %v541_v54  ;;  %v4431_v50 = vadd.f32 %v1366_v57, %v1158_v2  ;;  %v530_v54 = vld [vmem:[#allocation5 + $0x538] sm:$0xff] }
 0x1bc   : > { %2471 = vmatpush2.msra.mxu1 %v733_v25  ;;  %1956 = vmatmul.mubr.f32.gmra.mxu0 %v3285_v19  ;;  %v1163_v10 = vpop.f32.mrf.mxu0  ;;  %v722_v25 = vld [vmem:[#allocation5 + $0xb38] sm:$0xff]  ;;  %v3286_v19 = vld [vmem:[%s3784_s23 + $0x2e8] sm:$0xff] }
 0x1bd   : > { %5417 = vst [vmem:[#allocation29_spill] sm:$0xff] %v4431_v50  ;;  %2165 = vmatmul.mubr.f32.gmra.mxu1 %v4178_v11  ;;  %v1372_v32 = vpop.f32.mrf.mxu1  ;;  %2263 = vmatprep.subr.mxu0 %v536_v60  ;;  %v1164_v7 = vadd.f32 %v1163_v10, %v4200_v29  ;;  %v3287_v11 = vld [vmem:[%s3784_s23 + $0x2f8] sm:$0xff]  ;;  %v529_v60 = vld [vmem:[#allocation5 + $0x530] sm:$0xff]  ;;  %v524_v10 = vld [vmem:[#allocation5 + $0x508] sm:$0xff] }
 0x1be   : > { %2472 = vmatprep.subr.mxu1 %v728_v30  ;;  %2264 = vmatpush2.msra.mxu0 %v535_v53  ;;  %v4436_v57 = vpop.f32.mrf.mxu0  ;;  %v721_v30 = vld [vmem:[#allocation5 + $0xb30] sm:$0xff]  ;;  %v3288_v53 = vld [vmem:[%s3784_s23 + $0x2e0] sm:$0xff] }
 0x1bf   : > { %2473 = vmatpush2.msra.mxu1 %v727_v23  ;;  %5418 = vst [vmem:[#allocation30_spill] sm:$0xff] %v4436_v57  ;;  %v4438_v2 = vpop.f32.mrf.mxu1  ;;  %1961 = vmatprep.mubr.f32.mxu0 %v3286_v19  ;;  %v4443_v50 = vadd.f32 %v1372_v32, %v1164_v7  ;;  %v3289_v23 = vld [vmem:[%s3784_s23 + $0x2f0] sm:$0xff]  ;;  %v3290_v32 = vld [vmem:[%s3784_s23 + $0x318] sm:$0xff]  ;;  %v3291_v7 = vld [vmem:[%s3784_s23 + $0x328] sm:$0xff] }
 0x1c0   : > { %5419 = vst [vmem:[#allocation31_spill] sm:$0xff] %v4438_v2  ;;  %2170 = vmatprep.mubr.f32.mxu1 %v3287_v11  ;;  %1962 = vmatmul.mubr.f32.gmra.mxu0 %v3288_v53  ;;  %v716_v2 = vld [vmem:[#allocation5 + $0xb08] sm:$0xff]  ;;  %v4449_v11 = vrot.slane %v4194_v4, %v947_v45  ;;  %v523_v53 = vld [vmem:[#allocation5 + $0x500] sm:$0xff]  ;;  %v3292_v4 = vld [vmem:[%s3784_s23 + $0x310] sm:$0xff] }
 0x1c1   : > { %5420 = vst [vmem:[#allocation32_spill] sm:$0xff] %v4443_v50  ;;  %2171 = vmatmul.mubr.f32.gmra.mxu1 %v3289_v23  ;;  %2265 = vmatprep.subr.mxu0 %v530_v54  ;;  %v1169_v57 = vpop.f32.mrf.mxu0  ;;  %v715_v54 = vld [vmem:[#allocation5 + $0xb00] sm:$0xff] }
 0x1c2   : > { %2474 = vmatprep.subr.mxu1 %v722_v25  ;;  %v1378_v3 = vpop.f32.mrf.mxu1  ;;  %2266 = vmatpush2.msra.mxu0 %v529_v60  ;;  %v1170_v19 = vadd.f32 %v1169_v57, %v4200_v29  ;;  %v518_v60 = vld [vmem:[#allocation5 + $0x4d8] sm:$0xff]  ;;  %v3293_v45 = vld [vmem:[%s3784_s23 + $0x320] sm:$0xff] }
 0x1c3   : > { %2475 = vmatpush2.msra.mxu1 %v721_v30  ;;  %1967 = vmatprep.mubr.f32.mxu0 %v3290_v32  ;;  %v4453_v25 = vpop.f32.mrf.mxu0  ;;  %v710_v30 = vld [vmem:[#allocation5 + $0xad8] sm:$0xff]  ;;  %v517_v32 = vld [vmem:[#allocation5 + $0x4d0] sm:$0xff] }
 0x1c4   : > { %2176 = vmatprep.mubr.f32.mxu1 %v3291_v7  ;;  %5421 = vst [vmem:[#allocation33_spill] sm:$0xff] %v4453_v25  ;;  %v4455_v23 = vpop.f32.mrf.mxu1  ;;  %2267 = vmatprep.subr.mxu0 %v524_v10  ;;  %v4457_v57 = vadd.f32 %v1378_v3, %v1170_v19  ;;  %v709_v7 = vld [vmem:[#allocation5 + $0xad0] sm:$0xff]  ;;  %v1040_v10 = vadd.f32 %v4207_v49, %v4449_v11  ;;  %v3295_v19 = vld [vmem:[%s3784_s23 + $0x358] sm:$0xff]  ;;  %v703_v49 = vld [vmem:[#allocation5 + $0xaa0] sm:$0xff] }
 0x1c5   : > { %2476 = vmatprep.subr.mxu1 %v716_v2  ;;  %1968 = vmatmul.mubr.f32.gmra.mxu0 %v3292_v4  ;;  %v3294_v2 = vld [vmem:[%s3784_s23 + $0x348] sm:$0xff] }
 0x1c6   : > { %5422 = vst [vmem:[#allocation34_spill] sm:$0xff] %v4457_v57  ;;  %2177 = vmatmul.mubr.f32.gmra.mxu1 %v3293_v45  ;;  %2268 = vmatpush2.msra.mxu0 %v523_v53  ;;  %v1175_v50 = vpop.f32.mrf.mxu0  ;;  %v512_v4 = vld [vmem:[#allocation5 + $0x4a8] sm:$0xff]  ;;  %v511_v57 = vld [vmem:[#allocation5 + $0x4a0] sm:$0xff] }
 0x1c7   : > { %2477 = vmatpush2.msra.mxu1 %v715_v54  ;;  %v1384_v25 = vpop.f32.mrf.mxu1  ;;  %2269 = vmatprep.subr.mxu0 %v518_v60  ;;  %v1176_v3 = vadd.f32 %v1175_v50, %v4200_v29  ;;  %v704_v53 = vld [vmem:[#allocation5 + $0xaa8] sm:$0xff]  ;;  %v3297_v29 = vld [vmem:[%s3784_s23 + $0x350] sm:$0xff] }
 0x1c8   : > { %2478 = vmatprep.subr.mxu1 %v710_v30  ;;  %1973 = vmatprep.mubr.f32.mxu0 %v3294_v2  ;;  %v4466_v54 = vpop.f32.mrf.mxu0  ;;  %v3296_v30 = vld [vmem:[%s3784_s23 + $0x340] sm:$0xff] }
 0x1c9   : > { %2182 = vmatprep.mubr.f32.mxu1 %v3295_v19  ;;  %v4468_v45 = vpop.f32.mrf.mxu1  ;;  %2270 = vmatpush2.msra.mxu0 %v517_v32  ;;  %v4470_v60 = vadd.f32 %v1384_v25, %v1176_v3  ;;  %v1249_v19 = vadd.f32 %v4209_v47, %v1040_v10  ;;  %v1046_v25 = vadd.f32 %v4219_v6, %v4449_v11  ;;  %v698_v3 = vld [vmem:[#allocation5 + $0xa78] sm:$0xff]  ;;  %v3299_v47 = vld [vmem:[%s3784_s23 + $0x388] sm:$0xff]  ;;  %v505_v10 = vld [vmem:[#allocation5 + $0x470] sm:$0xff] }
 0x1ca   : > { %2479 = vmatpush2.msra.mxu1 %v709_v7  ;;  %1974 = vmatmul.mubr.f32.gmra.mxu0 %v3296_v30  ;;  %v1455_v50 = vpop.f32.mrf.mxu0  ;;  %v506_v7 = vld [vmem:[#allocation5 + $0x478] sm:$0xff]  ;;  %v3300_v6 = vld [vmem:[%s3784_s23 + $0x370] sm:$0xff] }
 0x1cb   : > { %2183 = vmatmul.mubr.f32.gmra.mxu1 %v3297_v29  ;;  %v4474_v2 = vpop.f32.mrf.mxu1  ;;  %2271 = vmatprep.subr.mxu0 %v512_v4  ;;  %v1456_v32 = vadd.f32 %v1455_v50, %v4212_v58  ;;  %v697_v4 = vld [vmem:[#allocation5 + $0xa70] sm:$0xff] }
 0x1cc   : > { %5423 = vst [vmem:[#allocation35_spill] sm:$0xff] %v4474_v2  ;;  %2480 = vmatprep.subr.mxu1 %v704_v53  ;;  %2272 = vmatpush2.msra.mxu0 %v511_v57  ;;  %v1457_v30 = vpop.f32.mrf.mxu0  ;;  %v3298_v2 = vld [vmem:[%s3784_s23 + $0x378] sm:$0xff]  ;;  %v3301_v57 = vld [vmem:[%s3784_s23 + $0x380] sm:$0xff]  ;;  %v500_v53 = vld [vmem:[#allocation5 + $0x448] sm:$0xff] }
 0x1cd   : > { %2481 = vmatpush2.msra.mxu1 %v703_v49  ;;  %v4480_v29 = vpop.f32.mrf.mxu1  ;;  %1979 = vmatprep.mubr.f32.mxu0 %v3298_v2  ;;  %2852 = vst [vmem:[%s4486_s18] sm:$0xff] %v1456_v32  ;;  %v1458_v58 = vadd.f32 %v1457_v30, %v1249_v19  ;;  %v692_v49 = vld [vmem:[#allocation5 + $0xa48] sm:$0xff]  ;;  %v1052_v32 = vadd.f32 %v4230_v59, %v4449_v11  ;;  %v3305_v59 = vld [vmem:[%s3784_s23 + $0x3b0] sm:$0xff] }
 0x1ce   : > { %2188 = vmatprep.mubr.f32.mxu1 %v3299_v47  ;;  %1980 = vmatmul.mubr.f32.gmra.mxu0 %v3300_v6  ;;  %v1255_v47 = vadd.f32 %v4221_v38, %v1046_v25  ;;  %v3302_v30 = vld [vmem:[%s3784_s23 + $0x3a8] sm:$0xff]  ;;  %v494_v38 = vld [vmem:[#allocation5 + $0x418] sm:$0xff] }
 0x1cf   : > { %2189 = vmatmul.mubr.f32.gmra.mxu1 %v3301_v57  ;;  %2273 = vmatprep.subr.mxu0 %v506_v7  ;;  %2853 = vst [vmem:[%s4486_s18 + $0x8] sm:$0xff] %v1458_v58  ;;  %v1461_v50 = vpop.f32.mrf.mxu0  ;;  %v3303_v7 = vld [vmem:[%s3784_s23 + $0x3b8] sm:$0xff]  ;;  %v691_v58 = vld [vmem:[#allocation5 + $0xa40] sm:$0xff] }
 0x1d0   : > { %2482 = vmatprep.subr.mxu1 %v698_v3  ;;  %v4492_v2 = vpop.f32.mrf.mxu1  ;;  %2274 = vmatpush2.msra.mxu0 %v505_v10  ;;  %v1462_v19 = vadd.f32 %v1461_v50, %v4223_v44  ;;  %v499_v3 = vld [vmem:[#allocation5 + $0x440] sm:$0xff]  ;;  %v686_v25 = vld [vmem:[#allocation5 + $0xa18] sm:$0xff]  ;;  %v685_v50 = vld [vmem:[#allocation5 + $0xa10] sm:$0xff] }
 0x1d1   : > { %2483 = vmatpush2.msra.mxu1 %v697_v4  ;;  %1985 = vmatprep.mubr.f32.mxu0 %v3302_v30  ;;  %v1463_v6 = vpop.f32.mrf.mxu0  ;;  %v3304_v10 = vld [vmem:[%s3784_s23 + $0x3a0] sm:$0xff]  ;;  %v493_v4 = vld [vmem:[#allocation5 + $0x410] sm:$0xff] }
 0x1d2   : > { %2194 = vmatprep.mubr.f32.mxu1 %v3303_v7  ;;  %v4500_v57 = vpop.f32.mrf.mxu1  ;;  %2275 = vmatprep.subr.mxu0 %v500_v53  ;;  %2858 = vst [vmem:[%s4486_s18 + $0x30] sm:$0xff] %v1462_v19  ;;  %v1464_v44 = vadd.f32 %v1463_v6, %v1255_v47  ;;  %v1261_v53 = vadd.f32 %v4232_v62, %v1052_v32  ;;  %v3306_v19 = vld [vmem:[%s3784_s23 + $0x3d8] sm:$0xff]  ;;  %v680_v6 = vld [vmem:[#allocation5 + $0x9e8] sm:$0xff]  ;;  %v487_v62 = vld [vmem:[#allocation5 + $0x3e0] sm:$0xff] }
 0x1d3   : > { %2484 = vmatprep.subr.mxu1 %v692_v49  ;;  %1986 = vmatmul.mubr.f32.gmra.mxu0 %v3304_v10  ;;  %v1058_v49 = vadd.f32 %v4240_v21, %v4449_v11  ;;  %v679_v21 = vld [vmem:[#allocation5 + $0x9e0] sm:$0xff] }
 0x1d4   : > { %2195 = vmatmul.mubr.f32.gmra.mxu1 %v3305_v59  ;;  %2276 = vmatpush2.msra.mxu0 %v499_v3  ;;  %2859 = vst [vmem:[%s4486_s18 + $0x38] sm:$0xff] %v1464_v44  ;;  %v1467_v30 = vpop.f32.mrf.mxu0  ;;  %v3307_v3 = vld [vmem:[%s3784_s23 + $0x3e8] sm:$0xff] }
 0x1d5   : > { %2485 = vmatpush2.msra.mxu1 %v691_v58  ;;  %v4506_v7 = vpop.f32.mrf.mxu1  ;;  %2277 = vmatprep.subr.mxu0 %v494_v38  ;;  %v1468_v47 = vadd.f32 %v1467_v30, %v4234_v46  ;;  %v488_v58 = vld [vmem:[#allocation5 + $0x3e8] sm:$0xff]  ;;  %v3308_v38 = vld [vmem:[%s3784_s23 + $0x3d0] sm:$0xff]  ;;  %v3309_v46 = vld [vmem:[%s3784_s23 + $0x3e0] sm:$0xff]  ;;  %v1267_v30 = vadd.f32 %v4242_v17, %v1058_v49 }
 0x1d6   : > { %2486 = vmatprep.subr.mxu1 %v686_v25  ;;  %1991 = vmatprep.mubr.f32.mxu0 %v3306_v19  ;;  %v1469_v44 = vpop.f32.mrf.mxu0  ;;  %v674_v19 = vld [vmem:[#allocation5 + $0x9b8] sm:$0xff]  ;;  %v481_v49 = vld [vmem:[#allocation5 + $0x3b0] sm:$0xff] }
 0x1d7   : > { %2200 = vmatprep.mubr.f32.mxu1 %v3307_v3  ;;  %v4514_v10 = vpop.f32.mrf.mxu1  ;;  %2278 = vmatpush2.msra.mxu0 %v493_v4  ;;  %2864 = vst [vmem:[%s4486_s18 + $0x60] sm:$0xff] %v1468_v47  ;;  %v1470_v32 = vadd.f32 %v1469_v44, %v1261_v53  ;;  %v5424_v4 = vld [vmem:[#allocation13_spill] sm:$0xff]  ;;  %v1064_v53 = vadd.f32 %v4252_v13, %v4449_v11  ;;  %v482_v47 = vld [vmem:[#allocation5 + $0x3b8] sm:$0xff] }
 0x1d8   : > { %2487 = vmatpush2.msra.mxu1 %v685_v50  ;;  %1992 = vmatmul.mubr.f32.gmra.mxu0 %v3308_v38  ;;  %v1473_v25 = vpop.f32.mrf.mxu0  ;;  %v3310_v38 = vld [vmem:[%s3784_s23 + $0x408] sm:$0xff]  ;;  %v3311_v17 = vld [vmem:[%s3784_s23 + $0x418] sm:$0xff]  ;;  %v3313_v13 = vld [vmem:[%s3784_s23 + $0x410] sm:$0xff] }
 0x1d9   : > { %2201 = vmatmul.mubr.f32.gmra.mxu1 %v3309_v46  ;;  %v4519_v59 = vpop.f32.mrf.mxu1  ;;  %2279 = vmatprep.subr.mxu0 %v488_v58  ;;  %2865 = vst [vmem:[%s4486_s18 + $0x68] sm:$0xff] %v1470_v32  ;;  %v1474_v50 = vadd.f32 %v1473_v25, %v5424_v4  ;;  %v673_v58 = vld [vmem:[#allocation5 + $0x9b0] sm:$0xff]  ;;  %v3312_v32 = vld [vmem:[%s3784_s23 + $0x400] sm:$0xff] }
 0x1da   : > { %2488 = vmatprep.subr.mxu1 %v680_v6  ;;  %2280 = vmatpush2.msra.mxu0 %v487_v62  ;;  %v1475_v3 = vpop.f32.mrf.mxu0  ;;  %v476_v62 = vld [vmem:[#allocation5 + $0x388] sm:$0xff]  ;;  %v5425_v4 = vld [vmem:[#allocation14_spill] sm:$0xff] }
 0x1db   : > { %2489 = vmatpush2.msra.mxu1 %v679_v21  ;;  %v4526_v44 = vpop.f32.mrf.mxu1  ;;  %1997 = vmatprep.mubr.f32.mxu0 %v3310_v38  ;;  %2870 = vst [vmem:[%s4486_s18 + $0x90] sm:$0xff] %v1474_v50  ;;  %v1476_v6 = vadd.f32 %v1475_v3, %v1267_v30  ;;  %v668_v21 = vld [vmem:[#allocation5 + $0x988] sm:$0xff]  ;;  %v1273_v38 = vadd.f32 %v5425_v4, %v1064_v53  ;;  %v3314_v3 = vld [vmem:[%s3784_s23 + $0x438] sm:$0xff] }
 0x1dc   : > { %2206 = vmatprep.mubr.f32.mxu1 %v3311_v17  ;;  %1998 = vmatmul.mubr.f32.gmra.mxu0 %v3312_v32  ;;  %v1070_v50 = vadd.f32 %v4263_v34, %v4449_v11  ;;  %v667_v17 = vld [vmem:[#allocation5 + $0x980] sm:$0xff]  ;;  %v470_v53 = vld [vmem:[#allocation5 + $0x358] sm:$0xff] }
 0x1dd   : > { %2207 = vmatmul.mubr.f32.gmra.mxu1 %v3313_v13  ;;  %2281 = vmatprep.subr.mxu0 %v482_v47  ;;  %2871 = vst [vmem:[%s4486_s18 + $0x98] sm:$0xff] %v1476_v6  ;;  %v1479_v46 = vpop.f32.mrf.mxu0  ;;  %v3315_v47 = vld [vmem:[%s3784_s23 + $0x448] sm:$0xff]  ;;  %v3317_v34 = vld [vmem:[%s3784_s23 + $0x440] sm:$0xff]  ;;  %v469_v13 = vld [vmem:[#allocation5 + $0x350] sm:$0xff] }
 0x1de   : > { %2490 = vmatprep.subr.mxu1 %v674_v19  ;;  %v4534_v25 = vpop.f32.mrf.mxu1  ;;  %2282 = vmatpush2.msra.mxu0 %v481_v49  ;;  %v1480_v30 = vadd.f32 %v1479_v46, %v4256_v20  ;;  %v475_v19 = vld [vmem:[#allocation5 + $0x380] sm:$0xff]  ;;  %v662_v49 = vld [vmem:[#allocation5 + $0x958] sm:$0xff]  ;;  %v661_v46 = vld [vmem:[#allocation5 + $0x950] sm:$0xff] }
 0x1df   : > { %2491 = vmatpush2.msra.mxu1 %v673_v58  ;;  %2003 = vmatprep.mubr.f32.mxu0 %v3314_v3  ;;  %v1481_v6 = vpop.f32.mrf.mxu0  ;;  %v3316_v58 = vld [vmem:[%s3784_s23 + $0x430] sm:$0xff] }
 0x1e0   : > { %2212 = vmatprep.mubr.f32.mxu1 %v3315_v47  ;;  %v4542_v32 = vpop.f32.mrf.mxu1  ;;  %2283 = vmatprep.subr.mxu0 %v476_v62  ;;  %2876 = vst [vmem:[%s4486_s18 + $0xc0] sm:$0xff] %v1480_v30  ;;  %v1482_v20 = vadd.f32 %v1481_v6, %v1273_v38  ;;  %v1279_v62 = vadd.f32 %v4265_v5, %v1070_v50  ;;  %v3318_v30 = vld [vmem:[%s3784_s23 + $0x468] sm:$0xff]  ;;  %v3319_v47 = vld [vmem:[%s3784_s23 + $0x478] sm:$0xff]  ;;  %v463_v5 = vld [vmem:[#allocation5 + $0x320] sm:$0xff] }
 0x1e1   : > { %2492 = vmatprep.subr.mxu1 %v668_v21  ;;  %2004 = vmatmul.mubr.f32.gmra.mxu0 %v3316_v58  ;;  %v1076_v21 = vadd.f32 %v4271_v18, %v4449_v11  ;;  %v655_v18 = vld [vmem:[#allocation5 + $0x920] sm:$0xff] }
 0x1e2   : > { %2213 = vmatmul.mubr.f32.gmra.mxu1 %v3317_v34  ;;  %2284 = vmatpush2.msra.mxu0 %v475_v19  ;;  %2877 = vst [vmem:[%s4486_s18 + $0xc8] sm:$0xff] %v1482_v20  ;;  %v1485_v4 = vpop.f32.mrf.mxu0  ;;  %v464_v19 = vld [vmem:[#allocation5 + $0x328] sm:$0xff] }
 0x1e3   : > { %2493 = vmatpush2.msra.mxu1 %v667_v17  ;;  %v4548_v3 = vpop.f32.mrf.mxu1  ;;  %2285 = vmatprep.subr.mxu0 %v470_v53  ;;  %v1486_v38 = vadd.f32 %v1485_v4, %v4267_v9  ;;  %v656_v17 = vld [vmem:[#allocation5 + $0x928] sm:$0xff]  ;;  %v3320_v53 = vld [vmem:[%s3784_s23 + $0x460] sm:$0xff]  ;;  %v3321_v9 = vld [vmem:[%s3784_s23 + $0x470] sm:$0xff]  ;;  %v1285_v34 = vadd.f32 %v4273_v33, %v1076_v21  ;;  %v1082_v4 = vadd.f32 %v4284_v0, %v4449_v11 }
 0x1e4   : > { %2494 = vmatprep.subr.mxu1 %v662_v49  ;;  %2009 = vmatprep.mubr.f32.mxu0 %v3318_v30  ;;  %v1487_v6 = vpop.f32.mrf.mxu0  ;;  %v3323_v33 = vld [vmem:[%s3784_s23 + $0x18] sm:$0xff]  ;;  %v841_v21 = vld [vmem:[#allocation5 + $0xef0] sm:$0xff]  ;;  %v836_v0 = vld [vmem:[#allocation5 + $0xec8] sm:$0xff] }
 0x1e5   : > { %2218 = vmatprep.mubr.f32.mxu1 %v3319_v47  ;;  %v4556_v20 = vpop.f32.mrf.mxu1  ;;  %2286 = vmatpush2.msra.mxu0 %v469_v13  ;;  %2882 = vst [vmem:[%s4486_s18 + $0xf0] sm:$0xff] %v1486_v38  ;;  %v1488_v50 = vadd.f32 %v1487_v6, %v1279_v62  ;;  %v5426_v13 = vld [vmem:[#allocation15_spill] sm:$0xff]  ;;  %v3322_v47 = vld [vmem:[%s3784_s23 + $0x8] sm:$0xff]  ;;  %v3325_v6 = vld [vmem:[%s3784_s23 + $0x10] sm:$0xff] }
 0x1e6   : > { %2495 = vmatpush2.msra.mxu1 %v661_v46  ;;  %2010 = vmatmul.mubr.f32.gmra.mxu0 %v3320_v53  ;;  %v1491_v49 = vpop.f32.mrf.mxu0  ;;  %v842_v62 = vld [vmem:[#allocation5 + $0xef8] sm:$0xff]  ;;  %v5427_v53 = vld [vmem:[#allocation16_spill] sm:$0xff] }
 0x1e7   : > { %2219 = vmatmul.mubr.f32.gmra.mxu1 %v3321_v9  ;;  %v4561_v58 = vpop.f32.mrf.mxu1  ;;  %2287 = vmatprep.subr.mxu0 %v464_v19  ;;  %2883 = vst [vmem:[%s4486_s18 + $0xf8] sm:$0xff] %v1488_v50  ;;  %v1492_v46 = vadd.f32 %v1491_v49, %v5426_v13  ;;  %v1291_v50 = vadd.f32 %v4286_v61, %v1082_v4  ;;  %v3327_v13 = vld [vmem:[%s3784_s23 + $0x48] sm:$0xff]  ;;  %v830_v61 = vld [vmem:[#allocation5 + $0xe98] sm:$0xff] }
 0x1e8   : > { %2496 = vmatprep.subr.mxu1 %v656_v17  ;;  %2288 = vmatpush2.msra.mxu0 %v463_v5  ;;  %v1493_v38 = vpop.f32.mrf.mxu0  ;;  %v3324_v17 = vld [vmem:[%s3784_s23] sm:$0xff]  ;;  %v1088_v49 = vadd.f32 %v4295_v39, %v4449_v11  ;;  %v829_v39 = vld [vmem:[#allocation5 + $0xe90] sm:$0xff] }
 0x1e9   : > { %2497 = vmatpush2.msra.mxu1 %v655_v18  ;;  %v4568_v30 = vpop.f32.mrf.mxu1  ;;  %2289 = vmatprep.mubr.f32.mxu0 %v3322_v47  ;;  %2888 = vst [vmem:[%s4486_s18 + $0x120] sm:$0xff] %v1492_v46  ;;  %v1494_v19 = vadd.f32 %v1493_v38, %v1285_v34  ;;  %v3326_v34 = vld [vmem:[%s3784_s23 + $0x38] sm:$0xff]  ;;  %v835_v46 = vld [vmem:[#allocation5 + $0xec0] sm:$0xff]  ;;  %v3328_v47 = vld [vmem:[%s3784_s23 + $0x30] sm:$0xff] }
 0x1ea   : > { %2498 = vmatprep.mubr.f32.mxu1 %v3323_v33  ;;  %2290 = vmatmul.mubr.f32.vlgmr.msra.gmra.mxu0 %v3324_v17  ;;  %v3329_v33 = vld [vmem:[%s3784_s23 + $0x40] sm:$0xff]  ;;  %v5428_v17 = vld [vmem:[#allocation17_spill] sm:$0xff] }
 0x1eb   : > { %2499 = vmatmul.mubr.f32.vlgmr.msra.gmra.mxu1 %v3325_v6  ;;  %2643 = vmatprep.subr.mxu0 %v842_v62  ;;  %2889 = vst [vmem:[%s4486_s18 + $0x128] sm:$0xff] %v1494_v19  ;;  %v1497_v5 = vpop.f32.mrf.mxu0  ;;  %v1297_v6 = vadd.f32 %v5428_v17, %v1088_v49  ;;  %v823_v49 = vld [vmem:[#allocation5 + $0xe60] sm:$0xff] }
 0x1ec   : > { %3115 = vmatprep.subr.mxu1 %v842_v62  ;;  %v4576_v18 = vpop.f32.mrf.mxu1  ;;  %2644 = vmatpush1.msra.mxu0 %v841_v21  ;;  %v1498_v9 = vadd.f32 %v1497_v5, %v5427_v53  ;;  %v3331_v53 = vld [vmem:[%s3784_s23 + $0x78] sm:$0xff] }
 0x1ed   : > { %3147 = vmatpush1.msra.mxu1 %v841_v21  ;;  %2295 = vmatprep.mubr.f32.mxu0 %v3326_v34  ;;  %v1499_v62 = vpop.f32.mrf.mxu0 }
 0x1ee   : > { %2504 = vmatprep.mubr.f32.mxu1 %v3327_v13  ;;  %v4584_v38 = vpop.f32.mrf.mxu1  ;;  %2645 = vmatprep.subr.mxu0 %v836_v0  ;;  %2894 = vst [vmem:[%s4486_s18 + $0x150] sm:$0xff] %v1498_v9  ;;  %v1500_v4 = vadd.f32 %v1499_v62, %v1291_v50  ;;  %v3330_v50 = vld [vmem:[%s3784_s23 + $0x68] sm:$0xff]  ;;  %v3333_v62 = vld [vmem:[%s3784_s23 + $0x70] sm:$0xff] }
 0x1ef   : > { %3116 = vmatprep.subr.mxu1 %v836_v0  ;;  %2296 = vmatmul.mubr.f32.gmra.mxu0 %v3328_v47  ;;  %v1094_v0 = vadd.f32 %v4304_v35, %v4449_v11  ;;  %v824_v9 = vld [vmem:[#allocation5 + $0xe68] sm:$0xff]  ;;  %v5429_v47 = vld [vmem:[#allocation18_spill] sm:$0xff] }
 0x1f0   : > { %2505 = vmatmul.mubr.f32.gmra.mxu1 %v3329_v33  ;;  %2646 = vmatpush1.msra.mxu0 %v835_v46  ;;  %2895 = vst [vmem:[%s4486_s18 + $0x158] sm:$0xff] %v1500_v4  ;;  %v1503_v21 = vpop.f32.mrf.mxu0 }
 0x1f1   : > { %3148 = vmatpush1.msra.mxu1 %v835_v46  ;;  %v4590_v19 = vpop.f32.mrf.mxu1  ;;  %2647 = vmatprep.subr.mxu0 %v830_v61  ;;  %v1504_v5 = vadd.f32 %v1503_v21, %v4299_v27  ;;  %v3332_v46 = vld [vmem:[%s3784_s23 + $0x60] sm:$0xff]  ;;  %v1303_v4 = vadd.f32 %v4306_v31, %v1094_v0  ;;  %v818_v21 = vld [vmem:[#allocation5 + $0xe38] sm:$0xff]  ;;  %v3335_v31 = vld [vmem:[%s3784_s23 + $0xa8] sm:$0xff] }
 0x1f2   : > { %3117 = vmatprep.subr.mxu1 %v830_v61  ;;  %2301 = vmatprep.mubr.f32.mxu0 %v3330_v50  ;;  %v1505_v34 = vpop.f32.mrf.mxu0  ;;  %v817_v0 = vld [vmem:[#allocation5 + $0xe30] sm:$0xff] }
 0x1f3   : > { %2510 = vmatprep.mubr.f32.mxu1 %v3331_v53  ;;  %v4598_v13 = vpop.f32.mrf.mxu1  ;;  %2648 = vmatpush1.msra.mxu0 %v829_v39  ;;  %2900 = vst [vmem:[%s4486_s18 + $0x180] sm:$0xff] %v1504_v5  ;;  %v1506_v35 = vadd.f32 %v1505_v34, %v1297_v6  ;;  %v3334_v5 = vld [vmem:[%s3784_s23 + $0x98] sm:$0xff]  ;;  %v3336_v53 = vld [vmem:[%s3784_s23 + $0x90] sm:$0xff] }
 0x1f4   : > { %3149 = vmatpush1.msra.mxu1 %v829_v39  ;;  %2302 = vmatmul.mubr.f32.gmra.mxu0 %v3332_v46  ;;  %v1509_v27 = vpop.f32.mrf.mxu0  ;;  %v1100_v39 = vadd.f32 %v4317_v51, %v4449_v11  ;;  %v812_v51 = vld [vmem:[#allocation5 + $0xe08] sm:$0xff]  ;;  %v5430_v46 = vld [vmem:[#allocation19_spill] sm:$0xff] }
 0x1f5   : > { %2511 = vmatmul.mubr.f32.gmra.mxu1 %v3333_v62  ;;  %v4603_v61 = vpop.f32.mrf.mxu1  ;;  %2649 = vmatprep.subr.mxu0 %v824_v9  ;;  %2901 = vst [vmem:[%s4486_s18 + $0x188] sm:$0xff] %v1506_v35  ;;  %v1510_v33 = vadd.f32 %v1509_v27, %v5429_v47  ;;  %v1106_v27 = vadd.f32 %v4328_v8, %v4449_v11  ;;  %v3339_v47 = vld [vmem:[%s3784_s23 + $0xd8] sm:$0xff]  ;;  %v805_v8 = vld [vmem:[#allocation5 + $0xdd0] sm:$0xff] }
 0x1f6   : > { %3118 = vmatprep.subr.mxu1 %v824_v9  ;;  %2650 = vmatpush1.msra.mxu0 %v823_v49  ;;  %v1511_v17 = vpop.f32.mrf.mxu0  ;;  %v3337_v9 = vld [vmem:[%s3784_s23 + $0xa0] sm:$0xff]  ;;  %v1309_v35 = vadd.f32 %v4319_v15, %v1100_v39  ;;  %v806_v15 = vld [vmem:[#allocation5 + $0xdd8] sm:$0xff] }
 0x1f7   : > { %3150 = vmatpush1.msra.mxu1 %v823_v49  ;;  %v4610_v6 = vpop.f32.mrf.mxu1  ;;  %2307 = vmatprep.mubr.f32.mxu0 %v3334_v5  ;;  %2906 = vst [vmem:[%s4486_s18 + $0x1b0] sm:$0xff] %v1510_v33  ;;  %v1512_v50 = vadd.f32 %v1511_v17, %v1303_v4  ;;  %v3338_v4 = vld [vmem:[%s3784_s23 + $0xc8] sm:$0xff]  ;;  %v811_v33 = vld [vmem:[#allocation5 + $0xe00] sm:$0xff] }
 0x1f8   : > { %2516 = vmatprep.mubr.f32.mxu1 %v3335_v31  ;;  %2308 = vmatmul.mubr.f32.gmra.mxu0 %v3336_v53  ;;  %v3340_v5 = vld [vmem:[%s3784_s23 + $0xc0] sm:$0xff]  ;;  %v3341_v31 = vld [vmem:[%s3784_s23 + $0xd0] sm:$0xff] }
 0x1f9   : > { %2517 = vmatmul.mubr.f32.gmra.mxu1 %v3337_v9  ;;  %2651 = vmatprep.subr.mxu0 %v818_v21  ;;  %2907 = vst [vmem:[%s4486_s18 + $0x1b8] sm:$0xff] %v1512_v50  ;;  %v1515_v34 = vpop.f32.mrf.mxu0  ;;  %v5431_v53 = vld [vmem:[#allocation20_spill] sm:$0xff] }
 0x1fa   : > { %3119 = vmatprep.subr.mxu1 %v818_v21  ;;  %v4618_v49 = vpop.f32.mrf.mxu1  ;;  %2652 = vmatpush1.msra.mxu0 %v817_v0  ;;  %v1516_v62 = vadd.f32 %v1515_v34, %v5430_v46  ;;  %v1315_v9 = vadd.f32 %v5431_v53, %v1106_v27  ;;  %v3343_v46 = vld [vmem:[%s3784_s23 + $0x108] sm:$0xff]  ;;  %v799_v27 = vld [vmem:[#allocation5 + $0xda0] sm:$0xff] }
 0x1fb   : > { %3151 = vmatpush1.msra.mxu1 %v817_v0  ;;  %2313 = vmatprep.mubr.f32.mxu0 %v3338_v4  ;;  %v1517_v21 = vpop.f32.mrf.mxu0 }
 0x1fc   : > { %2522 = vmatprep.mubr.f32.mxu1 %v3339_v47  ;;  %v4626_v17 = vpop.f32.mrf.mxu1  ;;  %2653 = vmatprep.subr.mxu0 %v812_v51  ;;  %2912 = vst [vmem:[%s4486_s18 + $0x1e0] sm:$0xff] %v1516_v62  ;;  %v1518_v39 = vadd.f32 %v1517_v21, %v1309_v35  ;;  %v3342_v35 = vld [vmem:[%s3784_s23 + $0xf8] sm:$0xff]  ;;  %v800_v62 = vld [vmem:[#allocation5 + $0xda8] sm:$0xff]  ;;  %v3345_v21 = vld [vmem:[%s3784_s23 + $0x100] sm:$0xff] }
 0x1fd   : > { %3120 = vmatprep.subr.mxu1 %v812_v51  ;;  %2314 = vmatmul.mubr.f32.gmra.mxu0 %v3340_v5  ;;  %v1112_v51 = vadd.f32 %v4337_v48, %v4449_v11  ;;  %v5432_v5 = vld [vmem:[#allocation21_spill] sm:$0xff] }
 0x1fe   : > { %2523 = vmatmul.mubr.f32.gmra.mxu1 %v3341_v31  ;;  %2654 = vmatpush1.msra.mxu0 %v811_v33  ;;  %2913 = vst [vmem:[%s4486_s18 + $0x1e8] sm:$0xff] %v1518_v39  ;;  %v1521_v0 = vpop.f32.mrf.mxu0 }
 0x1ff   : > { %3152 = vmatpush1.msra.mxu1 %v811_v33  ;;  %v4632_v50 = vpop.f32.mrf.mxu1  ;;  %2655 = vmatprep.subr.mxu0 %v806_v15  ;;  %v1522_v34 = vadd.f32 %v1521_v0, %v4332_v26  ;;  %v3344_v33 = vld [vmem:[%s3784_s23 + $0xf0] sm:$0xff]  ;;  %v1321_v39 = vadd.f32 %v4339_v43, %v1112_v51  ;;  %v794_v0 = vld [vmem:[#allocation5 + $0xd78] sm:$0xff] }
 0x200   : > { %3121 = vmatprep.subr.mxu1 %v806_v15  ;;  %2319 = vmatprep.mubr.f32.mxu0 %v3342_v35  ;;  %v1523_v4 = vpop.f32.mrf.mxu0  ;;  %v3347_v43 = vld [vmem:[%s3784_s23 + $0x138] sm:$0xff]  ;;  %v793_v51 = vld [vmem:[#allocation5 + $0xd70] sm:$0xff] }
 0x201   : > { %2528 = vmatprep.mubr.f32.mxu1 %v3343_v46  ;;  %v4640_v47 = vpop.f32.mrf.mxu1  ;;  %2656 = vmatpush1.msra.mxu0 %v805_v8  ;;  %2918 = vst [vmem:[%s4486_s18 + $0x210] sm:$0xff] %v1522_v34  ;;  %v1524_v48 = vadd.f32 %v1523_v4, %v1315_v9  ;;  %v3346_v34 = vld [vmem:[%s3784_s23 + $0x128] sm:$0xff]  ;;  %v3348_v46 = vld [vmem:[%s3784_s23 + $0x120] sm:$0xff] }
 0x202   : > { %3153 = vmatpush1.msra.mxu1 %v805_v8  ;;  %2320 = vmatmul.mubr.f32.gmra.mxu0 %v3344_v33  ;;  %v1527_v26 = vpop.f32.mrf.mxu0  ;;  %v1118_v8 = vadd.f32 %v4350_v55, %v4449_v11  ;;  %v788_v55 = vld [vmem:[#allocation5 + $0xd48] sm:$0xff]  ;;  %v5433_v33 = vld [vmem:[#allocation22_spill] sm:$0xff] }
 0x203   : > { %2529 = vmatmul.mubr.f32.gmra.mxu1 %v3345_v21  ;;  %v4645_v15 = vpop.f32.mrf.mxu1  ;;  %2657 = vmatprep.subr.mxu0 %v800_v62  ;;  %2919 = vst [vmem:[%s4486_s18 + $0x218] sm:$0xff] %v1524_v48  ;;  %v1528_v31 = vadd.f32 %v1527_v26, %v5432_v5  ;;  %v1124_v26 = vadd.f32 %v4361_v36, %v4449_v11  ;;  %v3351_v5 = vld [vmem:[%s3784_s23 + $0x168] sm:$0xff]  ;;  %v781_v36 = vld [vmem:[#allocation5 + $0xd10] sm:$0xff] }
 0x204   : > { %3122 = vmatprep.subr.mxu1 %v800_v62  ;;  %2658 = vmatpush1.msra.mxu0 %v799_v27  ;;  %v1529_v53 = vpop.f32.mrf.mxu0  ;;  %v3349_v62 = vld [vmem:[%s3784_s23 + $0x130] sm:$0xff]  ;;  %v1327_v48 = vadd.f32 %v4352_v63, %v1118_v8  ;;  %v782_v63 = vld [vmem:[#allocation5 + $0xd18] sm:$0xff] }
 0x205   : > { %3154 = vmatpush1.msra.mxu1 %v799_v27  ;;  %v4652_v9 = vpop.f32.mrf.mxu1  ;;  %2325 = vmatprep.mubr.f32.mxu0 %v3346_v34  ;;  %2924 = vst [vmem:[%s4486_s18 + $0x240] sm:$0xff] %v1528_v31  ;;  %v1530_v35 = vadd.f32 %v1529_v53, %v1321_v39  ;;  %v3350_v39 = vld [vmem:[%s3784_s23 + $0x158] sm:$0xff]  ;;  %v787_v31 = vld [vmem:[#allocation5 + $0xd40] sm:$0xff]  ;;  %v3352_v34 = vld [vmem:[%s3784_s23 + $0x150] sm:$0xff] }
 0x206   : > { %2534 = vmatprep.mubr.f32.mxu1 %v3347_v43  ;;  %2326 = vmatmul.mubr.f32.gmra.mxu0 %v3348_v46  ;;  %v3353_v43 = vld [vmem:[%s3784_s23 + $0x160] sm:$0xff] }
 0x207   : > { %2535 = vmatmul.mubr.f32.gmra.mxu1 %v3349_v62  ;;  %2659 = vmatprep.subr.mxu0 %v794_v0  ;;  %2925 = vst [vmem:[%s4486_s18 + $0x248] sm:$0xff] %v1530_v35  ;;  %v1533_v4 = vpop.f32.mrf.mxu0  ;;  %v5434_v46 = vld [vmem:[#allocation23_spill] sm:$0xff] }
 0x208   : > { %3123 = vmatprep.subr.mxu1 %v794_v0  ;;  %v4660_v27 = vpop.f32.mrf.mxu1  ;;  %2660 = vmatpush1.msra.mxu0 %v793_v51  ;;  %v1534_v21 = vadd.f32 %v1533_v4, %v5433_v33  ;;  %v1333_v62 = vadd.f32 %v5434_v46, %v1124_v26  ;;  %v3355_v33 = vld [vmem:[%s3784_s23 + $0x198] sm:$0xff]  ;;  %v775_v26 = vld [vmem:[#allocation5 + $0xce0] sm:$0xff] }
 0x209   : > { %3155 = vmatpush1.msra.mxu1 %v793_v51  ;;  %2331 = vmatprep.mubr.f32.mxu0 %v3350_v39  ;;  %v1535_v0 = vpop.f32.mrf.mxu0 }
 0x20a   : > { %2540 = vmatprep.mubr.f32.mxu1 %v3351_v5  ;;  %v4668_v53 = vpop.f32.mrf.mxu1  ;;  %2661 = vmatprep.subr.mxu0 %v788_v55  ;;  %2930 = vst [vmem:[%s4486_s18 + $0x270] sm:$0xff] %v1534_v21  ;;  %v1536_v8 = vadd.f32 %v1535_v0, %v1327_v48  ;;  %v3354_v48 = vld [vmem:[%s3784_s23 + $0x188] sm:$0xff]  ;;  %v3357_v0 = vld [vmem:[%s3784_s23 + $0x190] sm:$0xff] }
 0x20b   : > { %3124 = vmatprep.subr.mxu1 %v788_v55  ;;  %2332 = vmatmul.mubr.f32.gmra.mxu0 %v3352_v34  ;;  %v1130_v55 = vadd.f32 %v4370_v42, %v4449_v11  ;;  %v776_v21 = vld [vmem:[#allocation5 + $0xce8] sm:$0xff] }
 0x20c   : > { %2541 = vmatmul.mubr.f32.gmra.mxu1 %v3353_v43  ;;  %2662 = vmatpush1.msra.mxu0 %v787_v31  ;;  %2931 = vst [vmem:[%s4486_s18 + $0x278] sm:$0xff] %v1536_v8  ;;  %v1539_v51 = vpop.f32.mrf.mxu0  ;;  %v5435_v34 = vld [vmem:[#allocation24_spill] sm:$0xff] }
 0x20d   : > { %3156 = vmatpush1.msra.mxu1 %v787_v31  ;;  %v4674_v35 = vpop.f32.mrf.mxu1  ;;  %2663 = vmatprep.subr.mxu0 %v782_v63  ;;  %v1540_v4 = vadd.f32 %v1539_v51, %v4365_v16  ;;  %v3356_v31 = vld [vmem:[%s3784_s23 + $0x180] sm:$0xff]  ;;  %v1339_v8 = vadd.f32 %v4372_v52, %v1130_v55  ;;  %v770_v51 = vld [vmem:[#allocation5 + $0xcb8] sm:$0xff]  ;;  %v3359_v52 = vld [vmem:[%s3784_s23 + $0x1c8] sm:$0xff] }
 0x20e   : > { %3125 = vmatprep.subr.mxu1 %v782_v63  ;;  %2337 = vmatprep.mubr.f32.mxu0 %v3354_v48  ;;  %v1541_v39 = vpop.f32.mrf.mxu0  ;;  %v769_v55 = vld [vmem:[#allocation5 + $0xcb0] sm:$0xff] }
 0x20f   : > { %2546 = vmatprep.mubr.f32.mxu1 %v3355_v33  ;;  %v4682_v5 = vpop.f32.mrf.mxu1  ;;  %2664 = vmatpush1.msra.mxu0 %v781_v36  ;;  %2936 = vst [vmem:[%s4486_s18 + $0x2a0] sm:$0xff] %v1540_v4  ;;  %v1542_v42 = vadd.f32 %v1541_v39, %v1333_v62  ;;  %v3358_v4 = vld [vmem:[%s3784_s23 + $0x1b8] sm:$0xff]  ;;  %v3360_v33 = vld [vmem:[%s3784_s23 + $0x1b0] sm:$0xff] }
 0x210   : > { %3157 = vmatpush1.msra.mxu1 %v781_v36  ;;  %2338 = vmatmul.mubr.f32.gmra.mxu0 %v3356_v31  ;;  %v1545_v16 = vpop.f32.mrf.mxu0  ;;  %v1136_v36 = vadd.f32 %v4383_v41, %v4449_v11  ;;  %v764_v41 = vld [vmem:[#allocation5 + $0xc88] sm:$0xff] }
 0x211   : > { %2547 = vmatmul.mubr.f32.gmra.mxu1 %v3357_v0  ;;  %v4687_v63 = vpop.f32.mrf.mxu1  ;;  %2665 = vmatprep.subr.mxu0 %v776_v21  ;;  %2937 = vst [vmem:[%s4486_s18 + $0x2a8] sm:$0xff] %v1542_v42  ;;  %v1546_v43 = vadd.f32 %v1545_v16, %v5435_v34  ;;  %v5436_v31 = vld [vmem:[#allocation25_spill] sm:$0xff]  ;;  %v1142_v16 = vadd.f32 %v4394_v1, %v4449_v11  ;;  %v3363_v34 = vld [vmem:[%s3784_s23 + $0x1f8] sm:$0xff] }
 0x212   : > { %3126 = vmatprep.subr.mxu1 %v776_v21  ;;  %2666 = vmatpush1.msra.mxu0 %v775_v26  ;;  %v1547_v46 = vpop.f32.mrf.mxu0  ;;  %v3361_v21 = vld [vmem:[%s3784_s23 + $0x1c0] sm:$0xff]  ;;  %v1345_v42 = vadd.f32 %v4385_v28, %v1136_v36  ;;  %v758_v28 = vld [vmem:[#allocation5 + $0xc58] sm:$0xff]  ;;  %v757_v1 = vld [vmem:[#allocation5 + $0xc50] sm:$0xff] }
 0x213   : > { %3158 = vmatpush1.msra.mxu1 %v775_v26  ;;  %v4694_v62 = vpop.f32.mrf.mxu1  ;;  %2343 = vmatprep.mubr.f32.mxu0 %v3358_v4  ;;  %2942 = vst [vmem:[%s4486_s18 + $0x2d0] sm:$0xff] %v1546_v43  ;;  %v1548_v48 = vadd.f32 %v1547_v46, %v1339_v8  ;;  %v3362_v8 = vld [vmem:[%s3784_s23 + $0x1e8] sm:$0xff]  ;;  %v763_v43 = vld [vmem:[#allocation5 + $0xc80] sm:$0xff] }
 0x214   : > { %2552 = vmatprep.mubr.f32.mxu1 %v3359_v52  ;;  %2344 = vmatmul.mubr.f32.gmra.mxu0 %v3360_v33  ;;  %v3364_v4 = vld [vmem:[%s3784_s23 + $0x1e0] sm:$0xff]  ;;  %v3365_v52 = vld [vmem:[%s3784_s23 + $0x1f0] sm:$0xff] }
 0x215   : > { %2553 = vmatmul.mubr.f32.gmra.mxu1 %v3361_v21  ;;  %2667 = vmatprep.subr.mxu0 %v770_v51  ;;  %2943 = vst [vmem:[%s4486_s18 + $0x2d8] sm:$0xff] %v1548_v48  ;;  %v1551_v39 = vpop.f32.mrf.mxu0  ;;  %v5437_v33 = vld [vmem:[#allocation26_spill] sm:$0xff] }
 0x216   : > { %3127 = vmatprep.subr.mxu1 %v770_v51  ;;  %v4702_v26 = vpop.f32.mrf.mxu1  ;;  %2668 = vmatpush1.msra.mxu0 %v769_v55  ;;  %v1552_v0 = vadd.f32 %v1551_v39, %v5436_v31  ;;  %v1351_v21 = vadd.f32 %v5437_v33, %v1142_v16  ;;  %v3367_v31 = vld [vmem:[%s3784_s23 + $0x228] sm:$0xff]  ;;  %v751_v16 = vld [vmem:[#allocation5 + $0xc20] sm:$0xff] }
 0x217   : > { %3159 = vmatpush1.msra.mxu1 %v769_v55  ;;  %2349 = vmatprep.mubr.f32.mxu0 %v3362_v8  ;;  %v1553_v51 = vpop.f32.mrf.mxu0 }
 0x218   : > { %2558 = vmatprep.mubr.f32.mxu1 %v3363_v34  ;;  %v4710_v46 = vpop.f32.mrf.mxu1  ;;  %2669 = vmatprep.subr.mxu0 %v764_v41  ;;  %2948 = vst [vmem:[%s4486_s18 + $0x300] sm:$0xff] %v1552_v0  ;;  %v1554_v36 = vadd.f32 %v1553_v51, %v1345_v42  ;;  %v3366_v42 = vld [vmem:[%s3784_s23 + $0x218] sm:$0xff]  ;;  %v752_v0 = vld [vmem:[#allocation5 + $0xc28] sm:$0xff]  ;;  %v3369_v51 = vld [vmem:[%s3784_s23 + $0x220] sm:$0xff] }
 0x219   : > { %3128 = vmatprep.subr.mxu1 %v764_v41  ;;  %2350 = vmatmul.mubr.f32.gmra.mxu0 %v3364_v4  ;;  %v1148_v41 = vadd.f32 %v4403_v24, %v4449_v11  ;;  %v5438_v4 = vld [vmem:[#allocation27_spill] sm:$0xff] }
 0x21a   : > { %2559 = vmatmul.mubr.f32.gmra.mxu1 %v3365_v52  ;;  %2670 = vmatpush1.msra.mxu0 %v763_v43  ;;  %2949 = vst [vmem:[%s4486_s18 + $0x308] sm:$0xff] %v1554_v36  ;;  %v1557_v55 = vpop.f32.mrf.mxu0 }
 0x21b   : > { %3160 = vmatpush1.msra.mxu1 %v763_v43  ;;  %v4716_v48 = vpop.f32.mrf.mxu1  ;;  %2671 = vmatprep.subr.mxu0 %v758_v28  ;;  %v1558_v39 = vadd.f32 %v1557_v55, %v4398_v22  ;;  %v3368_v43 = vld [vmem:[%s3784_s23 + $0x210] sm:$0xff]  ;;  %v1357_v36 = vadd.f32 %v4405_v12, %v1148_v41  ;;  %v938_v55 = vld [vmem:[#allocation5 + $0x11f8] sm:$0xff] }
 0x21c   : > { %3129 = vmatprep.subr.mxu1 %v758_v28  ;;  %2355 = vmatprep.mubr.f32.mxu0 %v3366_v42  ;;  %v1559_v8 = vpop.f32.mrf.mxu0  ;;  %v3371_v12 = vld [vmem:[%s3784_s23 + $0x258] sm:$0xff]  ;;  %v937_v41 = vld [vmem:[#allocation5 + $0x11f0] sm:$0xff] }
 0x21d   : > { %2564 = vmatprep.mubr.f32.mxu1 %v3367_v31  ;;  %v4724_v34 = vpop.f32.mrf.mxu1  ;;  %2672 = vmatpush1.msra.mxu0 %v757_v1  ;;  %2954 = vst [vmem:[%s4486_s18 + $0x330] sm:$0xff] %v1558_v39  ;;  %v1560_v24 = vadd.f32 %v1559_v8, %v1351_v21  ;;  %v3370_v39 = vld [vmem:[%s3784_s23 + $0x248] sm:$0xff]  ;;  %v3372_v31 = vld [vmem:[%s3784_s23 + $0x240] sm:$0xff] }
 0x21e   : > { %3161 = vmatpush1.msra.mxu1 %v757_v1  ;;  %2356 = vmatmul.mubr.f32.gmra.mxu0 %v3368_v43  ;;  %v1563_v22 = vpop.f32.mrf.mxu0  ;;  %v1154_v1 = vadd.f32 %v4416_v14, %v4449_v11  ;;  %v932_v14 = vld [vmem:[#allocation5 + $0x11c8] sm:$0xff] }
 0x21f   : > { %2565 = vmatmul.mubr.f32.gmra.mxu1 %v3369_v51  ;;  %v4729_v28 = vpop.f32.mrf.mxu1  ;;  %2673 = vmatprep.subr.mxu0 %v752_v0  ;;  %2955 = vst [vmem:[%s4486_s18 + $0x338] sm:$0xff] %v1560_v24  ;;  %v1564_v52 = vadd.f32 %v1563_v22, %v5438_v4  ;;  %v5439_v43 = vld [vmem:[#allocation28_spill] sm:$0xff]  ;;  %v1160_v22 = vadd.f32 %v4427_v37, %v4449_v11  ;;  %v925_v37 = vld [vmem:[#allocation5 + $0x1190] sm:$0xff] }
 0x220   : > { %3130 = vmatprep.subr.mxu1 %v752_v0  ;;  %2674 = vmatpush1.msra.mxu0 %v751_v16  ;;  %v1565_v33 = vpop.f32.mrf.mxu0  ;;  %v3373_v0 = vld [vmem:[%s3784_s23 + $0x250] sm:$0xff]  ;;  %v1363_v24 = vadd.f32 %v4418_v56, %v1154_v1  ;;  %v3375_v4 = vld [vmem:[%s3784_s23 + $0x288] sm:$0xff]  ;;  %v926_v56 = vld [vmem:[#allocation5 + $0x1198] sm:$0xff] }
 0x221   : > { %3162 = vmatpush1.msra.mxu1 %v751_v16  ;;  %v4736_v21 = vpop.f32.mrf.mxu1  ;;  %2361 = vmatprep.mubr.f32.mxu0 %v3370_v39  ;;  %2960 = vst [vmem:[%s4486_s18 + $0x360] sm:$0xff] %v1564_v52  ;;  %v1566_v42 = vadd.f32 %v1565_v33, %v1357_v36  ;;  %v3374_v36 = vld [vmem:[%s3784_s23 + $0x278] sm:$0xff]  ;;  %v931_v52 = vld [vmem:[#allocation5 + $0x11c0] sm:$0xff]  ;;  %v3376_v39 = vld [vmem:[%s3784_s23 + $0x270] sm:$0xff] }
 0x222   : > { %2570 = vmatprep.mubr.f32.mxu1 %v3371_v12  ;;  %2362 = vmatmul.mubr.f32.gmra.mxu0 %v3372_v31  ;;  %v3377_v12 = vld [vmem:[%s3784_s23 + $0x280] sm:$0xff]  ;;  %v1369_v31 = vadd.f32 %v4429_v40, %v1160_v22 }
 0x223   : > { %2571 = vmatmul.mubr.f32.gmra.mxu1 %v3373_v0  ;;  %2675 = vmatprep.subr.mxu0 %v938_v55  ;;  %2961 = vst [vmem:[%s4486_s18 + $0x368] sm:$0xff] %v1566_v42  ;;  %v1569_v8 = vpop.f32.mrf.mxu0  ;;  %v5440_v0 = vld [vmem:[#allocation30_spill] sm:$0xff]  ;;  %v919_v40 = vld [vmem:[#allocation5 + $0x1160] sm:$0xff] }
 0x224   : > { %3131 = vmatprep.subr.mxu1 %v938_v55  ;;  %v4744_v16 = vpop.f32.mrf.mxu1  ;;  %2676 = vmatpush2.msra.mxu0 %v937_v41  ;;  %v1570_v51 = vadd.f32 %v1569_v8, %v5439_v43  ;;  %v5441_v8 = vld [vmem:[#allocation29_spill] sm:$0xff] }
 0x225   : > { %3163 = vmatpush2.msra.mxu1 %v937_v41  ;;  %2367 = vmatprep.mubr.f32.mxu0 %v3374_v36  ;;  %v1571_v55 = vpop.f32.mrf.mxu0  ;;  %v3378_v43 = vld [vmem:[%s3784_s23 + $0x2a8] sm:$0xff] }
 0x226   : > { %2576 = vmatprep.mubr.f32.mxu1 %v3375_v4  ;;  %v4752_v33 = vpop.f32.mrf.mxu1  ;;  %2677 = vmatprep.subr.mxu0 %v932_v14  ;;  %2966 = vst [vmem:[%s4486_s18 + $0x390] sm:$0xff] %v1570_v51  ;;  %v1572_v1 = vadd.f32 %v1571_v55, %v1363_v24  ;;  %v3379_v51 = vld [vmem:[%s3784_s23 + $0x2b8] sm:$0xff]  ;;  %v920_v36 = vld [vmem:[#allocation5 + $0x1168] sm:$0xff]  ;;  %v3380_v55 = vld [vmem:[%s3784_s23 + $0x2a0] sm:$0xff] }
 0x227   : > { %3132 = vmatprep.subr.mxu1 %v932_v14  ;;  %2368 = vmatmul.mubr.f32.gmra.mxu0 %v3376_v39  ;;  %v1166_v14 = vadd.f32 %v5440_v0, %v4449_v11 }
 0x228   : > { %2577 = vmatmul.mubr.f32.gmra.mxu1 %v3377_v12  ;;  %2678 = vmatpush2.msra.mxu0 %v931_v52  ;;  %2967 = vst [vmem:[%s4486_s18 + $0x398] sm:$0xff] %v1572_v1  ;;  %v1575_v41 = vpop.f32.mrf.mxu0  ;;  %v5442_v12 = vld [vmem:[#allocation31_spill] sm:$0xff] }
 0x229   : > { %3164 = vmatpush2.msra.mxu1 %v931_v52  ;;  %v4758_v42 = vpop.f32.mrf.mxu1  ;;  %2679 = vmatprep.subr.mxu0 %v926_v56  ;;  %v1576_v24 = vadd.f32 %v1575_v41, %v5441_v8  ;;  %v1375_v41 = vadd.f32 %v5442_v12, %v1166_v14  ;;  %v3383_v14 = vld [vmem:[%s3784_s23 + $0x2e8] sm:$0xff] }
 0x22a   : > { %3133 = vmatprep.subr.mxu1 %v926_v56  ;;  %2373 = vmatprep.mubr.f32.mxu0 %v3378_v43  ;;  %v1577_v4 = vpop.f32.mrf.mxu0  ;;  %v3381_v56 = vld [vmem:[%s3784_s23 + $0x2b0] sm:$0xff]  ;;  %v908_v12 = vld [vmem:[#allocation5 + $0x1108] sm:$0xff] }
 0x22b   : > { %2582 = vmatprep.mubr.f32.mxu1 %v3379_v51  ;;  %v4766_v52 = vpop.f32.mrf.mxu1  ;;  %2680 = vmatpush2.msra.mxu0 %v925_v37  ;;  %2972 = vst [vmem:[%s4486_s18 + $0x3c0] sm:$0xff] %v1576_v24  ;;  %v1578_v22 = vadd.f32 %v1577_v4, %v1369_v31  ;;  %v5444_v31 = vld [vmem:[#allocation33_spill] sm:$0xff]  ;;  %v914_v24 = vld [vmem:[#allocation5 + $0x1138] sm:$0xff] }
 0x22c   : > { %3165 = vmatpush2.msra.mxu1 %v925_v37  ;;  %2374 = vmatmul.mubr.f32.gmra.mxu0 %v3380_v55  ;;  %v1581_v1 = vpop.f32.mrf.mxu0  ;;  %v5443_v37 = vld [vmem:[#allocation32_spill] sm:$0xff]  ;;  %v1172_v8 = vadd.f32 %v5444_v31, %v4449_v11  ;;  %v3382_v4 = vld [vmem:[%s3784_s23 + $0x2d8] sm:$0xff]  ;;  %v3384_v55 = vld [vmem:[%s3784_s23 + $0x2d0] sm:$0xff] }
 0x22d   : > { %2583 = vmatmul.mubr.f32.gmra.mxu1 %v3381_v56  ;;  %v4771_v39 = vpop.f32.mrf.mxu1  ;;  %2681 = vmatprep.subr.mxu0 %v920_v36  ;;  %2973 = vst [vmem:[%s4486_s18 + $0x3c8] sm:$0xff] %v1578_v22  ;;  %v1582_v0 = vadd.f32 %v1581_v1, %v5443_v37  ;;  %v3385_v56 = vld [vmem:[%s3784_s23 + $0x2e0] sm:$0xff] }
 0x22e   : > { %3134 = vmatprep.subr.mxu1 %v920_v36  ;;  %2682 = vmatpush2.msra.mxu0 %v919_v40  ;;  %v1583_v43 = vpop.f32.mrf.mxu0  ;;  %v913_v36 = vld [vmem:[#allocation5 + $0x1130] sm:$0xff]  ;;  %v5445_v1 = vld [vmem:[#allocation12_spill] sm:$0xff] }
 0x22f   : > { %3166 = vmatpush2.msra.mxu1 %v919_v40  ;;  %v4778_v51 = vpop.f32.mrf.mxu1  ;;  %2379 = vmatprep.mubr.f32.mxu0 %v3382_v4  ;;  %2978 = vst [vmem:[%s4486_s18 + $0x3f0] sm:$0xff] %v1582_v0  ;;  %v1584_v22 = vadd.f32 %v1583_v43, %v1375_v41  ;;  %v951_v40 = vsub.s32 2, %v5445_v1  ;;  %v1381_v4 = vadd.f32 %v4455_v23, %v1172_v8  ;;  %v5446_v41 = vld [vmem:[#allocation34_spill] sm:$0xff] }
 0x230   : > { %2588 = vmatprep.mubr.f32.mxu1 %v3383_v14  ;;  %2380 = vmatmul.mubr.f32.gmra.mxu0 %v3384_v55  ;;  %v1178_v43 = vadd.f32 %v4466_v54, %v4449_v11  ;;  %v955_v14 = vsub.s32 3, %v5445_v1  ;;  %v3386_v55 = vld [vmem:[%s3784_s23 + $0x308] sm:$0xff]  ;;  %v902_v8 = vld [vmem:[#allocation5 + $0x10d8] sm:$0xff]  ;;  %v3389_v54 = vld [vmem:[%s3784_s23 + $0x300] sm:$0xff] }
 0x231   : > { %2589 = vmatmul.mubr.f32.gmra.mxu1 %v3385_v56  ;;  %2683 = vmatprep.subr.mxu0 %v914_v24  ;;  %2979 = vst [vmem:[%s4486_s18 + $0x3f8] sm:$0xff] %v1584_v22  ;;  %v1587_v37 = vpop.f32.mrf.mxu0  ;;  %v907_v22 = vld [vmem:[#allocation5 + $0x1100] sm:$0xff] }
 0x232   : > { %3135 = vmatprep.subr.mxu1 %v914_v24  ;;  %v4787_v31 = vpop.f32.mrf.mxu1  ;;  %2684 = vmatpush2.msra.mxu0 %v913_v36  ;;  %v1588_v0 = vadd.f32 %v1587_v37, %v5446_v41  ;;  %v3387_v24 = vld [vmem:[%s3784_s23 + $0x318] sm:$0xff]  ;;  %v4799_v37 = vld [vmem:[#allocation7] sm:$0x3f]  ;;  %v3390_v41 = vld [vmem:[%s3784_s23 + $0x310] sm:$0xff] }
 0x233   : > { %3167 = vmatpush2.msra.mxu1 %v913_v36  ;;  %2385 = vmatprep.mubr.f32.mxu0 %v3386_v55  ;;  %v1589_v56 = vpop.f32.mrf.mxu0  ;;  %5447 = vst [vmem:[#allocation13_spill] sm:$0xff] %v4799_v37  ;;  %v4802_v11 = vrot.slane %v4799_v37, %v951_v40  ;;  %v901_v55 = vld [vmem:[#allocation5 + $0x10d0] sm:$0xff] }
 0x234   : > { %2594 = vmatprep.mubr.f32.mxu1 %v3387_v24  ;;  %v4796_v23 = vpop.f32.mrf.mxu1  ;;  %2685 = vmatprep.subr.mxu0 %v908_v12  ;;  %2984 = vst [vmem:[%s4486_s18 + $0x420] sm:$0xff] %v1588_v0  ;;  %v1590_v36 = vadd.f32 %v1589_v56, %v1381_v4  ;;  %v1387_v4 = vadd.f32 %v4468_v45, %v1178_v43  ;;  %v3391_v56 = vld [vmem:[%s3784_s23 + $0x338] sm:$0xff] }
 0x235   : > { %3136 = vmatprep.subr.mxu1 %v908_v12  ;;  %2386 = vmatmul.mubr.f32.gmra.mxu0 %v3389_v54  ;;  %v4811_v0 = vrot.slane %v4799_v37, %v955_v14  ;;  %v5450_v45 = vld [vmem:[#allocation35_spill] sm:$0xff]  ;;  %v3393_v37 = vld [vmem:[%s3784_s23 + $0x330] sm:$0xff] }
 0x236   : > { %2595 = vmatmul.mubr.f32.gmra.mxu1 %v3390_v41  ;;  %2686 = vmatpush2.msra.mxu0 %v907_v22  ;;  %2985 = vst [vmem:[%s4486_s18 + $0x428] sm:$0xff] %v1590_v36  ;;  %v1593_v24 = vpop.f32.mrf.mxu0  ;;  %v896_v36 = vld [vmem:[#allocation5 + $0x10a8] sm:$0xff]  ;;  %v1665_v43 = vadd.f32 %v5450_v45, %v4802_v11  ;;  %v895_v14 = vld [vmem:[#allocation5 + $0x10a0] sm:$0xff] }
 0x237   : > { %3168 = vmatpush2.msra.mxu1 %v907_v22  ;;  %v4807_v12 = vpop.f32.mrf.mxu1  ;;  %2687 = vmatprep.subr.mxu0 %v902_v8  ;;  %v1594_v40 = vadd.f32 %v1593_v24, %v4470_v60  ;;  %v3392_v22 = vld [vmem:[%s3784_s23 + $0x348] sm:$0xff]  ;;  %v3394_v60 = vld [vmem:[%s3784_s23 + $0x340] sm:$0xff] }
 0x238   : > { %5448 = vst [vmem:[#allocation14_spill] sm:$0xff] %v4807_v12  ;;  %3137 = vmatprep.subr.mxu1 %v902_v8  ;;  %2391 = vmatprep.mubr.f32.mxu0 %v3391_v56  ;;  %v1595_v54 = vpop.f32.mrf.mxu0 }
 0x239   : > { %2600 = vmatprep.mubr.f32.mxu1 %v3392_v22  ;;  %v4816_v41 = vpop.f32.mrf.mxu1  ;;  %2688 = vmatpush2.msra.mxu0 %v901_v55  ;;  %2990 = vst [vmem:[%s4486_s18 + $0x450] sm:$0xff] %v1594_v40  ;;  %v1596_v8 = vadd.f32 %v1595_v54, %v1387_v4  ;;  %v1667_v22 = vadd.f32 %v4480_v29, %v4811_v0  ;;  %v3396_v54 = vld [vmem:[%s3784_s23 + $0x378] sm:$0xff] }
 0x23a   : > { %5449 = vst [vmem:[#allocation15_spill] sm:$0xff] %v4816_v41  ;;  %3169 = vmatpush2.msra.mxu1 %v901_v55  ;;  %2392 = vmatmul.mubr.f32.gmra.mxu0 %v3393_v37  ;;  %v1873_v24 = vpop.f32.mrf.mxu0  ;;  %v890_v55 = vld [vmem:[#allocation5 + $0x1078] sm:$0xff]  ;;  %v3395_v37 = vld [vmem:[%s3784_s23 + $0x368] sm:$0xff]  ;;  %v1671_v29 = vadd.f32 %v4492_v2, %v4802_v11 }
 0x23b   : > { %2601 = vmatmul.mubr.f32.gmra.mxu1 %v3394_v60  ;;  %v2082_v56 = vpop.f32.mrf.mxu1  ;;  %2689 = vmatprep.subr.mxu0 %v896_v36  ;;  %2991 = vst [vmem:[%s4486_s18 + $0x458] sm:$0xff] %v1596_v8  ;;  %v1874_v45 = vadd.f32 %v1873_v24, %v1665_v43  ;;  %v889_v60 = vld [vmem:[#allocation5 + $0x1070] sm:$0xff] }
 0x23c   : > { %3138 = vmatprep.subr.mxu1 %v896_v36  ;;  %2690 = vmatpush2.msra.mxu0 %v895_v14  ;;  %v1875_v4 = vpop.f32.mrf.mxu0  ;;  %v3397_v36 = vld [vmem:[%s3784_s23 + $0x360] sm:$0xff]  ;;  %v3398_v43 = vld [vmem:[%s3784_s23 + $0x370] sm:$0xff] }
 0x23d   : > { %3170 = vmatpush2.msra.mxu1 %v895_v14  ;;  %v2084_v40 = vpop.f32.mrf.mxu1  ;;  %2397 = vmatprep.mubr.f32.mxu0 %v3395_v37  ;;  %v2083_v41 = vadd.f32 %v2082_v56, %v1874_v45  ;;  %v1876_v12 = vadd.f32 %v1875_v4, %v1667_v22  ;;  %v884_v14 = vld [vmem:[#allocation5 + $0x1048] sm:$0xff]  ;;  %v1673_v56 = vadd.f32 %v4500_v57, %v4811_v0  ;;  %v3399_v22 = vld [vmem:[%s3784_s23 + $0x398] sm:$0xff]  ;;  %v883_v4 = vld [vmem:[#allocation5 + $0x1040] sm:$0xff] }
 0x23e   : > { %2606 = vmatprep.mubr.f32.mxu1 %v3396_v54  ;;  %2398 = vmatmul.mubr.f32.gmra.mxu0 %v3397_v36  ;;  %v3400_v45 = vld [vmem:[%s3784_s23 + $0x3a8] sm:$0xff]  ;;  %v1677_v57 = vadd.f32 %v4506_v7, %v4802_v11  ;;  %v877_v36 = vld [vmem:[#allocation5 + $0x1010] sm:$0xff] }
 0x23f   : > { %2607 = vmatmul.mubr.f32.gmra.mxu1 %v3398_v43  ;;  %2691 = vmatprep.subr.mxu0 %v890_v55  ;;  %2854 = vst [vmem:[%s4486_s18 + $0x10] sm:$0xff] %v2083_v41  ;;  %v2085_v8 = vadd.f32 %v2084_v40, %v1876_v12  ;;  %v1879_v24 = vpop.f32.mrf.mxu0  ;;  %v878_v12 = vld [vmem:[#allocation5 + $0x1018] sm:$0xff] }
 0x240   : > { %3139 = vmatprep.subr.mxu1 %v890_v55  ;;  %v2088_v37 = vpop.f32.mrf.mxu1  ;;  %2692 = vmatpush2.msra.mxu0 %v889_v60  ;;  %v1880_v2 = vadd.f32 %v1879_v24, %v1671_v29  ;;  %v3402_v29 = vld [vmem:[%s3784_s23 + $0x3a0] sm:$0xff]  ;;  %v1679_v24 = vadd.f32 %v4514_v10, %v4811_v0 }
 0x241   : > { %3171 = vmatpush2.msra.mxu1 %v889_v60  ;;  %2403 = vmatprep.mubr.f32.mxu0 %v3399_v22  ;;  %2855 = vst [vmem:[%s4486_s18 + $0x18] sm:$0xff] %v2085_v8  ;;  %v1881_v55 = vpop.f32.mrf.mxu0  ;;  %v3401_v60 = vld [vmem:[%s3784_s23 + $0x390] sm:$0xff]  ;;  %v871_v10 = vld [vmem:[#allocation5 + $0xfe0] sm:$0xff] }
 0x242   : > { %2612 = vmatprep.mubr.f32.mxu1 %v3400_v45  ;;  %v2090_v41 = vpop.f32.mrf.mxu1  ;;  %2693 = vmatprep.subr.mxu0 %v884_v14  ;;  %v2089_v40 = vadd.f32 %v2088_v37, %v1880_v2  ;;  %v1882_v54 = vadd.f32 %v1881_v55, %v1673_v56  ;;  %v3403_v37 = vld [vmem:[%s3784_s23 + $0x3c8] sm:$0xff]  ;;  %v3404_v56 = vld [vmem:[%s3784_s23 + $0x3d8] sm:$0xff] }
 0x243   : > { %3140 = vmatprep.subr.mxu1 %v884_v14  ;;  %2404 = vmatmul.mubr.f32.gmra.mxu0 %v3401_v60  ;;  %v872_v2 = vld [vmem:[#allocation5 + $0xfe8] sm:$0xff]  ;;  %v1685_v60 = vadd.f32 %v4526_v44, %v4811_v0 }
 0x244   : > { %2613 = vmatmul.mubr.f32.gmra.mxu1 %v3402_v29  ;;  %2694 = vmatpush2.msra.mxu0 %v883_v4  ;;  %2860 = vst [vmem:[%s4486_s18 + $0x40] sm:$0xff] %v2089_v40  ;;  %v2091_v43 = vadd.f32 %v2090_v41, %v1882_v54  ;;  %v1885_v8 = vpop.f32.mrf.mxu0  ;;  %v3406_v40 = vld [vmem:[%s3784_s23 + $0x3d0] sm:$0xff] }
 0x245   : > { %3172 = vmatpush2.msra.mxu1 %v883_v4  ;;  %v2094_v14 = vpop.f32.mrf.mxu1  ;;  %2695 = vmatprep.subr.mxu0 %v878_v12  ;;  %v1886_v7 = vadd.f32 %v1885_v8, %v1677_v57  ;;  %v1683_v4 = vadd.f32 %v4519_v59, %v4802_v11 }
 0x246   : > { %3141 = vmatprep.subr.mxu1 %v878_v12  ;;  %2409 = vmatprep.mubr.f32.mxu0 %v3403_v37  ;;  %2861 = vst [vmem:[%s4486_s18 + $0x48] sm:$0xff] %v2091_v43  ;;  %v1887_v22 = vpop.f32.mrf.mxu0  ;;  %v3405_v12 = vld [vmem:[%s3784_s23 + $0x3c0] sm:$0xff] }
 0x247   : > { %2618 = vmatprep.mubr.f32.mxu1 %v3404_v56  ;;  %v2096_v45 = vpop.f32.mrf.mxu1  ;;  %2696 = vmatpush2.msra.mxu0 %v877_v36  ;;  %v2095_v55 = vadd.f32 %v2094_v14, %v1886_v7  ;;  %v1888_v41 = vadd.f32 %v1887_v22, %v1679_v24  ;;  %v3407_v14 = vld [vmem:[%s3784_s23 + $0x3f8] sm:$0xff]  ;;  %v3408_v24 = vld [vmem:[%s3784_s23 + $0x408] sm:$0xff]  ;;  %v865_v7 = vld [vmem:[#allocation5 + $0xfb0] sm:$0xff]  ;;  %v1689_v56 = vadd.f32 %v4534_v25, %v4802_v11 }
 0x248   : > { %3173 = vmatpush2.msra.mxu1 %v877_v36  ;;  %2410 = vmatmul.mubr.f32.gmra.mxu0 %v3405_v12  ;;  %v1891_v54 = vpop.f32.mrf.mxu0  ;;  %v866_v36 = vld [vmem:[#allocation5 + $0xfb8] sm:$0xff]  ;;  %v3410_v22 = vld [vmem:[%s3784_s23 + $0x400] sm:$0xff]  ;;  %v3411_v12 = vld [vmem:[%s3784_s23 + $0x428] sm:$0xff] }
 0x249   : > { %2619 = vmatmul.mubr.f32.gmra.mxu1 %v3406_v40  ;;  %v2100_v57 = vpop.f32.mrf.mxu1  ;;  %2697 = vmatprep.subr.mxu0 %v872_v2  ;;  %2866 = vst [vmem:[%s4486_s18 + $0x70] sm:$0xff] %v2095_v55  ;;  %v2097_v59 = vadd.f32 %v2096_v45, %v1888_v41  ;;  %v1892_v29 = vadd.f32 %v1891_v54, %v1683_v4  ;;  %v860_v45 = vld [vmem:[#allocation5 + $0xf88] sm:$0xff]  ;;  %v3412_v40 = vld [vmem:[%s3784_s23 + $0x438] sm:$0xff]  ;;  %v859_v54 = vld [vmem:[#allocation5 + $0xf80] sm:$0xff] }
 0x24a   : > { %3142 = vmatprep.subr.mxu1 %v872_v2  ;;  %2698 = vmatpush2.msra.mxu0 %v871_v10  ;;  %v1893_v43 = vpop.f32.mrf.mxu0  ;;  %v3409_v2 = vld [vmem:[%s3784_s23 + $0x3f0] sm:$0xff]  ;;  %v1691_v41 = vadd.f32 %v4542_v32, %v4811_v0  ;;  %v1695_v32 = vadd.f32 %v4548_v3, %v4802_v11 }
 0x24b   : > { %3174 = vmatpush2.msra.mxu1 %v871_v10  ;;  %v2102_v8 = vpop.f32.mrf.mxu1  ;;  %2415 = vmatprep.mubr.f32.mxu0 %v3407_v14  ;;  %2867 = vst [vmem:[%s4486_s18 + $0x78] sm:$0xff] %v2097_v59  ;;  %v2101_v44 = vadd.f32 %v2100_v57, %v1892_v29  ;;  %v1894_v37 = vadd.f32 %v1893_v43, %v1685_v60  ;;  %v854_v59 = vld [vmem:[#allocation5 + $0xf58] sm:$0xff]  ;;  %v3413_v43 = vld [vmem:[%s3784_s23 + $0x420] sm:$0xff]  ;;  %v853_v14 = vld [vmem:[#allocation5 + $0xf50] sm:$0xff] }
 0x24c   : > { %2624 = vmatprep.mubr.f32.mxu1 %v3408_v24  ;;  %2416 = vmatmul.mubr.f32.gmra.mxu0 %v3409_v2  ;;  %v3416_v2 = vld [vmem:[%s3784_s23 + $0x468] sm:$0xff] }
 0x24d   : > { %2625 = vmatmul.mubr.f32.gmra.mxu1 %v3410_v22  ;;  %2699 = vmatprep.subr.mxu0 %v866_v36  ;;  %2872 = vst [vmem:[%s4486_s18 + $0xa0] sm:$0xff] %v2101_v44  ;;  %v2103_v4 = vadd.f32 %v2102_v8, %v1894_v37  ;;  %v1897_v10 = vpop.f32.mrf.mxu0  ;;  %v3414_v8 = vld [vmem:[%s3784_s23 + $0x430] sm:$0xff]  ;;  %v1697_v37 = vadd.f32 %v4556_v20, %v4811_v0  ;;  %v848_v22 = vld [vmem:[#allocation5 + $0xf28] sm:$0xff]  ;;  %v847_v20 = vld [vmem:[#allocation5 + $0xf20] sm:$0xff] }
 0x24e   : > { %3143 = vmatprep.subr.mxu1 %v866_v36  ;;  %v2106_v55 = vpop.f32.mrf.mxu1  ;;  %2700 = vmatpush2.msra.mxu0 %v865_v7  ;;  %v1898_v25 = vadd.f32 %v1897_v10, %v1689_v56  ;;  %v3415_v56 = vld [vmem:[%s3784_s23 + $0x458] sm:$0xff]  ;;  %v1701_v10 = vadd.f32 %v4561_v58, %v4802_v11 }
 0x24f   : > { %3175 = vmatpush2.msra.mxu1 %v865_v7  ;;  %2421 = vmatprep.mubr.f32.mxu0 %v3411_v12  ;;  %2873 = vst [vmem:[%s4486_s18 + $0xa8] sm:$0xff] %v2103_v4  ;;  %v1899_v57 = vpop.f32.mrf.mxu0  ;;  %v3418_v12 = vld [vmem:[%s3784_s23 + $0x460] sm:$0xff] }
 0x250   : > { %2630 = vmatprep.mubr.f32.mxu1 %v3412_v40  ;;  %v2108_v60 = vpop.f32.mrf.mxu1  ;;  %2701 = vmatprep.subr.mxu0 %v860_v45  ;;  %v2107_v29 = vadd.f32 %v2106_v55, %v1898_v25  ;;  %v1900_v36 = vadd.f32 %v1899_v57, %v1691_v41  ;;  %v3417_v25 = vld [vmem:[%s3784_s23 + $0x450] sm:$0xff]  ;;  %v1703_v57 = vadd.f32 %v4568_v30, %v4811_v0 }
 0x251   : > { %3144 = vmatprep.subr.mxu1 %v860_v45  ;;  %2422 = vmatmul.mubr.f32.gmra.mxu0 %v3413_v43 }
 0x252   : > { %2631 = vmatmul.mubr.f32.gmra.mxu1 %v3414_v8  ;;  %2702 = vmatpush2.msra.mxu0 %v859_v54  ;;  %2878 = vst [vmem:[%s4486_s18 + $0xd0] sm:$0xff] %v2107_v29  ;;  %v2109_v24 = vadd.f32 %v2108_v60, %v1900_v36  ;;  %v1903_v7 = vpop.f32.mrf.mxu0  ;;  %v3419_v36 = vld [vmem:[%s3784_s23 + $0x28] sm:$0xff]  ;;  %v1707_v8 = vadd.f32 %v4576_v18, %v4802_v11 }
 0x253   : > { %3176 = vmatpush2.msra.mxu1 %v859_v54  ;;  %v2112_v44 = vpop.f32.mrf.mxu1  ;;  %2703 = vmatprep.subr.mxu0 %v854_v59  ;;  %v1904_v3 = vadd.f32 %v1903_v7, %v1695_v32  ;;  %v3420_v32 = vld [vmem:[%s3784_s23 + $0x268] sm:$0xff]  ;;  %v3423_v7 = vld [vmem:[%s3784_s23 + $0x58] sm:$0xff] }
 0x254   : > { %3145 = vmatprep.subr.mxu1 %v854_v59  ;;  %2427 = vmatprep.mubr.f32.mxu0 %v3415_v56  ;;  %2879 = vst [vmem:[%s4486_s18 + $0xd8] sm:$0xff] %v2109_v24  ;;  %v1905_v45 = vpop.f32.mrf.mxu0  ;;  %v3422_v24 = vld [vmem:[%s3784_s23 + $0x260] sm:$0xff] }
 0x255   : > { %2636 = vmatprep.mubr.f32.mxu1 %v3416_v2  ;;  %v2114_v4 = vpop.f32.mrf.mxu1  ;;  %2704 = vmatpush2.msra.mxu0 %v853_v14  ;;  %v2113_v55 = vadd.f32 %v2112_v44, %v1904_v3  ;;  %v1906_v41 = vadd.f32 %v1905_v45, %v1697_v37  ;;  %v3424_v44 = vld [vmem:[%s3784_s23 + $0x298] sm:$0xff]  ;;  %v1709_v2 = vadd.f32 %v4584_v38, %v4811_v0  ;;  %v3428_v38 = vld [vmem:[%s3784_s23 + $0x2c8] sm:$0xff] }
 0x256   : > { %3177 = vmatpush2.msra.mxu1 %v853_v14  ;;  %2428 = vmatmul.mubr.f32.gmra.mxu0 %v3417_v25  ;;  %v1909_v40 = vpop.f32.mrf.mxu0  ;;  %v3421_v14 = vld [vmem:[%s3784_s23 + $0x20] sm:$0xff]  ;;  %v3427_v25 = vld [vmem:[%s3784_s23 + $0x88] sm:$0xff] }
 0x257   : > { %2637 = vmatmul.mubr.f32.gmra.mxu1 %v3418_v12  ;;  %v2118_v54 = vpop.f32.mrf.mxu1  ;;  %2705 = vmatprep.subr.mxu0 %v848_v22  ;;  %2884 = vst [vmem:[%s4486_s18 + $0x100] sm:$0xff] %v2113_v55  ;;  %v2115_v58 = vadd.f32 %v2114_v4, %v1906_v41  ;;  %v1910_v60 = vadd.f32 %v1909_v40, %v1701_v10  ;;  %v3425_v4 = vld [vmem:[%s3784_s23 + $0x50] sm:$0xff] }
 0x258   : > { %3146 = vmatprep.subr.mxu1 %v848_v22  ;;  %2706 = vmatpush2.msra.mxu0 %v847_v20  ;;  %v1911_v59 = vpop.f32.mrf.mxu0  ;;  %v3426_v10 = vld [vmem:[%s3784_s23 + $0x290] sm:$0xff]  ;;  %v1713_v41 = vadd.f32 %v4590_v19, %v4802_v11 }
 0x259   : > { %3178 = vmatpush2.msra.mxu1 %v847_v20  ;;  %v2120_v29 = vpop.f32.mrf.mxu1  ;;  %2707 = vmatprep.mubr.f32.mxu0 %v3419_v36  ;;  %2885 = vst [vmem:[%s4486_s18 + $0x108] sm:$0xff] %v2115_v58  ;;  %v2119_v30 = vadd.f32 %v2118_v54, %v1910_v60  ;;  %v1912_v43 = vadd.f32 %v1911_v59, %v1703_v57  ;;  %v3429_v60 = vld [vmem:[%s3784_s23 + $0x80] sm:$0xff] }
 0x25a   : > { %2779 = vmatprep.mubr.f32.mxu1 %v3420_v32  ;;  %2708 = vmatmul.mubr.f32.vlgmr.msra.gmra.mxu0 %v3421_v14  ;;  %v1715_v57 = vadd.f32 %v4598_v13, %v4811_v0  ;;  %v3430_v59 = vld [vmem:[%s3784_s23 + $0x2c0] sm:$0xff]  ;;  %v1719_v36 = vadd.f32 %v4603_v61, %v4802_v11  ;;  %v3431_v32 = vld [vmem:[%s3784_s23 + $0xb8] sm:$0xff]  ;;  %v3434_v61 = vld [vmem:[%s3784_s23 + $0x2f0] sm:$0xff] }
 0x25b   : > { %2780 = vmatmul.mubr.f32.vlgmr.msra.gmra.mxu1 %v3422_v24  ;;  %2713 = vmatprep.mubr.f32.mxu0 %v3423_v7  ;;  %2890 = vst [vmem:[%s4486_s18 + $0x130] sm:$0xff] %v2119_v30  ;;  %v2121_v37 = vadd.f32 %v2120_v29, %v1912_v43  ;;  %v1915_v3 = vpop.f32.mrf.mxu0  ;;  %v3432_v30 = vld [vmem:[%s3784_s23 + $0x2f8] sm:$0xff]  ;;  %v1721_v24 = vadd.f32 %v4610_v6, %v4811_v0 }
 0x25c   : > { %2785 = vmatprep.mubr.f32.mxu1 %v3424_v44  ;;  %v2124_v56 = vpop.f32.mrf.mxu1  ;;  %v1916_v18 = vadd.f32 %v1915_v3, %v1707_v8 }
 0x25d   : > { %2891 = vst [vmem:[%s4486_s18 + $0x138] sm:$0xff] %v2121_v37  ;;  %v1917_v22 = vpop.f32.mrf.mxu0  ;;  %v3433_v37 = vld [vmem:[%s3784_s23 + $0xb0] sm:$0xff] }
 0x25e   : > { %v2126_v45 = vpop.f32.mrf.mxu1  ;;  %2714 = vmatmul.mubr.f32.gmra.mxu0 %v3425_v4  ;;  %v2125_v20 = vadd.f32 %v2124_v56, %v1916_v18  ;;  %v1918_v55 = vadd.f32 %v1917_v22, %v1709_v2  ;;  %v3435_v2 = vld [vmem:[%s3784_s23 + $0xe8] sm:$0xff] }
 0x25f   : > { %2786 = vmatmul.mubr.f32.gmra.mxu1 %v3426_v10  ;;  %2719 = vmatprep.mubr.f32.mxu0 %v3427_v25  ;;  %v3436_v18 = vld [vmem:[%s3784_s23 + $0x328] sm:$0xff]  ;;  %v3438_v25 = vld [vmem:[%s3784_s23 + $0x320] sm:$0xff] }
 0x260   : > { %2791 = vmatprep.mubr.f32.mxu1 %v3428_v38  ;;  %2896 = vst [vmem:[%s4486_s18 + $0x160] sm:$0xff] %v2125_v20  ;;  %v2127_v12 = vadd.f32 %v2126_v45, %v1918_v55  ;;  %v1921_v40 = vpop.f32.mrf.mxu0  ;;  %v1725_v45 = vadd.f32 %v4618_v49, %v4802_v11  ;;  %v1727_v55 = vadd.f32 %v4626_v17, %v4811_v0 }
 0x261   : > { %v2130_v54 = vpop.f32.mrf.mxu1  ;;  %v1922_v58 = vadd.f32 %v1921_v40, %v1713_v41  ;;  %v3437_v41 = vld [vmem:[%s3784_s23 + $0xe0] sm:$0xff]  ;;  %v3440_v40 = vld [vmem:[%s3784_s23 + $0x358] sm:$0xff]  ;;  %v1731_v17 = vadd.f32 %v4632_v50, %v4802_v11 }
 0x262   : > { %2720 = vmatmul.mubr.f32.gmra.mxu0 %v3429_v60  ;;  %2897 = vst [vmem:[%s4486_s18 + $0x168] sm:$0xff] %v2127_v12  ;;  %v1923_v19 = vpop.f32.mrf.mxu0  ;;  %v3439_v12 = vld [vmem:[%s3784_s23 + $0x118] sm:$0xff]  ;;  %v3441_v60 = vld [vmem:[%s3784_s23 + $0x110] sm:$0xff] }
 0x263   : > { %2792 = vmatmul.mubr.f32.gmra.mxu1 %v3430_v59  ;;  %v2132_v29 = vpop.f32.mrf.mxu1  ;;  %2725 = vmatprep.mubr.f32.mxu0 %v3431_v32  ;;  %v2131_v13 = vadd.f32 %v2130_v54, %v1922_v58  ;;  %v1924_v43 = vadd.f32 %v1923_v19, %v1715_v57  ;;  %v3442_v59 = vld [vmem:[%s3784_s23 + $0x350] sm:$0xff]  ;;  %v1733_v32 = vadd.f32 %v4640_v47, %v4811_v0  ;;  %v3446_v47 = vld [vmem:[%s3784_s23 + $0x380] sm:$0xff] }
 0x264   : > { %2797 = vmatprep.mubr.f32.mxu1 %v3432_v30  ;;  %v1927_v8 = vpop.f32.mrf.mxu0  ;;  %v3443_v30 = vld [vmem:[%s3784_s23 + $0x148] sm:$0xff] }
 0x265   : > { %v2136_v14 = vpop.f32.mrf.mxu1  ;;  %2902 = vst [vmem:[%s4486_s18 + $0x190] sm:$0xff] %v2131_v13  ;;  %v2133_v7 = vadd.f32 %v2132_v29, %v1924_v43  ;;  %v1928_v44 = vadd.f32 %v1927_v8, %v1719_v36  ;;  %v3444_v13 = vld [vmem:[%s3784_s23 + $0x388] sm:$0xff] }
 0x266   : > { %2726 = vmatmul.mubr.f32.gmra.mxu0 %v3433_v37  ;;  %v1929_v3 = vpop.f32.mrf.mxu0 }
 0x267   : > { %2798 = vmatmul.mubr.f32.gmra.mxu1 %v3434_v61  ;;  %v2138_v56 = vpop.f32.mrf.mxu1  ;;  %2731 = vmatprep.mubr.f32.mxu0 %v3435_v2  ;;  %2903 = vst [vmem:[%s4486_s18 + $0x198] sm:$0xff] %v2133_v7  ;;  %v2137_v6 = vadd.f32 %v2136_v14, %v1928_v44  ;;  %v1930_v22 = vadd.f32 %v1929_v3, %v1721_v24  ;;  %v3445_v44 = vld [vmem:[%s3784_s23 + $0x140] sm:$0xff]  ;;  %v3448_v2 = vld [vmem:[%s3784_s23 + $0x3b8] sm:$0xff] }
 0x268   : > { %2803 = vmatprep.mubr.f32.mxu1 %v3436_v18  ;;  %v1737_v14 = vadd.f32 %v4645_v15, %v4802_v11  ;;  %v1739_v3 = vadd.f32 %v4652_v9, %v4811_v0  ;;  %v1743_v9 = vadd.f32 %v4660_v27, %v4802_v11 }
 0x269   : > { %2908 = vst [vmem:[%s4486_s18 + $0x1c0] sm:$0xff] %v2137_v6  ;;  %v2139_v4 = vadd.f32 %v2138_v56, %v1930_v22  ;;  %v1933_v10 = vpop.f32.mrf.mxu0  ;;  %v3447_v56 = vld [vmem:[%s3784_s23 + $0x178] sm:$0xff] }
 0x26a   : > { %v2142_v20 = vpop.f32.mrf.mxu1  ;;  %2732 = vmatmul.mubr.f32.gmra.mxu0 %v3437_v41  ;;  %v1934_v38 = vadd.f32 %v1933_v10, %v1725_v45  ;;  %v3449_v10 = vld [vmem:[%s3784_s23 + $0x170] sm:$0xff]  ;;  %v3452_v41 = vld [vmem:[%s3784_s23 + $0x3e8] sm:$0xff] }
 0x26b   : > { %2804 = vmatmul.mubr.f32.gmra.mxu1 %v3438_v25  ;;  %2737 = vmatprep.mubr.f32.mxu0 %v3439_v12  ;;  %2909 = vst [vmem:[%s4486_s18 + $0x1c8] sm:$0xff] %v2139_v4  ;;  %v1935_v49 = vpop.f32.mrf.mxu0 }
 0x26c   : > { %2809 = vmatprep.mubr.f32.mxu1 %v3440_v40  ;;  %v2144_v54 = vpop.f32.mrf.mxu1  ;;  %v2143_v57 = vadd.f32 %v2142_v20, %v1934_v38  ;;  %v1936_v58 = vadd.f32 %v1935_v49, %v1727_v55  ;;  %v3450_v20 = vld [vmem:[%s3784_s23 + $0x3b0] sm:$0xff]  ;;  %v3451_v55 = vld [vmem:[%s3784_s23 + $0x1a8] sm:$0xff]  ;;  %v1745_v40 = vadd.f32 %v4668_v53, %v4811_v0  ;;  %v3456_v53 = vld [vmem:[%s3784_s23 + $0x418] sm:$0xff] }
 0x26e   : > { %2738 = vmatmul.mubr.f32.gmra.mxu0 %v3441_v60  ;;  %2914 = vst [vmem:[%s4486_s18 + $0x1f0] sm:$0xff] %v2143_v57  ;;  %v2145_v19 = vadd.f32 %v2144_v54, %v1936_v58  ;;  %v1939_v29 = vpop.f32.mrf.mxu0  ;;  %v3453_v57 = vld [vmem:[%s3784_s23 + $0x1a0] sm:$0xff] }
 0x26f   : > { %2810 = vmatmul.mubr.f32.gmra.mxu1 %v3442_v59  ;;  %v2148_v36 = vpop.f32.mrf.mxu1  ;;  %2743 = vmatprep.mubr.f32.mxu0 %v3443_v30  ;;  %v1940_v43 = vadd.f32 %v1939_v29, %v1731_v17  ;;  %v3454_v58 = vld [vmem:[%s3784_s23 + $0x3e0] sm:$0xff]  ;;  %v1749_v59 = vadd.f32 %v4674_v35, %v4802_v11  ;;  %v1751_v30 = vadd.f32 %v4682_v5, %v4811_v0 }
 0x270   : > { %2815 = vmatprep.mubr.f32.mxu1 %v3444_v13  ;;  %2915 = vst [vmem:[%s4486_s18 + $0x1f8] sm:$0xff] %v2145_v19  ;;  %v1941_v50 = vpop.f32.mrf.mxu0  ;;  %v3455_v19 = vld [vmem:[%s3784_s23 + $0x1d8] sm:$0xff] }
 0x271   : > { %v2150_v8 = vpop.f32.mrf.mxu1  ;;  %v2149_v24 = vadd.f32 %v2148_v36, %v1940_v43  ;;  %v1942_v7 = vadd.f32 %v1941_v50, %v1733_v32  ;;  %v3457_v43 = vld [vmem:[%s3784_s23 + $0x1d0] sm:$0xff] }
 0x272   : > { %2744 = vmatmul.mubr.f32.gmra.mxu0 %v3445_v44  ;;  %v1945_v37 = vpop.f32.mrf.mxu0  ;;  %v3458_v50 = vld [vmem:[%s3784_s23 + $0x410] sm:$0xff] }
 0x273   : > { %2816 = vmatmul.mubr.f32.gmra.mxu1 %v3446_v47  ;;  %v2154_v61 = vpop.f32.mrf.mxu1  ;;  %2749 = vmatprep.mubr.f32.mxu0 %v3447_v56  ;;  %2920 = vst [vmem:[%s4486_s18 + $0x220] sm:$0xff] %v2149_v24  ;;  %v2151_v15 = vadd.f32 %v2150_v8, %v1942_v7  ;;  %v1946_v18 = vadd.f32 %v1945_v37, %v1737_v14  ;;  %v3459_v24 = vld [vmem:[%s3784_s23 + $0x208] sm:$0xff] }
 0x274   : > { %2821 = vmatprep.mubr.f32.mxu1 %v3448_v2  ;;  %v1947_v6 = vpop.f32.mrf.mxu0  ;;  %v1755_v14 = vadd.f32 %v4687_v63, %v4802_v11  ;;  %v3460_v7 = vld [vmem:[%s3784_s23 + $0x448] sm:$0xff]  ;;  %v3461_v2 = vld [vmem:[%s3784_s23 + $0x200] sm:$0xff] }
 0x275   : > { %v2156_v22 = vpop.f32.mrf.mxu1  ;;  %2921 = vst [vmem:[%s4486_s18 + $0x228] sm:$0xff] %v2151_v15  ;;  %v2155_v45 = vadd.f32 %v2154_v61, %v1946_v18  ;;  %v1948_v4 = vadd.f32 %v1947_v6, %v1739_v3  ;;  %v1757_v61 = vadd.f32 %v4694_v62, %v4811_v0  ;;  %v3462_v63 = vld [vmem:[%s3784_s23 + $0x440] sm:$0xff]  ;;  %v3463_v6 = vld [vmem:[%s3784_s23 + $0x238] sm:$0xff] }
 0x276   : > { %2750 = vmatmul.mubr.f32.gmra.mxu0 %v3449_v10 }
 0x277   : > { %2822 = vmatmul.mubr.f32.gmra.mxu1 %v3450_v20  ;;  %2755 = vmatprep.mubr.f32.mxu0 %v3451_v55  ;;  %2926 = vst [vmem:[%s4486_s18 + $0x250] sm:$0xff] %v2155_v45  ;;  %v2157_v25 = vadd.f32 %v2156_v22, %v1948_v4  ;;  %v1951_v38 = vpop.f32.mrf.mxu0  ;;  %v3464_v22 = vld [vmem:[%s3784_s23 + $0x478] sm:$0xff]  ;;  %v1761_v4 = vadd.f32 %v4702_v26, %v4802_v11 }
 0x278   : > { %2827 = vmatprep.mubr.f32.mxu1 %v3452_v41  ;;  %v2160_v12 = vpop.f32.mrf.mxu1  ;;  %v1952_v27 = vadd.f32 %v1951_v38, %v1743_v9  ;;  %v1763_v55 = vadd.f32 %v4710_v46, %v4811_v0  ;;  %v3465_v41 = vld [vmem:[%s3784_s23 + $0x230] sm:$0xff]  ;;  %v1767_v26 = vadd.f32 %v4716_v48, %v4802_v11  ;;  %v1769_v46 = vadd.f32 %v4724_v34, %v4811_v0 }
 0x279   : > { %2927 = vst [vmem:[%s4486_s18 + $0x258] sm:$0xff] %v2157_v25  ;;  %v1953_v49 = vpop.f32.mrf.mxu0  ;;  %v3466_v25 = vld [vmem:[%s3784_s23 + $0x470] sm:$0xff] }
 0x27a   : > { %v2162_v54 = vpop.f32.mrf.mxu1  ;;  %2756 = vmatmul.mubr.f32.gmra.mxu0 %v3453_v57  ;;  %v2161_v17 = vadd.f32 %v2160_v12, %v1952_v27  ;;  %v1954_v60 = vadd.f32 %v1953_v49, %v1745_v40 }
 0x27b   : > { %2828 = vmatmul.mubr.f32.gmra.mxu1 %v3454_v58  ;;  %2761 = vmatprep.mubr.f32.mxu0 %v3455_v19  ;;  %v1773_v19 = vadd.f32 %v4729_v28, %v4802_v11  ;;  %v1779_v28 = vadd.f32 %v4744_v16, %v4802_v11 }
 0x27c   : > { %2833 = vmatprep.mubr.f32.mxu1 %v3456_v53  ;;  %2932 = vst [vmem:[%s4486_s18 + $0x280] sm:$0xff] %v2161_v17  ;;  %v2163_v29 = vadd.f32 %v2162_v54, %v1954_v60  ;;  %v1957_v36 = vpop.f32.mrf.mxu0 }
 0x27d   : > { %v2166_v32 = vpop.f32.mrf.mxu1  ;;  %v1958_v13 = vadd.f32 %v1957_v36, %v1749_v59 }
 0x27e   : > { %2762 = vmatmul.mubr.f32.gmra.mxu0 %v3457_v43  ;;  %2933 = vst [vmem:[%s4486_s18 + $0x288] sm:$0xff] %v2163_v29  ;;  %v1959_v35 = vpop.f32.mrf.mxu0 }
 0x27f   : > { %2834 = vmatmul.mubr.f32.gmra.mxu1 %v3458_v50  ;;  %v2168_v8 = vpop.f32.mrf.mxu1  ;;  %2767 = vmatprep.mubr.f32.mxu0 %v3459_v24  ;;  %v2167_v5 = vadd.f32 %v2166_v32, %v1958_v13  ;;  %v1960_v44 = vadd.f32 %v1959_v35, %v1751_v30  ;;  %v1775_v32 = vadd.f32 %v4736_v21, %v4811_v0 }
 0x280   : > { %2839 = vmatprep.mubr.f32.mxu1 %v3460_v7  ;;  %v1963_v47 = vpop.f32.mrf.mxu0  ;;  %v1781_v21 = vadd.f32 %v4752_v33, %v4811_v0 }
 0x281   : > { %v2172_v37 = vpop.f32.mrf.mxu1  ;;  %2938 = vst [vmem:[%s4486_s18 + $0x2b0] sm:$0xff] %v2167_v5  ;;  %v2169_v3 = vadd.f32 %v2168_v8, %v1960_v44  ;;  %v1964_v56 = vadd.f32 %v1963_v47, %v1755_v14 }
 0x282   : > { %2768 = vmatmul.mubr.f32.gmra.mxu0 %v3461_v2  ;;  %v1965_v15 = vpop.f32.mrf.mxu0  ;;  %v1787_v2 = vadd.f32 %v4766_v52, %v4811_v0 }
 0x283   : > { %2840 = vmatmul.mubr.f32.gmra.mxu1 %v3462_v63  ;;  %v2174_v18 = vpop.f32.mrf.mxu1  ;;  %2773 = vmatprep.mubr.f32.mxu0 %v3463_v6  ;;  %2939 = vst [vmem:[%s4486_s18 + $0x2b8] sm:$0xff] %v2169_v3  ;;  %v2173_v45 = vadd.f32 %v2172_v37, %v1964_v56  ;;  %v1966_v62 = vadd.f32 %v1965_v15, %v1757_v61 }
 0x284   : > { %2845 = vmatprep.mubr.f32.mxu1 %v3464_v22  ;;  %v1785_v61 = vadd.f32 %v4758_v42, %v4802_v11 }
 0x285   : > { %2944 = vst [vmem:[%s4486_s18 + $0x2e0] sm:$0xff] %v2173_v45  ;;  %v2175_v9 = vadd.f32 %v2174_v18, %v1966_v62  ;;  %v1969_v10 = vpop.f32.mrf.mxu0  ;;  %v1791_v18 = vadd.f32 %v4771_v39, %v4802_v11  ;;  %v1793_v62 = vadd.f32 %v4778_v51, %v4811_v0  ;;  %v1797_v39 = vadd.f32 %v4787_v31, %v4802_v11 }
 0x286   : > { %v2178_v20 = vpop.f32.mrf.mxu1  ;;  %2774 = vmatmul.mubr.f32.gmra.mxu0 %v3465_v41  ;;  %v1970_v38 = vadd.f32 %v1969_v10, %v1761_v4  ;;  %v1799_v51 = vadd.f32 %v4796_v23, %v4811_v0  ;;  %v963_v31 = vsub.s32 5, %v5445_v1  ;;  %v5452_v23 = vld [vmem:[#allocation15_spill] sm:$0xff] }
 0x287   : > { %2846 = vmatmul.mubr.f32.gmra.mxu1 %v3466_v25  ;;  %2945 = vst [vmem:[%s4486_s18 + $0x2e8] sm:$0xff] %v2175_v9  ;;  %v1971_v12 = vpop.f32.mrf.mxu0 }
 0x288   : > { %v2180_v40 = vpop.f32.mrf.mxu1  ;;  %v2179_v27 = vadd.f32 %v2178_v20, %v1970_v38  ;;  %v1972_v49 = vadd.f32 %v1971_v12, %v1763_v55 }
 0x28a   : > { %2950 = vst [vmem:[%s4486_s18 + $0x310] sm:$0xff] %v2179_v27  ;;  %v2181_v54 = vadd.f32 %v2180_v40, %v1972_v49  ;;  %v1975_v57 = vpop.f32.mrf.mxu0  ;;  %v959_v49 = vsub.s32 4, %v5445_v1 }
 0x28b   : > { %v2184_v58 = vpop.f32.mrf.mxu1  ;;  %v1976_v17 = vadd.f32 %v1975_v57, %v1767_v26  ;;  %v5451_v57 = vld [vmem:[#allocation14_spill] sm:$0xff] }
 0x28c   : > { %2951 = vst [vmem:[%s4486_s18 + $0x318] sm:$0xff] %v2181_v54  ;;  %v1977_v60 = vpop.f32.mrf.mxu0 }
 0x28d   : > { %v2186_v59 = vpop.f32.mrf.mxu1  ;;  %v2185_v53 = vadd.f32 %v2184_v58, %v1976_v17  ;;  %v1978_v29 = vadd.f32 %v1977_v60, %v1769_v46  ;;  %v1803_v58 = vadd.f32 %v5451_v57, %v4802_v11 }
 0x28e   : > { %v1981_v48 = vpop.f32.mrf.mxu0 }
 0x28f   : > { %v2190_v36 = vpop.f32.mrf.mxu1  ;;  %2956 = vst [vmem:[%s4486_s18 + $0x340] sm:$0xff] %v2185_v53  ;;  %v2187_v30 = vadd.f32 %v2186_v59, %v1978_v29  ;;  %v1982_v34 = vadd.f32 %v1981_v48, %v1773_v19  ;;  %v1805_v59 = vadd.f32 %v5452_v23, %v4811_v0  ;;  %v5453_v53 = vld [vmem:[#allocation13_spill] sm:$0xff] }
 0x290   : > { %v1983_v13 = vpop.f32.mrf.mxu0  ;;  %v5038_v29 = vrot.slane %v5453_v53, %v959_v49  ;;  %v5042_v1 = vrot.slane %v5453_v53, %v963_v31 }
 0x291   : > { %v2192_v43 = vpop.f32.mrf.mxu1  ;;  %2957 = vst [vmem:[%s4486_s18 + $0x348] sm:$0xff] %v2187_v30  ;;  %v2191_v50 = vadd.f32 %v2190_v36, %v1982_v34  ;;  %v1984_v35 = vadd.f32 %v1983_v13, %v1775_v32 }
 0x293   : > { %2962 = vst [vmem:[%s4486_s18 + $0x370] sm:$0xff] %v2191_v50  ;;  %v2193_v8 = vadd.f32 %v2192_v43, %v1984_v35  ;;  %v1987_v14 = vpop.f32.mrf.mxu0 }
 0x294   : > { %v2196_v24 = vpop.f32.mrf.mxu1  ;;  %v1988_v7 = vadd.f32 %v1987_v14, %v1779_v28 }
 0x295   : > { %2963 = vst [vmem:[%s4486_s18 + $0x378] sm:$0xff] %v2193_v8  ;;  %v1989_v5 = vpop.f32.mrf.mxu0 }
 0x296   : > { %v2198_v44 = vpop.f32.mrf.mxu1  ;;  %v2197_v47 = vadd.f32 %v2196_v24, %v1988_v7  ;;  %v1990_v37 = vadd.f32 %v1989_v5, %v1781_v21 }
 0x298   : > { %2968 = vst [vmem:[%s4486_s18 + $0x3a0] sm:$0xff] %v2197_v47  ;;  %v2199_v16 = vadd.f32 %v2198_v44, %v1990_v37  ;;  %v1993_v3 = vpop.f32.mrf.mxu0 }
 0x299   : > { %v2202_v56 = vpop.f32.mrf.mxu1  ;;  %v1994_v63 = vadd.f32 %v1993_v3, %v1785_v61 }
 0x29a   : > { %2969 = vst [vmem:[%s4486_s18 + $0x3a8] sm:$0xff] %v2199_v16  ;;  %v1995_v33 = vpop.f32.mrf.mxu0 }
 0x29b   : > { %v2204_v15 = vpop.f32.mrf.mxu1  ;;  %v2203_v6 = vadd.f32 %v2202_v56, %v1994_v63  ;;  %v1996_v22 = vadd.f32 %v1995_v33, %v1787_v2 }
 0x29c   : > { %v1999_v42 = vpop.f32.mrf.mxu0 }
 0x29d   : > { %v2208_v45 = vpop.f32.mrf.mxu1  ;;  %2974 = vst [vmem:[%s4486_s18 + $0x3d0] sm:$0xff] %v2203_v6  ;;  %v2205_v4 = vadd.f32 %v2204_v15, %v1996_v22  ;;  %v2000_v52 = vadd.f32 %v1999_v42, %v1791_v18 }
 0x29e   : > { %v2001_v9 = vpop.f32.mrf.mxu0 }
 0x29f   : > { %v2210_v10 = vpop.f32.mrf.mxu1  ;;  %2975 = vst [vmem:[%s4486_s18 + $0x3d8] sm:$0xff] %v2205_v4  ;;  %v2209_v20 = vadd.f32 %v2208_v45, %v2000_v52  ;;  %v2002_v55 = vadd.f32 %v2001_v9, %v1793_v62 }
 0x2a1   : > { %2980 = vst [vmem:[%s4486_s18 + $0x400] sm:$0xff] %v2209_v20  ;;  %v2211_v41 = vadd.f32 %v2210_v10, %v2002_v55  ;;  %v2005_v25 = vpop.f32.mrf.mxu0 }
 0x2a2   : > { %v2214_v38 = vpop.f32.mrf.mxu1  ;;  %v2006_v12 = vadd.f32 %v2005_v25, %v1797_v39 }
 0x2a3   : > { %2981 = vst [vmem:[%s4486_s18 + $0x408] sm:$0xff] %v2211_v41  ;;  %v2007_v40 = vpop.f32.mrf.mxu0 }
 0x2a4   : > { %v2216_v27 = vpop.f32.mrf.mxu1  ;;  %v2215_v26 = vadd.f32 %v2214_v38, %v2006_v12  ;;  %v2008_v54 = vadd.f32 %v2007_v40, %v1799_v51 }
 0x2a6   : > { %2986 = vst [vmem:[%s4486_s18 + $0x430] sm:$0xff] %v2215_v26  ;;  %v2217_v46 = vadd.f32 %v2216_v27, %v2008_v54  ;;  %v2011_v17 = vpop.f32.mrf.mxu0 }
 0x2a7   : > { %v2220_v60 = vpop.f32.mrf.mxu1  ;;  %v2012_v19 = vadd.f32 %v2011_v17, %v1803_v58 }
 0x2a8   : > { %2987 = vst [vmem:[%s4486_s18 + $0x438] sm:$0xff] %v2217_v46  ;;  %v2013_v48 = vpop.f32.mrf.mxu0 }
 0x2a9   : > { %v2222_v36 = vpop.f32.mrf.mxu1  ;;  %v2221_v32 = vadd.f32 %v2220_v60, %v2012_v19  ;;  %v2014_v11 = vadd.f32 %v2013_v48, %v1805_v59 }
 0x2aa   : > { %v2291_v30 = vpop.f32.mrf.mxu0 }
 0x2ab   : > { %v2500_v34 = vpop.f32.mrf.mxu1  ;;  %2992 = vst [vmem:[%s4486_s18 + $0x460] sm:$0xff] %v2221_v32  ;;  %v2223_v13 = vadd.f32 %v2222_v36, %v2014_v11  ;;  %v2292_v43 = vadd.f32 %v2291_v30, %v5038_v29 }
 0x2ac   : > { %v2293_v0 = vpop.f32.mrf.mxu0 }
 0x2ad   : > { %v2502_v50 = vpop.f32.mrf.mxu1  ;;  %2993 = vst [vmem:[%s4486_s18 + $0x468] sm:$0xff] %v2223_v13  ;;  %v5047_v35 = vadd.f32 %v2500_v34, %v2292_v43  ;;  %v2294_v28 = vadd.f32 %v2293_v0, %v5042_v1 }
 0x2af   : > { %v5050_v8 = vadd.f32 %v2502_v50, %v2294_v28  ;;  %v2297_v14 = vpop.f32.mrf.mxu0 }
 0x2b0   : > { %v2506_v24 = vpop.f32.mrf.mxu1  ;;  %v2298_v21 = vadd.f32 %v2297_v14, %v5038_v29 }
 0x2b1   : > { %v2299_v7 = vpop.f32.mrf.mxu0 }
 0x2b2   : > { %v2508_v5 = vpop.f32.mrf.mxu1  ;;  %v5053_v44 = vadd.f32 %v2506_v24, %v2298_v21  ;;  %v2300_v47 = vadd.f32 %v2299_v7, %v5042_v1 }
 0x2b4   : > { %v5056_v37 = vadd.f32 %v2508_v5, %v2300_v47  ;;  %v2303_v61 = vpop.f32.mrf.mxu0 }
 0x2b5   : > { %v2512_v16 = vpop.f32.mrf.mxu1  ;;  %v2304_v3 = vadd.f32 %v2303_v61, %v5038_v29 }
 0x2b6   : > { %v2305_v56 = vpop.f32.mrf.mxu0 }
 0x2b7   : > { %v2514_v2 = vpop.f32.mrf.mxu1  ;;  %v5059_v63 = vadd.f32 %v2512_v16, %v2304_v3  ;;  %v2306_v33 = vadd.f32 %v2305_v56, %v5042_v1 }
 0x2b8   : > { %v2309_v15 = vpop.f32.mrf.mxu0 }
 0x2b9   : > { %v2518_v18 = vpop.f32.mrf.mxu1  ;;  %v5062_v6 = vadd.f32 %v2514_v2, %v2306_v33  ;;  %v2310_v22 = vadd.f32 %v2309_v15, %v5038_v29 }
 0x2ba   : > { %v2311_v42 = vpop.f32.mrf.mxu0 }
 0x2bb   : > { %v2520_v45 = vpop.f32.mrf.mxu1  ;;  %v5065_v62 = vadd.f32 %v2518_v18, %v2310_v22  ;;  %v2312_v4 = vadd.f32 %v2311_v42, %v5042_v1 }
 0x2bd   : > { %v5068_v52 = vadd.f32 %v2520_v45, %v2312_v4  ;;  %v2315_v9 = vpop.f32.mrf.mxu0 }
 0x2be   : > { %v2524_v10 = vpop.f32.mrf.mxu1  ;;  %v2316_v20 = vadd.f32 %v2315_v9, %v5038_v29 }
 0x2bf   : > { %v2317_v55 = vpop.f32.mrf.mxu0 }
 0x2c0   : > { %v2526_v39 = vpop.f32.mrf.mxu1  ;;  %v5071_v41 = vadd.f32 %v2524_v10, %v2316_v20  ;;  %v2318_v25 = vadd.f32 %v2317_v55, %v5042_v1 }
 0x2c2   : > { %v5074_v38 = vadd.f32 %v2526_v39, %v2318_v25  ;;  %v2321_v51 = vpop.f32.mrf.mxu0 }
 0x2c3   : > { %v2530_v12 = vpop.f32.mrf.mxu1  ;;  %v2322_v40 = vadd.f32 %v2321_v51, %v5038_v29 }
 0x2c4   : > { %v2323_v27 = vpop.f32.mrf.mxu0 }
 0x2c5   : > { %v2532_v49 = vpop.f32.mrf.mxu1  ;;  %v5077_v26 = vadd.f32 %v2530_v12, %v2322_v40  ;;  %v2324_v54 = vadd.f32 %v2323_v27, %v5042_v1 }
 0x2c6   : > { %v2327_v57 = vpop.f32.mrf.mxu0 }
 0x2c7   : > { %v2536_v58 = vpop.f32.mrf.mxu1  ;;  %v5080_v31 = vadd.f32 %v2532_v49, %v2324_v54  ;;  %v2328_v46 = vadd.f32 %v2327_v57, %v5038_v29 }
 0x2c8   : > { %v2329_v17 = vpop.f32.mrf.mxu0 }
 0x2c9   : > { %v2538_v60 = vpop.f32.mrf.mxu1  ;;  %v5083_v23 = vadd.f32 %v2536_v58, %v2328_v46  ;;  %v2330_v59 = vadd.f32 %v2329_v17, %v5042_v1 }
 0x2cb   : > { %v5086_v19 = vadd.f32 %v2538_v60, %v2330_v59  ;;  %v2333_v53 = vpop.f32.mrf.mxu0 }
 0x2cc   : > { %v2542_v48 = vpop.f32.mrf.mxu1  ;;  %v2334_v36 = vadd.f32 %v2333_v53, %v5038_v29 }
 0x2cd   : > { %v2335_v32 = vpop.f32.mrf.mxu0 }
 0x2ce   : > { %v2544_v11 = vpop.f32.mrf.mxu1  ;;  %v5089_v30 = vadd.f32 %v2542_v48, %v2334_v36  ;;  %v2336_v34 = vadd.f32 %v2335_v32, %v5042_v1 }
 0x2d0   : > { %v5092_v13 = vadd.f32 %v2544_v11, %v2336_v34  ;;  %v2339_v43 = vpop.f32.mrf.mxu0 }
 0x2d1   : > { %v2548_v0 = vpop.f32.mrf.mxu1  ;;  %v2340_v50 = vadd.f32 %v2339_v43, %v5038_v29 }
 0x2d2   : > { %5454 = vst [vmem:[#allocation16_spill] sm:$0xff] %v5092_v13  ;;  %v2341_v28 = vpop.f32.mrf.mxu0 }
 0x2d3   : > { %v2550_v14 = vpop.f32.mrf.mxu1  ;;  %v5095_v24 = vadd.f32 %v2548_v0, %v2340_v50  ;;  %v2342_v21 = vadd.f32 %v2341_v28, %v5042_v1 }
 0x2d4   : > { %v2345_v7 = vpop.f32.mrf.mxu0 }
 0x2d5   : > { %5455 = vst [vmem:[#allocation17_spill] sm:$0xff] %v5095_v24  ;;  %v2554_v5 = vpop.f32.mrf.mxu1  ;;  %v5098_v47 = vadd.f32 %v2550_v14, %v2342_v21  ;;  %v2346_v61 = vadd.f32 %v2345_v7, %v5038_v29 }
 0x2d6   : > { %v2347_v16 = vpop.f32.mrf.mxu0 }
 0x2d7   : > { %5456 = vst [vmem:[#allocation18_spill] sm:$0xff] %v5098_v47  ;;  %v2556_v3 = vpop.f32.mrf.mxu1  ;;  %v5101_v56 = vadd.f32 %v2554_v5, %v2346_v61  ;;  %v2348_v2 = vadd.f32 %v2347_v16, %v5042_v1 }
 0x2d9   : > { %5457 = vst [vmem:[#allocation19_spill] sm:$0xff] %v5101_v56  ;;  %v5104_v33 = vadd.f32 %v2556_v3, %v2348_v2  ;;  %v2351_v15 = vpop.f32.mrf.mxu0 }
 0x2da   : > { %v2560_v18 = vpop.f32.mrf.mxu1  ;;  %v2352_v22 = vadd.f32 %v2351_v15, %v5038_v29 }
 0x2db   : > { %5458 = vst [vmem:[#allocation20_spill] sm:$0xff] %v5104_v33  ;;  %v2353_v42 = vpop.f32.mrf.mxu0 }
 0x2dc   : > { %v2562_v45 = vpop.f32.mrf.mxu1  ;;  %v5107_v4 = vadd.f32 %v2560_v18, %v2352_v22  ;;  %v2354_v9 = vadd.f32 %v2353_v42, %v5042_v1 }
 0x2de   : > { %5459 = vst [vmem:[#allocation21_spill] sm:$0xff] %v5107_v4  ;;  %v5110_v10 = vadd.f32 %v2562_v45, %v2354_v9  ;;  %v2357_v20 = vpop.f32.mrf.mxu0 }
 0x2df   : > { %v2566_v55 = vpop.f32.mrf.mxu1  ;;  %v2358_v39 = vadd.f32 %v2357_v20, %v5038_v29 }
 0x2e0   : > { %5460 = vst [vmem:[#allocation22_spill] sm:$0xff] %v5110_v10  ;;  %v2359_v25 = vpop.f32.mrf.mxu0 }
 0x2e1   : > { %v2568_v51 = vpop.f32.mrf.mxu1  ;;  %v5113_v12 = vadd.f32 %v2566_v55, %v2358_v39  ;;  %v2360_v40 = vadd.f32 %v2359_v25, %v5042_v1 }
 0x2e2   : > { %v2363_v27 = vpop.f32.mrf.mxu0 }
 0x2e3   : > { %5461 = vst [vmem:[#allocation23_spill] sm:$0xff] %v5113_v12  ;;  %v2572_v49 = vpop.f32.mrf.mxu1  ;;  %v5116_v54 = vadd.f32 %v2568_v51, %v2360_v40  ;;  %v2364_v47 = vadd.f32 %v2363_v27, %v5038_v29 }
 0x2e4   : > { %v2365_v57 = vpop.f32.mrf.mxu0 }
 0x2e5   : > { %5462 = vst [vmem:[#allocation24_spill] sm:$0xff] %v5116_v54  ;;  %v2574_v58 = vpop.f32.mrf.mxu1 }
 0x2e7   : > { %v2369_v46 = vpop.f32.mrf.mxu0 }
 0x2e8   : > { %v2578_v17 = vpop.f32.mrf.mxu1 }
 0x2e9   : > { %v2371_v60 = vpop.f32.mrf.mxu0 }
 0x2ea   : > { %v2580_v59 = vpop.f32.mrf.mxu1  ;;  %v2372_v27 = vadd.f32 %v2371_v60, %v5042_v1 }
 0x2ec   : > { %v2375_v53 = vpop.f32.mrf.mxu0 }
 0x2ed   : > { %v5118_v48 = vpop.f32.mrf.mxu1 }
 0x2ee   : > { %v2377_v36 = vpop.f32.mrf.mxu0 }
 0x2ef   : > { %v5120_v32 = vpop.f32.mrf.mxu1  ;;  %v2378_v60 = vadd.f32 %v2377_v36, %v5042_v1 }
 0x2f0   : > { %v5122_v11 = vpop.f32.mrf.mxu0 }
 0x2f1   : > { %v5124_v34 = vpop.f32.mrf.mxu1 }
 0x2f2   : > { %v5126_v43 = vpop.f32.mrf.mxu0 }
 0x2f3   : > { %v5128_v0 = vpop.f32.mrf.mxu1 }
 0x2f5   : > { %v5130_v50 = vpop.f32.mrf.mxu0 }
 0x2f6   : > { %v5132_v28 = vpop.f32.mrf.mxu1 }
 0x2f7   : > { %v5134_v14 = vpop.f32.mrf.mxu0 }
 0x2f8   : > { %v5136_v21 = vpop.f32.mrf.mxu1 }
 0x2fa   : > { %v5138_v7 = vpop.f32.mrf.mxu0 }
 0x2fb   : > { %v5140_v5 = vpop.f32.mrf.mxu1 }
 0x2fc   : > { %v5142_v61 = vpop.f32.mrf.mxu0 }
 0x2fd   : > { %v5144_v16 = vpop.f32.mrf.mxu1 }
 0x2fe   : > { %v5146_v3 = vpop.f32.mrf.mxu0 }
 0x2ff   : > { %v5148_v2 = vpop.f32.mrf.mxu1 }
 0x300   : > { %v5150_v15 = vpop.f32.mrf.mxu0 }
 0x301   : > { %v5152_v18 = vpop.f32.mrf.mxu1 }
 0x303   : > { %v5154_v22 = vpop.f32.mrf.mxu0 }
 0x304   : > { %v5156_v42 = vpop.f32.mrf.mxu1 }
 0x305   : > { %v5158_v45 = vpop.f32.mrf.mxu0 }
 0x306   : > { %v5160_v9 = vpop.f32.mrf.mxu1 }
 0x308   : > { %v5162_v20 = vpop.f32.mrf.mxu0 }
 0x309   : > { %v5164_v55 = vpop.f32.mrf.mxu1 }
 0x30a   : > { %5463 = vst [vmem:[#allocation25_spill] sm:$0xff] %v5164_v55  ;;  %v5166_v39 = vpop.f32.mrf.mxu0 }
 0x30b   : > { %v5168_v25 = vpop.f32.mrf.mxu1 }
 0x30c   : > { %5464 = vst [vmem:[#allocation26_spill] sm:$0xff] %v5168_v25  ;;  %v5170_v51 = vpop.f32.mrf.mxu0 }
 0x30d   : > { %5465 = vst [vmem:[#allocation27_spill] sm:$0xff] %v5170_v51  ;;  %v5172_v40 = vpop.f32.mrf.mxu1 }
 0x30e   : > { %5466 = vst [vmem:[#allocation28_spill] sm:$0xff] %v5172_v40  ;;  %v5174_v54 = vpop.f32.mrf.mxu0  ;;  %v2366_v40 = vadd.f32 %v2365_v57, %v5042_v1 }
 0x30f   : > { %5467 = vst [vmem:[#allocation30_spill] sm:$0xff] %v5174_v54  ;;  %v5176_v12 = vpop.f32.mrf.mxu1 }
 0x310   : > { %5468 = vst [vmem:[#allocation29_spill] sm:$0xff] %v5176_v12 }
 0x311   : > { %v5178_v10 = vpop.f32.mrf.mxu0 }
 0x312   : > { %5469 = vst [vmem:[#allocation31_spill] sm:$0xff] %v5178_v10  ;;  %v5180_v4 = vpop.f32.mrf.mxu1  ;;  %v2573_v10 = vadd.f32 %v2572_v49, %v2364_v47 }
 0x313   : > { %5470 = vst [vmem:[#allocation32_spill] sm:$0xff] %v5180_v4  ;;  %v5182_v33 = vpop.f32.mrf.mxu0  ;;  %v2370_v4 = vadd.f32 %v2369_v46, %v5038_v29 }
 0x314   : > { %5471 = vst [vmem:[#allocation33_spill] sm:$0xff] %v5182_v33  ;;  %v5184_v56 = vpop.f32.mrf.mxu1 }
 0x315   : > { %5472 = vst [vmem:[#allocation12_spill] sm:$0xff] %v5184_v56  ;;  %v2575_v56 = vadd.f32 %v2574_v58, %v2366_v40  ;;  %v2579_v55 = vadd.f32 %v2578_v17, %v2370_v4  ;;  %v2581_v40 = vadd.f32 %v2580_v59, %v2372_v27 }
 0x316   : > { %v5187_v24 = vpop.f32.mrf.mxu0 }
 0x317   : > { %5473 = vst [vmem:[#allocation34_spill] sm:$0xff] %v5187_v24  ;;  %v5189_v25 = vpop.f32.mrf.mxu1 }
 0x318   : > { %5474 = vst [vmem:[#allocation35_spill] sm:$0xff] %v5189_v25  ;;  %v5192_v54 = vpop.f32.mrf.mxu0 }
 0x319   : > { %5475 = vst [vmem:[#allocation14_spill] sm:$0xff] %v5192_v54  ;;  %v5194_v12 = vpop.f32.mrf.mxu1  ;;  %v2376_v54 = vadd.f32 %v2375_v53, %v5038_v29  ;;  %v2587_v53 = vadd.f32 %v5120_v32, %v2378_v60 }
 0x31a   : > { %v2709_v33 = vpop.f32.mrf.mxu0 }
 0x31b   : > { %v2781_v13 = vpop.f32.mrf.mxu1  ;;  %v2710_v25 = vadd.f32 %v2709_v33, %v5047_v35 }
 0x31c   : > { %v2782_v24 = vadd.f32 %v2781_v13, %v2573_v10  ;;  %v2711_v51 = vpop.f32.mrf.mxu0 }
 0x31d   : > { %v2783_v57 = vpop.f32.mrf.mxu1  ;;  %2856 = vst [vmem:[%s4486_s18 + $0x20] sm:$0xff] %v2710_v25  ;;  %v2712_v47 = vadd.f32 %v2711_v51, %v5050_v8  ;;  %v2382_v8 = vadd.f32 %v5122_v11, %v5038_v29 }
 0x31e   : > { %2928 = vst [vmem:[%s4486_s18 + $0x260] sm:$0xff] %v2782_v24  ;;  %v2784_v49 = vadd.f32 %v2783_v57, %v2575_v56  ;;  %v2715_v58 = vpop.f32.mrf.mxu0  ;;  %v2585_v24 = vadd.f32 %v5118_v48, %v2376_v54 }
 0x31f   : > { %v2787_v46 = vpop.f32.mrf.mxu1  ;;  %2857 = vst [vmem:[%s4486_s18 + $0x28] sm:$0xff] %v2712_v47  ;;  %v2716_v35 = vadd.f32 %v2715_v58, %v5053_v44  ;;  %v2384_v44 = vadd.f32 %v5126_v43, %v5042_v1 }
 0x320   : > { %2929 = vst [vmem:[%s4486_s18 + $0x268] sm:$0xff] %v2784_v49  ;;  %v2788_v13 = vadd.f32 %v2787_v46, %v2579_v55  ;;  %v2717_v33 = vpop.f32.mrf.mxu0  ;;  %v2591_v55 = vadd.f32 %v5124_v34, %v2382_v8 }
 0x321   : > { %v2789_v4 = vpop.f32.mrf.mxu1  ;;  %2862 = vst [vmem:[%s4486_s18 + $0x50] sm:$0xff] %v2716_v35  ;;  %v2718_v56 = vadd.f32 %v2717_v33, %v5056_v37  ;;  %v2388_v37 = vadd.f32 %v5130_v50, %v5038_v29  ;;  %v2593_v27 = vadd.f32 %v5128_v0, %v2384_v44 }
 0x322   : > { %2934 = vst [vmem:[%s4486_s18 + $0x290] sm:$0xff] %v2788_v13  ;;  %v2790_v10 = vadd.f32 %v2789_v4, %v2581_v40  ;;  %v2721_v17 = vpop.f32.mrf.mxu0 }
 0x323   : > { %v2793_v59 = vpop.f32.mrf.mxu1  ;;  %2863 = vst [vmem:[%s4486_s18 + $0x58] sm:$0xff] %v2718_v56  ;;  %v2722_v54 = vadd.f32 %v2721_v17, %v5059_v63  ;;  %v2390_v63 = vadd.f32 %v5134_v14, %v5042_v1  ;;  %v2597_v49 = vadd.f32 %v5132_v28, %v2388_v37 }
 0x324   : > { %2935 = vst [vmem:[%s4486_s18 + $0x298] sm:$0xff] %v2790_v10  ;;  %v2794_v48 = vadd.f32 %v2793_v59, %v2585_v24  ;;  %v2723_v36 = vpop.f32.mrf.mxu0 }
 0x325   : > { %v2795_v11 = vpop.f32.mrf.mxu1  ;;  %2868 = vst [vmem:[%s4486_s18 + $0x80] sm:$0xff] %v2722_v54  ;;  %v2724_v32 = vadd.f32 %v2723_v36, %v5062_v6  ;;  %v2394_v6 = vadd.f32 %v5138_v7, %v5038_v29  ;;  %v2599_v40 = vadd.f32 %v5136_v21, %v2390_v63 }
 0x326   : > { %2940 = vst [vmem:[%s4486_s18 + $0x2c0] sm:$0xff] %v2794_v48  ;;  %v2796_v43 = vadd.f32 %v2795_v11, %v2587_v53  ;;  %v2727_v25 = vpop.f32.mrf.mxu0 }
 0x327   : > { %v2799_v51 = vpop.f32.mrf.mxu1  ;;  %2869 = vst [vmem:[%s4486_s18 + $0x88] sm:$0xff] %v2724_v32  ;;  %v2728_v34 = vadd.f32 %v2727_v25, %v5065_v62  ;;  %v2396_v62 = vadd.f32 %v5142_v61, %v5042_v1  ;;  %v2603_v13 = vadd.f32 %v5140_v5, %v2394_v6 }
 0x328   : > { %2941 = vst [vmem:[%s4486_s18 + $0x2c8] sm:$0xff] %v2796_v43  ;;  %v2800_v50 = vadd.f32 %v2799_v51, %v2591_v55  ;;  %v2729_v57 = vpop.f32.mrf.mxu0  ;;  %v5476_v43 = vld [vmem:[#allocation25_spill] sm:$0xff] }
 0x329   : > { %v2801_v47 = vpop.f32.mrf.mxu1  ;;  %2874 = vst [vmem:[%s4486_s18 + $0xb0] sm:$0xff] %v2728_v34  ;;  %v2730_v0 = vadd.f32 %v2729_v57, %v5068_v52  ;;  %v2400_v52 = vadd.f32 %v5146_v3, %v5038_v29  ;;  %v2605_v24 = vadd.f32 %v5144_v16, %v2396_v62  ;;  %v5483_v62 = vld [vmem:[#allocation31_spill] sm:$0xff] }
 0x32a   : > { %2946 = vst [vmem:[%s4486_s18 + $0x2f0] sm:$0xff] %v2800_v50  ;;  %v2802_v14 = vadd.f32 %v2801_v47, %v2593_v27  ;;  %v2733_v58 = vpop.f32.mrf.mxu0  ;;  %v5479_v50 = vld [vmem:[#allocation26_spill] sm:$0xff] }
 0x32b   : > { %v2805_v46 = vpop.f32.mrf.mxu1  ;;  %2875 = vst [vmem:[%s4486_s18 + $0xb8] sm:$0xff] %v2730_v0  ;;  %v2734_v28 = vadd.f32 %v2733_v58, %v5071_v41  ;;  %v2402_v41 = vadd.f32 %v5150_v15, %v5042_v1  ;;  %v2609_v10 = vadd.f32 %v5148_v2, %v2400_v52 }
 0x32c   : > { %2947 = vst [vmem:[%s4486_s18 + $0x2f8] sm:$0xff] %v2802_v14  ;;  %v2806_v7 = vadd.f32 %v2805_v46, %v2597_v49  ;;  %v2735_v60 = vpop.f32.mrf.mxu0  ;;  %v5481_v49 = vld [vmem:[#allocation17_spill] sm:$0xff]  ;;  %v5482_v46 = vld [vmem:[#allocation28_spill] sm:$0xff] }
 0x32d   : > { %v2807_v35 = vpop.f32.mrf.mxu1  ;;  %2880 = vst [vmem:[%s4486_s18 + $0xe0] sm:$0xff] %v2734_v28  ;;  %v2736_v21 = vadd.f32 %v2735_v60, %v5074_v38  ;;  %v2406_v38 = vadd.f32 %v5154_v22, %v5038_v29  ;;  %v2611_v53 = vadd.f32 %v5152_v18, %v2402_v41  ;;  %v2424_v28 = vadd.f32 %v5483_v62, %v5038_v29 }
 0x32e   : > { %2952 = vst [vmem:[%s4486_s18 + $0x320] sm:$0xff] %v2806_v7  ;;  %v2808_v61 = vadd.f32 %v2807_v35, %v2599_v40  ;;  %v2739_v33 = vpop.f32.mrf.mxu0  ;;  %v5484_v7 = vld [vmem:[#allocation18_spill] sm:$0xff] }
 0x32f   : > { %v2811_v4 = vpop.f32.mrf.mxu1  ;;  %2881 = vst [vmem:[%s4486_s18 + $0xe8] sm:$0xff] %v2736_v21  ;;  %v2740_v5 = vadd.f32 %v2739_v33, %v5077_v26  ;;  %v2408_v26 = vadd.f32 %v5158_v45, %v5042_v1  ;;  %v2615_v48 = vadd.f32 %v5156_v42, %v2406_v38  ;;  %v5485_v21 = vld [vmem:[#allocation29_spill] sm:$0xff]  ;;  %v5489_v38 = vld [vmem:[#allocation34_spill] sm:$0xff] }
 0x330   : > { %2953 = vst [vmem:[%s4486_s18 + $0x328] sm:$0xff] %v2808_v61  ;;  %v2812_v3 = vadd.f32 %v2811_v4, %v2603_v13  ;;  %v2741_v8 = vpop.f32.mrf.mxu0  ;;  %v5486_v33 = vld [vmem:[#allocation33_spill] sm:$0xff] }
 0x331   : > { %v2813_v56 = vpop.f32.mrf.mxu1  ;;  %2886 = vst [vmem:[%s4486_s18 + $0x110] sm:$0xff] %v2740_v5  ;;  %v2742_v16 = vadd.f32 %v2741_v8, %v5080_v31  ;;  %v2412_v31 = vadd.f32 %v5162_v20, %v5038_v29  ;;  %v2617_v55 = vadd.f32 %v5160_v9, %v2408_v26  ;;  %v5478_v9 = vld [vmem:[#allocation16_spill] sm:$0xff]  ;;  %v2426_v4 = vadd.f32 %v5486_v33, %v5042_v1 }
 0x332   : > { %2958 = vst [vmem:[%s4486_s18 + $0x350] sm:$0xff] %v2812_v3  ;;  %v2814_v15 = vadd.f32 %v2813_v56, %v2605_v24  ;;  %v2745_v17 = vpop.f32.mrf.mxu0  ;;  %v5487_v24 = vld [vmem:[#allocation19_spill] sm:$0xff]  ;;  %v5488_v56 = vld [vmem:[#allocation32_spill] sm:$0xff] }
 0x333   : > { %v2817_v59 = vpop.f32.mrf.mxu1  ;;  %2887 = vst [vmem:[%s4486_s18 + $0x118] sm:$0xff] %v2742_v16  ;;  %v2746_v2 = vadd.f32 %v2745_v17, %v5083_v23  ;;  %v2414_v23 = vadd.f32 %v5166_v39, %v5042_v1  ;;  %v2621_v25 = vadd.f32 %v5476_v43, %v2412_v31  ;;  %v2430_v16 = vadd.f32 %v5489_v38, %v5038_v29 }
 0x334   : > { %2959 = vst [vmem:[%s4486_s18 + $0x358] sm:$0xff] %v2814_v15  ;;  %v2818_v22 = vadd.f32 %v2817_v59, %v2609_v10  ;;  %v2747_v44 = vpop.f32.mrf.mxu0  ;;  %v2633_v10 = vadd.f32 %v5488_v56, %v2424_v28  ;;  %v5490_v15 = vld [vmem:[#allocation20_spill] sm:$0xff] }
 0x335   : > { %v2819_v54 = vpop.f32.mrf.mxu1  ;;  %2892 = vst [vmem:[%s4486_s18 + $0x140] sm:$0xff] %v2746_v2  ;;  %v2748_v18 = vadd.f32 %v2747_v44, %v5086_v19  ;;  %v5477_v19 = vld [vmem:[#allocation27_spill] sm:$0xff]  ;;  %v2623_v57 = vadd.f32 %v5479_v50, %v2414_v23  ;;  %v5491_v2 = vld [vmem:[#allocation12_spill] sm:$0xff]  ;;  %v5492_v44 = vld [vmem:[#allocation14_spill] sm:$0xff] }
 0x336   : > { %2964 = vst [vmem:[%s4486_s18 + $0x380] sm:$0xff] %v2818_v22  ;;  %v2820_v45 = vadd.f32 %v2819_v54, %v2611_v53  ;;  %v2751_v36 = vpop.f32.mrf.mxu0  ;;  %v2418_v51 = vadd.f32 %v5477_v19, %v5038_v29  ;;  %v2635_v22 = vadd.f32 %v5491_v2, %v2426_v4  ;;  %v2432_v54 = vadd.f32 %v5492_v44, %v5042_v1 }
 0x337   : > { %v2823_v11 = vpop.f32.mrf.mxu1  ;;  %2893 = vst [vmem:[%s4486_s18 + $0x148] sm:$0xff] %v2748_v18  ;;  %v2752_v42 = vadd.f32 %v2751_v36, %v5089_v30  ;;  %v5480_v30 = vld [vmem:[#allocation30_spill] sm:$0xff]  ;;  %v5494_v36 = vld [vmem:[#allocation35_spill] sm:$0xff] }
 0x338   : > { %2965 = vst [vmem:[%s4486_s18 + $0x388] sm:$0xff] %v2820_v45  ;;  %v2824_v20 = vadd.f32 %v2823_v11, %v2615_v48  ;;  %v2753_v37 = vpop.f32.mrf.mxu0  ;;  %v2420_v47 = vadd.f32 %v5480_v30, %v5042_v1  ;;  %v2627_v40 = vadd.f32 %v5482_v46, %v2418_v51  ;;  %v5493_v48 = vld [vmem:[#allocation21_spill] sm:$0xff]  ;;  %v2639_v11 = vadd.f32 %v5494_v36, %v2430_v16 }
 0x339   : > { %v2825_v32 = vpop.f32.mrf.mxu1  ;;  %2898 = vst [vmem:[%s4486_s18 + $0x170] sm:$0xff] %v2752_v42  ;;  %v2754_v39 = vadd.f32 %v2753_v37, %v5478_v9  ;;  %v2641_v37 = vadd.f32 %v5194_v12, %v2432_v54  ;;  %v5497_v12 = vld [vmem:[#allocation24_spill] sm:$0xff] }
 0x33a   : > { %2970 = vst [vmem:[%s4486_s18 + $0x3b0] sm:$0xff] %v2824_v20  ;;  %v2826_v27 = vadd.f32 %v2825_v32, %v2617_v55  ;;  %v2757_v63 = vpop.f32.mrf.mxu0  ;;  %v2629_v61 = vadd.f32 %v5485_v21, %v2420_v47  ;;  %v5495_v55 = vld [vmem:[#allocation22_spill] sm:$0xff]  ;;  %v5496_v32 = vld [vmem:[#allocation23_spill] sm:$0xff] }
 0x33b   : > { %v2829_v34 = vpop.f32.mrf.mxu1  ;;  %2899 = vst [vmem:[%s4486_s18 + $0x178] sm:$0xff] %v2754_v39  ;;  %v2758_v6 = vadd.f32 %v2757_v63, %v5481_v49 }
 0x33c   : > { %2971 = vst [vmem:[%s4486_s18 + $0x3b8] sm:$0xff] %v2826_v27  ;;  %v2830_v0 = vadd.f32 %v2829_v34, %v2621_v25  ;;  %v2759_v14 = vpop.f32.mrf.mxu0 }
 0x33d   : > { %v2831_v58 = vpop.f32.mrf.mxu1  ;;  %2904 = vst [vmem:[%s4486_s18 + $0x1a0] sm:$0xff] %v2758_v6  ;;  %v2760_v60 = vadd.f32 %v2759_v14, %v5484_v7 }
 0x33e   : > { %2976 = vst [vmem:[%s4486_s18 + $0x3e0] sm:$0xff] %v2830_v0  ;;  %v2832_v35 = vadd.f32 %v2831_v58, %v2623_v57  ;;  %v2763_v13 = vpop.f32.mrf.mxu0 }
 0x33f   : > { %v2835_v52 = vpop.f32.mrf.mxu1  ;;  %2905 = vst [vmem:[%s4486_s18 + $0x1a8] sm:$0xff] %v2760_v60  ;;  %v2764_v41 = vadd.f32 %v2763_v13, %v5487_v24 }
 0x340   : > { %2977 = vst [vmem:[%s4486_s18 + $0x3e8] sm:$0xff] %v2832_v35  ;;  %v2836_v5 = vadd.f32 %v2835_v52, %v2627_v40  ;;  %v2765_v3 = vpop.f32.mrf.mxu0 }
 0x341   : > { %v2837_v8 = vpop.f32.mrf.mxu1  ;;  %2910 = vst [vmem:[%s4486_s18 + $0x1d0] sm:$0xff] %v2764_v41  ;;  %v2766_v17 = vadd.f32 %v2765_v3, %v5490_v15 }
 0x342   : > { %2982 = vst [vmem:[%s4486_s18 + $0x410] sm:$0xff] %v2836_v5  ;;  %v2838_v59 = vadd.f32 %v2837_v8, %v2629_v61  ;;  %v2769_v53 = vpop.f32.mrf.mxu0 }
 0x343   : > { %v2841_v26 = vpop.f32.mrf.mxu1  ;;  %2911 = vst [vmem:[%s4486_s18 + $0x1d8] sm:$0xff] %v2766_v17  ;;  %v2770_v29 = vadd.f32 %v2769_v53, %v5493_v48 }
 0x344   : > { %2983 = vst [vmem:[%s4486_s18 + $0x418] sm:$0xff] %v2838_v59  ;;  %v2842_v31 = vadd.f32 %v2841_v26, %v2633_v10  ;;  %v2771_v18 = vpop.f32.mrf.mxu0 }
 0x345   : > { %v2843_v45 = vpop.f32.mrf.mxu1  ;;  %2916 = vst [vmem:[%s4486_s18 + $0x200] sm:$0xff] %v2770_v29  ;;  %v2772_v23 = vadd.f32 %v2771_v18, %v5495_v55 }
 0x346   : > { %2988 = vst [vmem:[%s4486_s18 + $0x440] sm:$0xff] %v2842_v31  ;;  %v2844_v42 = vadd.f32 %v2843_v45, %v2635_v22  ;;  %v2775_v1 = vpop.f32.mrf.mxu0 }
 0x347   : > { %v2847_v20 = vpop.f32.mrf.mxu1  ;;  %2917 = vst [vmem:[%s4486_s18 + $0x208] sm:$0xff] %v2772_v23  ;;  %v2776_v43 = vadd.f32 %v2775_v1, %v5496_v32 }
 0x348   : > { %2989 = vst [vmem:[%s4486_s18 + $0x448] sm:$0xff] %v2844_v42  ;;  %v2848_v25 = vadd.f32 %v2847_v20, %v2639_v11  ;;  %v2777_v19 = vpop.f32.mrf.mxu0 }
 0x349   : > { %v2849_v51 = vpop.f32.mrf.mxu1  ;;  %2922 = vst [vmem:[%s4486_s18 + $0x230] sm:$0xff] %v2776_v43  ;;  %v2778_v9 = vadd.f32 %v2777_v19, %v5497_v12 }
 0x34a   : > { %2994 = vst [vmem:[%s4486_s18 + $0x470] sm:$0xff] %v2848_v25  ;;  %v2850_v39 = vadd.f32 %v2849_v51, %v2641_v37 }
 0x34b   : > { %2923 = vst [vmem:[%s4486_s18 + $0x238] sm:$0xff] %v2778_v9 }
 0x34c   : > { %2995 = vst [vmem:[%s4486_s18 + $0x478] sm:$0xff] %v2850_v39 }
 0x34d   : > { %3560 = shalt.err (!%p3557_p10)
}
 0x34e   : > { %s3561_s17 = scalar_lea.hbm %s5328_s26, 18432  ;;  %s3565_s29 = scalar_lea.hbm %s5381_s3, 36864 }
 0x34f   : > { %p3562_p2 = scmp.ne.s32.totalorder %s5328_s26, %s3561_s17  ;;  %p3566_p4 = scmp.lt.s32.totalorder %s5328_s26, %s5381_s3 }
 0x350   : > { %p3567_p6 = scmp.lt.s32.totalorder %s3565_s29, %s3561_s17 }
 0x351   : > { %p3563_p9 = pnand %p3562_p2, %p5498_p11 }
 0x352   : > { %p3568_p8 = por %p3567_p6, %p3566_p4 }
 0x353   : > { %p3564_p1 = pneg %p3563_p9 }
 0x355   : > { %p3569_p3 = pnand %p3568_p8, %p3564_p1 }
 0x357   : > { %3572 = shalt.err (!%p3569_p3)
}
 0x358   : > { %s3623_s23 = smov 768   ;;  %s3624_s18 = smov 48  }
 0x359   : > { %3193 = dma.vmem_to_hbm [thread:$0]  (%p5498_p11), %s5330_s27, 18432, %s5328_s26, %s2997_s30, %s3623_s23, %s3623_s23, %s3624_s18  }
 0x35a PF: > { %s3026_s20 = sand.u32 1, %s3603_s12   ;;  %p5499_p7 = scmp.ne.s32.totalorder %s5391_s19, 0 }
 0x35b   : > { %p5500_p12 = scmp.ge.s32.totalorder %s3615_s15, 2  ;;  %s3027_s16 = scalar_lea.sflag [#allocation4], %s3026_s20 }
 0x35d   : > { %p3207_p13 = pnand %p5500_p12, %p5499_p7 }
 0x35f   : > { %p3208_p0 = pneg %p3207_p13 }
 0x361   : > { %3598 = dma.done.wait (%p3208_p0), %s3027_s16, 18432  }
 0x362   : > { %3600 = vsyncadd (%p3208_p0), %s3027_s16, 4294948864  ;;  %p17_p5 = scmp.ge.s32.totalorder %s3720_s7, 4   ;;  %s5501_s12 = smov %s3607_s13 }
 0x363   : > { %s5502_s13 = smov %s3611_s14  ;;  %s5503_s14 = smov %s3730_s10 }
 0x364   : > { %s5504_s15 = smov %s3720_s7  ;;  %19 = sbr.rel (!%p17_p5) target bundleno = 6 (0x6), region = 85 }
 0x369   :  { %3032 = vsyncpa [#allocation3], 1 }
 0x36a   :  { %3034 = vsyncpa [#allocation3 + $0x1], 1 }
 0x36b   :  { %3035 = vsyncpa [#allocation6], 1 }
 0x36c   :  { %3036 = vsyncpa [#allocation4], 1 }
 0x36d   :  { %3038 = vsyncpa [#allocation4 + $0x1], 1 }

</bundles_post_ra>
